<compile_context>
chip_gen: v6e
topology: v6e:2x2x1
jax: 0.10.0
libtpu: 0.0.40
codegen_flags: <defaults>
</compile_context>

<pallas_src>
import math

import numpy as np
import jax
import jax.numpy as jnp
from jax.experimental import pallas as pl
from jax.experimental.pallas import tpu as pltpu


def sinusoid_weight_np(d_model: int) -> np.ndarray:
    """Replicates sinusoid_weight() from the PyTorch module.

    Returns Wr.weight.T, i.e. the (in_dim=2, s_dim) matrix W_eff such that
    projected = x @ W_eff.
    """
    w = np.zeros((2, d_model), dtype=np.float32)
    for i in range(d_model):
        if i < d_model // 2:
            w[0, i] = 1.0 / np.power(10000.0, 2.0 * i / d_model)
        else:
            w[1, i] = 1.0 / np.power(10000.0, 2.0 * (i - d_model // 2) / d_model)
    return w


def _round_up(a: int, b: int) -> int:
    return ((a + b - 1) // b) * b


def _lcm(a: int, b: int) -> int:
    return a * b // math.gcd(a, b)


def _pe_kernel(x_ref, w_ref, b_ref, o_ref):
    # x_ref: (TR, K)  slab of k-packed positions; K = k * in_dim (multiple of 128)
    # w_ref: (K, W)   block-diagonal, column-duplicated projection; W = k * 2*s_dim
    # b_ref: (1, W)   phase bias: 0 on sin lanes, pi/2 on cos lanes
    # o_ref: (TR, W)  sin(x @ w + b) -- MXU matmul + one transcendental,
    #                 lane-dense unmasked store.
    proj = jnp.dot(x_ref[...], w_ref[...], preferred_element_type=jnp.float32)
    o_ref[...] = jnp.sin(proj + b_ref[...]).astype(o_ref.dtype)


def make_learnable_sinusoid_pe(w_eff, *, tile_bytes: int = 4 * 1024 * 1024,
                               out_dtype=jnp.float32):
    """Builds the forward fn.  w_eff: (in_dim, s_dim) == Wr.weight.T (float32).

    Returns forward(x: (N, in_dim)) -> (1, N, 2*s_dim), matching the module.
    All per-parameter preprocessing (column duplication, phase bias,
    lane-packing block-diagonal weight) happens once here, not per call.
    """
    w_eff_np = np.asarray(jax.device_get(jnp.asarray(w_eff, jnp.float32)))
    in_dim, s_dim = w_eff_np.shape
    d2 = 2 * s_dim

    # Column-duplicated weight: W2[:, 2j] = W2[:, 2j+1] = w_eff[:, j]
    w2_np = np.repeat(w_eff_np, 2, axis=1)                              # (in_dim, d2)
    # Phase bias: cos(t) = sin(t + pi/2)  ->  [0, pi/2, 0, pi/2, ...]
    bias_np = np.tile(np.array([0.0, np.pi / 2.0], np.float32), s_dim)[None, :]

    # Lane packing factor k: pack k consecutive positions per output row so
    #   W = k*d2 is a multiple of 128 (unmasked lane-dense stores), and
    #   K = k*in_dim is a multiple of 128 (lane-dense x tile, native MXU depth).
    k_out = _lcm(d2, 128) // d2
    k_in = _lcm(in_dim, 128) // in_dim
    k = _lcm(k_out, k_in)
    if (k * in_dim) * (k * d2) * 4 > (8 << 20):
        # Block-diagonal weight would be too big; keep only the lane-dense
        # output constraint (the single biggest measured lever).
        k = k_out
    K = k * in_dim
    W = k * d2

    w_big_np = np.zeros((K, W), np.float32)
    for g in range(k):
        w_big_np[g * in_dim:(g + 1) * in_dim, g * d2:(g + 1) * d2] = w2_np
    b_big_np = np.tile(bias_np, (1, k))
    w_big = jnp.asarray(w_big_np)                                       # (K, W)
    b_big = jnp.asarray(b_big_np)                                       # (1, W)

    @jax.jit
    def forward(x):
        assert x.ndim == 2, x.shape
        n, xd = x.shape
        assert xd == in_dim, f"expected x last dim {in_dim}, got {xd}"
        x = x.astype(jnp.float32)

        # Slab rows (each holds k positions).
        n_slab = pl.cdiv(n, k)
        n_pad = n_slab * k

        # Tile rows: biggest tile under tile_bytes, sublane multiple of 8,
        # capped so there are >= 2 grid steps when there is enough work
        # (lets "parallel" shard across v7x's two TensorCores).
        tr = tile_bytes // (W * 4)
        tr = max(8, (tr // 8) * 8)
        if n_slab > 8:
            tr = min(tr, _round_up(pl.cdiv(n_slab, 2), 8))
        tr = min(tr, _round_up(n_slab, 8))

        if n_pad != n:
            x = jnp.pad(x, ((0, n_pad - n), (0, 0)))
        x_slab = x.reshape(n_slab, K)       # row r holds positions r*k .. r*k+k-1

        grid = (pl.cdiv(n_slab, tr),)       # Pallas masks the ragged last block
        out_slab = pl.pallas_call(
            _pe_kernel,
            out_shape=jax.ShapeDtypeStruct((n_slab, W), out_dtype),
            grid=grid,
            in_specs=[
                pl.BlockSpec((tr, K), lambda i: (i, 0)),   # positions tile
                pl.BlockSpec((K, W), lambda i: (0, 0)),    # weight (constant map)
                pl.BlockSpec((1, W), lambda i: (0, 0)),    # phase bias (constant map)
            ],
            out_specs=pl.BlockSpec((tr, W), lambda i: (i, 0)),
            compiler_params=pltpu.CompilerParams(
                dimension_semantics=("parallel",)),
            cost_estimate=pl.CostEstimate(
                flops=2 * n_slab * K * W,
                transcendentals=n_slab * W,
                bytes_accessed=(n_slab * K + K * W + W + n_slab * W) * 4),
        )(x_slab, w_big, b_big)

        out = out_slab.reshape(n_pad, d2)   # free: contiguous minor-dim split
        if n_pad != n:
            # TODO(synk): callers that tolerate a padded (1, n_pad, d2) view can
            # skip this slice (it materializes one extra copy of the output).
            out = out[:n]
        return out[None]                    # unsqueeze(0) -> (1, N, 2*s_dim)

    return forward


if __name__ == "__main__":
    # 'sinusoid' init implies Wr: R^2 -> R^{s_dim}, i.e. in_dim = 2.
    in_dim = 2
    s_dim = 16          # -> output feature dim 2*s_dim = 32

    key = jax.random.PRNGKey(0)

    # Deterministic sinusoid-initialized weight (module's init_weights()).
    w_eff = jnp.asarray(sinusoid_weight_np(s_dim))          # (2, s_dim) == Wr.weight.T
    # TODO(synk): the initialize='load' path (torch.load of a pretrained file) is
    # host-side parameter I/O and is intentionally not part of the kernel.

    forward = make_learnable_sinusoid_pe(w_eff)

    def ref_forward(x):
        # Pure-JAX reference of the PyTorch forward.
        proj = x @ w_eff                                    # (N, s_dim)
        r = jnp.zeros((x.shape[0], 2 * s_dim), jnp.float32)
        r = r.at[:, 0::2].set(jnp.sin(proj)).at[:, 1::2].set(jnp.cos(proj))
        return r[None]

    # n=10 exercises padding + ragged block + depad slice;
    # n=1024 (multiple of the packing factor) exercises the no-copy fast path
    # and a multi-step "parallel" grid.
    for n_pos in (10, 1024):
        key, kx = jax.random.split(key)
        x = jax.random.normal(kx, (n_pos, in_dim), dtype=jnp.float32)
        out = jax.block_until_ready(forward(x))
        ref = ref_forward(x)
        assert out.shape == (1, n_pos, 2 * s_dim), out.shape
        assert jnp.allclose(out, ref, atol=1e-5, rtol=1e-5), \
            float(jnp.max(jnp.abs(out - ref)))

    print("KERNEL_OK")
</pallas_src>

<mosaic_0001>
module attributes {stable_mosaic.version = 11 : i64} {
  func.func @_pe_kernel(%arg0: i32, %arg1: memref<8x128xf32, #tpu.memory_space<vmem>>, %arg2: memref<128x2048xf32, #tpu.memory_space<vmem>>, %arg3: memref<1x2048xf32, #tpu.memory_space<vmem>>, %arg4: memref<8x2048xf32, #tpu.memory_space<vmem>>) attributes {dimension_semantics = [#tpu.dimension_semantics<parallel>], iteration_bounds = array<i64: 1>, scalar_prefetch = 0 : i64, scratch_operands = 0 : i64, tpu.core_type = #tpu.core_type<tc>, window_params = [{transform_indices = @transform_0, window_bounds = array<i64: 8, 128>}, {pipeline_mode = #tpu.pipeline_mode<synchronous>, transform_indices = @transform_1, window_bounds = array<i64: 128, 2048>}, {pipeline_mode = #tpu.pipeline_mode<synchronous>, transform_indices = @transform_2, window_bounds = array<i64: 1, 2048>}, {transform_indices = @transform_3, window_bounds = array<i64: 8, 2048>}]} {
    %c0 = arith.constant 0 : index
    %c0_0 = arith.constant 0 : index
    %0 = vector.load %arg1[%c0, %c0_0] : memref<8x128xf32, #tpu.memory_space<vmem>>, vector<8x128xf32>
    %c0_1 = arith.constant 0 : index
    %c0_2 = arith.constant 0 : index
    %1 = vector.load %arg2[%c0_1, %c0_2] : memref<128x2048xf32, #tpu.memory_space<vmem>>, vector<128x2048xf32>
    %cst = arith.constant dense<0.000000e+00> : vector<8x2048xf32>
    %2 = tpu.matmul %0, %1, %cst {dimension_numbers = #tpu.dot_dimension_numbers<[1], [0], [0], [1], [0, 0, 1, 1], [], []>} : vector<8x128xf32>, vector<128x2048xf32>, vector<8x2048xf32> -> vector<8x2048xf32>
    %c0_3 = arith.constant 0 : index
    %c0_4 = arith.constant 0 : index
    %3 = vector.load %arg3[%c0_3, %c0_4] : memref<1x2048xf32, #tpu.memory_space<vmem>>, vector<1x2048xf32>
    %4 = vector.broadcast %3 : vector<1x2048xf32> to vector<8x2048xf32>
    %5 = arith.addf %2, %4 : vector<8x2048xf32>
    %6 = math.sin %5 : vector<8x2048xf32>
    %c0_5 = arith.constant 0 : index
    %c0_6 = arith.constant 0 : index
    %7 = vector.load %arg4[%c0_5, %c0_6] : memref<8x2048xf32, #tpu.memory_space<vmem>>, vector<8x2048xf32>
    tpu.vector_store %arg4[%c0_5, %c0_6], %6 {strides = array<i32>} : memref<8x2048xf32, #tpu.memory_space<vmem>>, vector<8x2048xf32>,
    return
  }
  func.func @transform_0(%arg0: i32) -> (i32, i32) {
    %c0_i32 = arith.constant 0 : i32
    %c0_i32_0 = arith.constant 0 : i32
    return %arg0, %c0_i32 : i32, i32
  }
  func.func @transform_1(%arg0: i32) -> (i32, i32) {
    %c0_i32 = arith.constant 0 : i32
    %c0_i32_0 = arith.constant 0 : i32
    %c0_i32_1 = arith.constant 0 : i32
    return %c0_i32, %c0_i32_0 : i32, i32
  }
  func.func @transform_2(%arg0: i32) -> (i32, i32) {
    %c0_i32 = arith.constant 0 : i32
    %c0_i32_0 = arith.constant 0 : i32
    %c0_i32_1 = arith.constant 0 : i32
    return %c0_i32, %c0_i32_0 : i32, i32
  }
  func.func @transform_3(%arg0: i32) -> (i32, i32) {
    %c0_i32 = arith.constant 0 : i32
    %c0_i32_0 = arith.constant 0 : i32
    return %arg0, %c0_i32 : i32, i32
  }
}

</mosaic_0001>

<bundles_post_ra>
// kernel: forward.1
= control target key start
LH: loop header
LB: loop body
LE: loop exit
PB: predicated region body
PF: predicated region fallthrough
CT: control target
= control target key end

     0   :  { %8 = vsyncpa [#allocation3], 0  ;;  %s3175_s12 = smov [#allocation2]   ;;  %s4969_s0 = inlined_call_operand.vmem [shape: f32[1,128], index: 0, kind: input, shape index: {}]   ;;  %s4970_s1 = inlined_call_operand.hbm [shape: f32[128,2048], index: 1, kind: input, shape index: {}]   ;;  %s4971_s2 = inlined_call_operand.vmem [shape: f32[1,2048], index: 2, kind: input, shape index: {}]   ;;  %s4972_s3 = inlined_call_operand.vmem [shape: f32[1,2048], index: 3, kind: output, shape index: {}]  }
   0x1   :  { %s16_s13 = sshll.u32 %s3175_s12, 4  ;;  %s17_s13 = int_to_ptr.vmem [resolvable:$true] %s16_s13 }
   0x2   :  { %s3161_s14 = scalar_lea.vmem %s17_s13, 32768  ;;  %p3166_p1 = scmp.lt.s32.totalorder %s17_s13, %s17_s13 }
   0x3   :  { %p3162_p0 = scmp.ne.s32.totalorder %s17_s13, %s3161_s14  ;;  %p3167_p2 = scmp.lt.s32.totalorder %s3161_s14, %s3161_s14 }
   0x5   :  { %p3168_p3 = por %p3167_p2, %p3166_p1 }
   0x7   :  { %p3169_p4 = pnand %p3168_p3, %p3162_p0 }
   0x9   :  { %3172 = shalt.err (!%p3169_p4)
}
   0xa   :  { %s3176_s15 = smov 2048   ;;  %s3177_s16 = smov 128  }
   0xb   :  { %22 = dma.hbm_to_vmem [thread:$0]  %s4970_s1, 32768, %s17_s13, [#allocation3], %s3176_s15, %s3176_s15, %s3177_s16  }
   0xc   :  { %3173 = dma.done.wait [#allocation3], 32768  }
   0xd   :  { %3174 = vsyncadd [#allocation3], 4294934528  ;;  %v3178_v0 = vmov 0.0   ;;  %v270_v1 = vld [vmem:[#allocation2 + $0x788] sm:$0xff]  ;;  %v272_v2 = vld [vmem:[#allocation2 + $0x798] sm:$0xff] }
   0xe   :  { %433 = vmatprep.mubr.f32.mxu0 %v3178_v0  ;;  %504 = vmatprep.mubr.f32.mxu1 %v3178_v0  ;;  %v269_v3 = vld [vmem:[#allocation2 + $0x780] sm:$0xff]  ;;  %v271_v4 = vld [vmem:[#allocation2 + $0x790] sm:$0xff]  ;;  %v254_v5 = vld [vmem:[#allocation2 + $0x708] sm:$0xff] }
   0xf   :  { %369 = vmatprep.subr.mxu0 %v270_v1  ;;  %440 = vmatprep.subr.mxu1 %v272_v2  ;;  %v256_v6 = vld [vmem:[#allocation2 + $0x718] sm:$0xff]  ;;  %v253_v7 = vld [vmem:[#allocation2 + $0x700] sm:$0xff]  ;;  %v255_v8 = vld [vmem:[#allocation2 + $0x710] sm:$0xff] }
  0x10   :  { %370 = vmatpush1.msra.mxu0 %v269_v3  ;;  %441 = vmatpush1.msra.mxu1 %v271_v4  ;;  %v238_v9 = vld [vmem:[#allocation2 + $0x688] sm:$0xff]  ;;  %v240_v10 = vld [vmem:[#allocation2 + $0x698] sm:$0xff]  ;;  %v237_v11 = vld [vmem:[#allocation2 + $0x680] sm:$0xff] }
  0x11   :  { %371 = vmatprep.subr.mxu0 %v254_v5  ;;  %442 = vmatprep.subr.mxu1 %v256_v6  ;;  %v239_v12 = vld [vmem:[#allocation2 + $0x690] sm:$0xff]  ;;  %v222_v13 = vld [vmem:[#allocation2 + $0x608] sm:$0xff]  ;;  %v224_v14 = vld [vmem:[#allocation2 + $0x618] sm:$0xff] }
  0x12   :  { %372 = vmatpush1.msra.mxu0 %v253_v7  ;;  %443 = vmatpush1.msra.mxu1 %v255_v8  ;;  %v221_v15 = vld [vmem:[#allocation2 + $0x600] sm:$0xff]  ;;  %v223_v16 = vld [vmem:[#allocation2 + $0x610] sm:$0xff]  ;;  %v206_v17 = vld [vmem:[#allocation2 + $0x588] sm:$0xff] }
  0x13   :  { %373 = vmatprep.subr.mxu0 %v238_v9  ;;  %444 = vmatprep.subr.mxu1 %v240_v10  ;;  %v208_v18 = vld [vmem:[#allocation2 + $0x598] sm:$0xff]  ;;  %v205_v19 = vld [vmem:[#allocation2 + $0x580] sm:$0xff]  ;;  %v207_v20 = vld [vmem:[#allocation2 + $0x590] sm:$0xff] }
  0x14   :  { %374 = vmatpush1.msra.mxu0 %v237_v11  ;;  %445 = vmatpush1.msra.mxu1 %v239_v12  ;;  %v190_v21 = vld [vmem:[#allocation2 + $0x508] sm:$0xff]  ;;  %v192_v22 = vld [vmem:[#allocation2 + $0x518] sm:$0xff]  ;;  %v189_v23 = vld [vmem:[#allocation2 + $0x500] sm:$0xff] }
  0x15   :  { %375 = vmatprep.subr.mxu0 %v222_v13  ;;  %446 = vmatprep.subr.mxu1 %v224_v14  ;;  %v191_v24 = vld [vmem:[#allocation2 + $0x510] sm:$0xff]  ;;  %v174_v25 = vld [vmem:[#allocation2 + $0x488] sm:$0xff]  ;;  %v176_v26 = vld [vmem:[#allocation2 + $0x498] sm:$0xff] }
  0x16   :  { %376 = vmatpush1.msra.mxu0 %v221_v15  ;;  %447 = vmatpush1.msra.mxu1 %v223_v16  ;;  %v173_v27 = vld [vmem:[#allocation2 + $0x480] sm:$0xff]  ;;  %v175_v28 = vld [vmem:[#allocation2 + $0x490] sm:$0xff]  ;;  %v158_v29 = vld [vmem:[#allocation2 + $0x408] sm:$0xff] }
  0x17   :  { %377 = vmatprep.subr.mxu0 %v206_v17  ;;  %448 = vmatprep.subr.mxu1 %v208_v18  ;;  %v160_v30 = vld [vmem:[#allocation2 + $0x418] sm:$0xff]  ;;  %v157_v31 = vld [vmem:[#allocation2 + $0x400] sm:$0xff]  ;;  %v159_v32 = vld [vmem:[#allocation2 + $0x410] sm:$0xff] }
  0x18   :  { %378 = vmatpush1.msra.mxu0 %v205_v19  ;;  %449 = vmatpush1.msra.mxu1 %v207_v20  ;;  %v142_v33 = vld [vmem:[#allocation2 + $0x388] sm:$0xff]  ;;  %v144_v34 = vld [vmem:[#allocation2 + $0x398] sm:$0xff]  ;;  %v141_v35 = vld [vmem:[#allocation2 + $0x380] sm:$0xff] }
  0x19   :  { %379 = vmatprep.subr.mxu0 %v190_v21  ;;  %450 = vmatprep.subr.mxu1 %v192_v22  ;;  %v143_v36 = vld [vmem:[#allocation2 + $0x390] sm:$0xff]  ;;  %v126_v37 = vld [vmem:[#allocation2 + $0x308] sm:$0xff]  ;;  %v128_v38 = vld [vmem:[#allocation2 + $0x318] sm:$0xff] }
  0x1a   :  { %380 = vmatpush1.msra.mxu0 %v189_v23  ;;  %451 = vmatpush1.msra.mxu1 %v191_v24  ;;  %v125_v39 = vld [vmem:[#allocation2 + $0x300] sm:$0xff]  ;;  %v127_v40 = vld [vmem:[#allocation2 + $0x310] sm:$0xff]  ;;  %v110_v41 = vld [vmem:[#allocation2 + $0x288] sm:$0xff] }
  0x1b   :  { %381 = vmatprep.subr.mxu0 %v174_v25  ;;  %452 = vmatprep.subr.mxu1 %v176_v26  ;;  %v112_v42 = vld [vmem:[#allocation2 + $0x298] sm:$0xff]  ;;  %v109_v43 = vld [vmem:[#allocation2 + $0x280] sm:$0xff]  ;;  %v111_v44 = vld [vmem:[#allocation2 + $0x290] sm:$0xff] }
  0x1c   :  { %382 = vmatpush1.msra.mxu0 %v173_v27  ;;  %453 = vmatpush1.msra.mxu1 %v175_v28  ;;  %v94_v45 = vld [vmem:[#allocation2 + $0x208] sm:$0xff]  ;;  %v96_v46 = vld [vmem:[#allocation2 + $0x218] sm:$0xff]  ;;  %v93_v47 = vld [vmem:[#allocation2 + $0x200] sm:$0xff] }
  0x1d   :  { %383 = vmatprep.subr.mxu0 %v158_v29  ;;  %454 = vmatprep.subr.mxu1 %v160_v30  ;;  %v95_v48 = vld [vmem:[#allocation2 + $0x210] sm:$0xff]  ;;  %v78_v49 = vld [vmem:[#allocation2 + $0x188] sm:$0xff]  ;;  %v80_v50 = vld [vmem:[#allocation2 + $0x198] sm:$0xff] }
  0x1e   :  { %384 = vmatpush1.msra.mxu0 %v157_v31  ;;  %455 = vmatpush1.msra.mxu1 %v159_v32  ;;  %v77_v51 = vld [vmem:[#allocation2 + $0x180] sm:$0xff]  ;;  %v79_v52 = vld [vmem:[#allocation2 + $0x190] sm:$0xff]  ;;  %v62_v53 = vld [vmem:[#allocation2 + $0x108] sm:$0xff] }
  0x1f   :  { %385 = vmatprep.subr.mxu0 %v142_v33  ;;  %456 = vmatprep.subr.mxu1 %v144_v34  ;;  %v64_v54 = vld [vmem:[#allocation2 + $0x118] sm:$0xff]  ;;  %v61_v55 = vld [vmem:[#allocation2 + $0x100] sm:$0xff]  ;;  %v63_v56 = vld [vmem:[#allocation2 + $0x110] sm:$0xff] }
  0x20   :  { %386 = vmatpush1.msra.mxu0 %v141_v35  ;;  %457 = vmatpush1.msra.mxu1 %v143_v36  ;;  %v46_v57 = vld [vmem:[#allocation2 + $0x88] sm:$0xff]  ;;  %v48_v58 = vld [vmem:[#allocation2 + $0x98] sm:$0xff]  ;;  %v45_v59 = vld [vmem:[#allocation2 + $0x80] sm:$0xff] }
  0x21   :  { %387 = vmatprep.subr.mxu0 %v126_v37  ;;  %458 = vmatprep.subr.mxu1 %v128_v38  ;;  %v47_v60 = vld [vmem:[#allocation2 + $0x90] sm:$0xff]  ;;  %v30_v61 = vld [vmem:[#allocation2 + $0x8] sm:$0xff]  ;;  %v32_v62 = vld [vmem:[#allocation2 + $0x18] sm:$0xff] }
  0x22   :  { %388 = vmatpush1.msra.mxu0 %v125_v39  ;;  %459 = vmatpush1.msra.mxu1 %v127_v40  ;;  %v29_v63 = vld [vmem:[#allocation2] sm:$0xff]  ;;  %v31_v1 = vld [vmem:[#allocation2 + $0x10] sm:$0xff]  ;;  %v274_v3 = vld [vmem:[#allocation2 + $0x7a8] sm:$0xff] }
  0x23   :  { %389 = vmatprep.subr.mxu0 %v110_v41  ;;  %460 = vmatprep.subr.mxu1 %v112_v42  ;;  %v3214_v2 = vld [vmem:[%s4969_s0] sm:$0xff]  ;;  %v276_v4 = vld [vmem:[#allocation2 + $0x7b8] sm:$0xff]  ;;  %v275_v6 = vld [vmem:[#allocation2 + $0x7b0] sm:$0xff] }
  0x24   :  { %390 = vmatpush1.msra.mxu0 %v109_v43  ;;  %461 = vmatpush1.msra.mxu1 %v111_v44  ;;  %v273_v5 = vld [vmem:[#allocation2 + $0x7a0] sm:$0xff]  ;;  %v258_v7 = vld [vmem:[#allocation2 + $0x728] sm:$0xff]  ;;  %v260_v8 = vld [vmem:[#allocation2 + $0x738] sm:$0xff] }
  0x25   :  { %391 = vmatprep.subr.mxu0 %v94_v45  ;;  %462 = vmatprep.subr.mxu1 %v96_v46  ;;  %v257_v9 = vld [vmem:[#allocation2 + $0x720] sm:$0xff]  ;;  %v259_v10 = vld [vmem:[#allocation2 + $0x730] sm:$0xff]  ;;  %v242_v11 = vld [vmem:[#allocation2 + $0x6a8] sm:$0xff] }
  0x26   :  { %392 = vmatpush1.msra.mxu0 %v93_v47  ;;  %463 = vmatpush1.msra.mxu1 %v95_v48  ;;  %v244_v12 = vld [vmem:[#allocation2 + $0x6b8] sm:$0xff]  ;;  %v241_v13 = vld [vmem:[#allocation2 + $0x6a0] sm:$0xff]  ;;  %v243_v14 = vld [vmem:[#allocation2 + $0x6b0] sm:$0xff] }
  0x27   :  { %393 = vmatprep.subr.mxu0 %v78_v49  ;;  %464 = vmatprep.subr.mxu1 %v80_v50  ;;  %v226_v15 = vld [vmem:[#allocation2 + $0x628] sm:$0xff]  ;;  %v228_v16 = vld [vmem:[#allocation2 + $0x638] sm:$0xff]  ;;  %v225_v17 = vld [vmem:[#allocation2 + $0x620] sm:$0xff] }
  0x28   :  { %394 = vmatpush1.msra.mxu0 %v77_v51  ;;  %465 = vmatpush1.msra.mxu1 %v79_v52  ;;  %v227_v18 = vld [vmem:[#allocation2 + $0x630] sm:$0xff]  ;;  %v210_v19 = vld [vmem:[#allocation2 + $0x5a8] sm:$0xff]  ;;  %v212_v20 = vld [vmem:[#allocation2 + $0x5b8] sm:$0xff] }
  0x29   :  { %395 = vmatprep.subr.mxu0 %v62_v53  ;;  %466 = vmatprep.subr.mxu1 %v64_v54  ;;  %v209_v21 = vld [vmem:[#allocation2 + $0x5a0] sm:$0xff]  ;;  %v211_v22 = vld [vmem:[#allocation2 + $0x5b0] sm:$0xff]  ;;  %v194_v23 = vld [vmem:[#allocation2 + $0x528] sm:$0xff] }
  0x2a   :  { %396 = vmatpush1.msra.mxu0 %v61_v55  ;;  %467 = vmatpush1.msra.mxu1 %v63_v56  ;;  %v196_v24 = vld [vmem:[#allocation2 + $0x538] sm:$0xff]  ;;  %v193_v25 = vld [vmem:[#allocation2 + $0x520] sm:$0xff]  ;;  %v195_v26 = vld [vmem:[#allocation2 + $0x530] sm:$0xff] }
  0x2b   :  { %397 = vmatprep.subr.mxu0 %v46_v57  ;;  %468 = vmatprep.subr.mxu1 %v48_v58  ;;  %v178_v27 = vld [vmem:[#allocation2 + $0x4a8] sm:$0xff]  ;;  %v180_v28 = vld [vmem:[#allocation2 + $0x4b8] sm:$0xff]  ;;  %v177_v29 = vld [vmem:[#allocation2 + $0x4a0] sm:$0xff] }
  0x2c   :  { %398 = vmatpush1.msra.mxu0 %v45_v59  ;;  %469 = vmatpush1.msra.mxu1 %v47_v60  ;;  %v179_v30 = vld [vmem:[#allocation2 + $0x4b0] sm:$0xff]  ;;  %v162_v31 = vld [vmem:[#allocation2 + $0x428] sm:$0xff]  ;;  %v164_v32 = vld [vmem:[#allocation2 + $0x438] sm:$0xff] }
  0x2d   :  { %399 = vmatprep.subr.mxu0 %v30_v61  ;;  %470 = vmatprep.subr.mxu1 %v32_v62  ;;  %v161_v33 = vld [vmem:[#allocation2 + $0x420] sm:$0xff]  ;;  %v163_v34 = vld [vmem:[#allocation2 + $0x430] sm:$0xff]  ;;  %v146_v35 = vld [vmem:[#allocation2 + $0x3a8] sm:$0xff] }
  0x2e   :  { %400 = vmatpush1.msra.mxu0 %v29_v63  ;;  %471 = vmatpush1.msra.mxu1 %v31_v1  ;;  %v148_v36 = vld [vmem:[#allocation2 + $0x3b8] sm:$0xff]  ;;  %v145_v37 = vld [vmem:[#allocation2 + $0x3a0] sm:$0xff]  ;;  %v147_v38 = vld [vmem:[#allocation2 + $0x3b0] sm:$0xff] }
  0x2f   :  { %434 = vmatmul.mubr.f32.vlgmr.msra.gmra.mxu0 %v3214_v2  ;;  %505 = vmatmul.mubr.f32.vlgmr.msra.gmra.mxu1 %v3214_v2  ;;  %v130_v39 = vld [vmem:[#allocation2 + $0x328] sm:$0xff]  ;;  %v132_v40 = vld [vmem:[#allocation2 + $0x338] sm:$0xff]  ;;  %v129_v41 = vld [vmem:[#allocation2 + $0x320] sm:$0xff] }
  0x30   :  { %511 = vmatprep.subr.mxu0 %v274_v3  ;;  %582 = vmatprep.subr.mxu1 %v276_v4  ;;  %v131_v42 = vld [vmem:[#allocation2 + $0x330] sm:$0xff]  ;;  %v114_v43 = vld [vmem:[#allocation2 + $0x2a8] sm:$0xff]  ;;  %v116_v44 = vld [vmem:[#allocation2 + $0x2b8] sm:$0xff] }
  0x31   :  { %512 = vmatpush1.msra.mxu0 %v273_v5  ;;  %583 = vmatpush1.msra.mxu1 %v275_v6  ;;  %v113_v45 = vld [vmem:[#allocation2 + $0x2a0] sm:$0xff]  ;;  %v115_v46 = vld [vmem:[#allocation2 + $0x2b0] sm:$0xff]  ;;  %v98_v47 = vld [vmem:[#allocation2 + $0x228] sm:$0xff] }
  0x32   :  { %513 = vmatprep.subr.mxu0 %v258_v7  ;;  %584 = vmatprep.subr.mxu1 %v260_v8  ;;  %v100_v48 = vld [vmem:[#allocation2 + $0x238] sm:$0xff]  ;;  %v97_v49 = vld [vmem:[#allocation2 + $0x220] sm:$0xff]  ;;  %v99_v50 = vld [vmem:[#allocation2 + $0x230] sm:$0xff] }
  0x33   :  { %514 = vmatpush1.msra.mxu0 %v257_v9  ;;  %585 = vmatpush1.msra.mxu1 %v259_v10  ;;  %v82_v51 = vld [vmem:[#allocation2 + $0x1a8] sm:$0xff]  ;;  %v84_v52 = vld [vmem:[#allocation2 + $0x1b8] sm:$0xff]  ;;  %v81_v53 = vld [vmem:[#allocation2 + $0x1a0] sm:$0xff] }
  0x34   :  { %515 = vmatprep.subr.mxu0 %v242_v11  ;;  %586 = vmatprep.subr.mxu1 %v244_v12  ;;  %v83_v54 = vld [vmem:[#allocation2 + $0x1b0] sm:$0xff]  ;;  %v66_v55 = vld [vmem:[#allocation2 + $0x128] sm:$0xff]  ;;  %v68_v56 = vld [vmem:[#allocation2 + $0x138] sm:$0xff] }
  0x35   :  { %516 = vmatpush1.msra.mxu0 %v241_v13  ;;  %587 = vmatpush1.msra.mxu1 %v243_v14  ;;  %v65_v57 = vld [vmem:[#allocation2 + $0x120] sm:$0xff]  ;;  %v67_v58 = vld [vmem:[#allocation2 + $0x130] sm:$0xff]  ;;  %v50_v59 = vld [vmem:[#allocation2 + $0xa8] sm:$0xff] }
  0x36   :  { %517 = vmatprep.subr.mxu0 %v226_v15  ;;  %588 = vmatprep.subr.mxu1 %v228_v16  ;;  %v52_v60 = vld [vmem:[#allocation2 + $0xb8] sm:$0xff]  ;;  %v49_v61 = vld [vmem:[#allocation2 + $0xa0] sm:$0xff]  ;;  %v51_v62 = vld [vmem:[#allocation2 + $0xb0] sm:$0xff] }
  0x37   :  { %518 = vmatpush1.msra.mxu0 %v225_v17  ;;  %589 = vmatpush1.msra.mxu1 %v227_v18  ;;  %v34_v63 = vld [vmem:[#allocation2 + $0x28] sm:$0xff]  ;;  %v36_v1 = vld [vmem:[#allocation2 + $0x38] sm:$0xff]  ;;  %v33_v3 = vld [vmem:[#allocation2 + $0x20] sm:$0xff] }
  0x38   :  { %519 = vmatprep.subr.mxu0 %v210_v19  ;;  %590 = vmatprep.subr.mxu1 %v212_v20  ;;  %v35_v4 = vld [vmem:[#allocation2 + $0x30] sm:$0xff]  ;;  %v278_v5 = vld [vmem:[#allocation2 + $0x7c8] sm:$0xff]  ;;  %v280_v6 = vld [vmem:[#allocation2 + $0x7d8] sm:$0xff] }
  0x39   :  { %520 = vmatpush1.msra.mxu0 %v209_v21  ;;  %591 = vmatpush1.msra.mxu1 %v211_v22  ;;  %v277_v7 = vld [vmem:[#allocation2 + $0x7c0] sm:$0xff]  ;;  %v279_v8 = vld [vmem:[#allocation2 + $0x7d0] sm:$0xff]  ;;  %v262_v9 = vld [vmem:[#allocation2 + $0x748] sm:$0xff] }
  0x3a   :  { %521 = vmatprep.subr.mxu0 %v194_v23  ;;  %592 = vmatprep.subr.mxu1 %v196_v24  ;;  %v264_v10 = vld [vmem:[#allocation2 + $0x758] sm:$0xff]  ;;  %v261_v11 = vld [vmem:[#allocation2 + $0x740] sm:$0xff]  ;;  %v263_v12 = vld [vmem:[#allocation2 + $0x750] sm:$0xff] }
  0x3b   :  { %522 = vmatpush1.msra.mxu0 %v193_v25  ;;  %593 = vmatpush1.msra.mxu1 %v195_v26  ;;  %v246_v13 = vld [vmem:[#allocation2 + $0x6c8] sm:$0xff]  ;;  %v248_v14 = vld [vmem:[#allocation2 + $0x6d8] sm:$0xff]  ;;  %v245_v15 = vld [vmem:[#allocation2 + $0x6c0] sm:$0xff] }
  0x3c   :  { %523 = vmatprep.subr.mxu0 %v178_v27  ;;  %594 = vmatprep.subr.mxu1 %v180_v28  ;;  %v247_v16 = vld [vmem:[#allocation2 + $0x6d0] sm:$0xff]  ;;  %v230_v17 = vld [vmem:[#allocation2 + $0x648] sm:$0xff]  ;;  %v232_v18 = vld [vmem:[#allocation2 + $0x658] sm:$0xff] }
  0x3d   :  { %524 = vmatpush1.msra.mxu0 %v177_v29  ;;  %595 = vmatpush1.msra.mxu1 %v179_v30  ;;  %v229_v19 = vld [vmem:[#allocation2 + $0x640] sm:$0xff]  ;;  %v231_v20 = vld [vmem:[#allocation2 + $0x650] sm:$0xff]  ;;  %v214_v21 = vld [vmem:[#allocation2 + $0x5c8] sm:$0xff] }
  0x3e   :  { %525 = vmatprep.subr.mxu0 %v162_v31  ;;  %596 = vmatprep.subr.mxu1 %v164_v32  ;;  %v216_v22 = vld [vmem:[#allocation2 + $0x5d8] sm:$0xff]  ;;  %v213_v23 = vld [vmem:[#allocation2 + $0x5c0] sm:$0xff]  ;;  %v215_v24 = vld [vmem:[#allocation2 + $0x5d0] sm:$0xff] }
  0x3f   :  { %526 = vmatpush1.msra.mxu0 %v161_v33  ;;  %597 = vmatpush1.msra.mxu1 %v163_v34  ;;  %v198_v25 = vld [vmem:[#allocation2 + $0x548] sm:$0xff]  ;;  %v200_v26 = vld [vmem:[#allocation2 + $0x558] sm:$0xff]  ;;  %v197_v27 = vld [vmem:[#allocation2 + $0x540] sm:$0xff] }
  0x40   :  { %527 = vmatprep.subr.mxu0 %v146_v35  ;;  %598 = vmatprep.subr.mxu1 %v148_v36  ;;  %v199_v28 = vld [vmem:[#allocation2 + $0x550] sm:$0xff]  ;;  %v182_v29 = vld [vmem:[#allocation2 + $0x4c8] sm:$0xff]  ;;  %v184_v30 = vld [vmem:[#allocation2 + $0x4d8] sm:$0xff] }
  0x41   :  { %528 = vmatpush1.msra.mxu0 %v145_v37  ;;  %599 = vmatpush1.msra.mxu1 %v147_v38  ;;  %v181_v31 = vld [vmem:[#allocation2 + $0x4c0] sm:$0xff]  ;;  %v183_v32 = vld [vmem:[#allocation2 + $0x4d0] sm:$0xff]  ;;  %v166_v33 = vld [vmem:[#allocation2 + $0x448] sm:$0xff] }
  0x42   :  { %529 = vmatprep.subr.mxu0 %v130_v39  ;;  %600 = vmatprep.subr.mxu1 %v132_v40  ;;  %v168_v34 = vld [vmem:[#allocation2 + $0x458] sm:$0xff]  ;;  %v165_v35 = vld [vmem:[#allocation2 + $0x440] sm:$0xff]  ;;  %v167_v36 = vld [vmem:[#allocation2 + $0x450] sm:$0xff] }
  0x43   :  { %530 = vmatpush1.msra.mxu0 %v129_v41  ;;  %601 = vmatpush1.msra.mxu1 %v131_v42  ;;  %v150_v37 = vld [vmem:[#allocation2 + $0x3c8] sm:$0xff]  ;;  %v152_v38 = vld [vmem:[#allocation2 + $0x3d8] sm:$0xff]  ;;  %v149_v39 = vld [vmem:[#allocation2 + $0x3c0] sm:$0xff] }
  0x44   :  { %531 = vmatprep.subr.mxu0 %v114_v43  ;;  %602 = vmatprep.subr.mxu1 %v116_v44  ;;  %v151_v40 = vld [vmem:[#allocation2 + $0x3d0] sm:$0xff]  ;;  %v134_v41 = vld [vmem:[#allocation2 + $0x348] sm:$0xff]  ;;  %v136_v42 = vld [vmem:[#allocation2 + $0x358] sm:$0xff] }
  0x45   :  { %532 = vmatpush1.msra.mxu0 %v113_v45  ;;  %603 = vmatpush1.msra.mxu1 %v115_v46  ;;  %v133_v43 = vld [vmem:[#allocation2 + $0x340] sm:$0xff]  ;;  %v135_v44 = vld [vmem:[#allocation2 + $0x350] sm:$0xff]  ;;  %v118_v45 = vld [vmem:[#allocation2 + $0x2c8] sm:$0xff] }
  0x46   :  { %533 = vmatprep.subr.mxu0 %v98_v47  ;;  %604 = vmatprep.subr.mxu1 %v100_v48  ;;  %v120_v46 = vld [vmem:[#allocation2 + $0x2d8] sm:$0xff]  ;;  %v117_v47 = vld [vmem:[#allocation2 + $0x2c0] sm:$0xff]  ;;  %v119_v48 = vld [vmem:[#allocation2 + $0x2d0] sm:$0xff] }
  0x47   :  { %534 = vmatpush1.msra.mxu0 %v97_v49  ;;  %605 = vmatpush1.msra.mxu1 %v99_v50  ;;  %v102_v49 = vld [vmem:[#allocation2 + $0x248] sm:$0xff]  ;;  %v104_v50 = vld [vmem:[#allocation2 + $0x258] sm:$0xff] }
  0x48   :  { %535 = vmatprep.subr.mxu0 %v82_v51  ;;  %606 = vmatprep.subr.mxu1 %v84_v52  ;;  %v101_v51 = vld [vmem:[#allocation2 + $0x240] sm:$0xff]  ;;  %v103_v52 = vld [vmem:[#allocation2 + $0x250] sm:$0xff] }
  0x49   :  { %536 = vmatpush1.msra.mxu0 %v81_v53  ;;  %607 = vmatpush1.msra.mxu1 %v83_v54  ;;  %v86_v53 = vld [vmem:[#allocation2 + $0x1c8] sm:$0xff]  ;;  %v88_v54 = vld [vmem:[#allocation2 + $0x1d8] sm:$0xff] }
  0x4a   :  { %537 = vmatprep.subr.mxu0 %v66_v55  ;;  %608 = vmatprep.subr.mxu1 %v68_v56  ;;  %v85_v55 = vld [vmem:[#allocation2 + $0x1c0] sm:$0xff]  ;;  %v87_v56 = vld [vmem:[#allocation2 + $0x1d0] sm:$0xff] }
  0x4b   :  { %538 = vmatpush1.msra.mxu0 %v65_v57  ;;  %609 = vmatpush1.msra.mxu1 %v67_v58  ;;  %v70_v57 = vld [vmem:[#allocation2 + $0x148] sm:$0xff]  ;;  %v72_v58 = vld [vmem:[#allocation2 + $0x158] sm:$0xff] }
  0x4c   :  { %539 = vmatprep.subr.mxu0 %v50_v59  ;;  %610 = vmatprep.subr.mxu1 %v52_v60  ;;  %v69_v59 = vld [vmem:[#allocation2 + $0x140] sm:$0xff]  ;;  %v71_v60 = vld [vmem:[#allocation2 + $0x150] sm:$0xff] }
  0x4d   :  { %540 = vmatpush1.msra.mxu0 %v49_v61  ;;  %611 = vmatpush1.msra.mxu1 %v51_v62  ;;  %v54_v61 = vld [vmem:[#allocation2 + $0xc8] sm:$0xff]  ;;  %v56_v62 = vld [vmem:[#allocation2 + $0xd8] sm:$0xff] }
  0x4e   :  { %541 = vmatprep.subr.mxu0 %v34_v63  ;;  %612 = vmatprep.subr.mxu1 %v36_v1  ;;  %v53_v63 = vld [vmem:[#allocation2 + $0xc0] sm:$0xff]  ;;  %v55_v1 = vld [vmem:[#allocation2 + $0xd0] sm:$0xff] }
  0x4f   :  { %542 = vmatpush1.msra.mxu0 %v33_v3  ;;  %575 = vmatprep.mubr.f32.mxu0 %v3178_v0  ;;  %v38_v3 = vld [vmem:[#allocation2 + $0x48] sm:$0xff] }
  0x50   :  { %613 = vmatpush1.msra.mxu1 %v35_v4  ;;  %646 = vmatprep.mubr.f32.mxu1 %v3178_v0  ;;  %v40_v4 = vld [vmem:[#allocation2 + $0x58] sm:$0xff] }
  0x51   :  { %576 = vmatmul.mubr.f32.vlgmr.msra.gmra.mxu0 %v3214_v2  ;;  %647 = vmatmul.mubr.f32.vlgmr.msra.gmra.mxu1 %v3214_v2 }
  0x52   :  { %653 = vmatprep.subr.mxu0 %v278_v5  ;;  %724 = vmatprep.subr.mxu1 %v280_v6  ;;  %v37_v5 = vld [vmem:[#allocation2 + $0x40] sm:$0xff]  ;;  %v39_v6 = vld [vmem:[#allocation2 + $0x50] sm:$0xff] }
  0x53   :  { %654 = vmatpush1.msra.mxu0 %v277_v7  ;;  %725 = vmatpush1.msra.mxu1 %v279_v8  ;;  %v282_v7 = vld [vmem:[#allocation2 + $0x7e8] sm:$0xff]  ;;  %v284_v8 = vld [vmem:[#allocation2 + $0x7f8] sm:$0xff] }
  0x54   :  { %655 = vmatprep.subr.mxu0 %v262_v9  ;;  %726 = vmatprep.subr.mxu1 %v264_v10  ;;  %v281_v9 = vld [vmem:[#allocation2 + $0x7e0] sm:$0xff]  ;;  %v283_v10 = vld [vmem:[#allocation2 + $0x7f0] sm:$0xff] }
  0x55   :  { %656 = vmatpush1.msra.mxu0 %v261_v11  ;;  %727 = vmatpush1.msra.mxu1 %v263_v12  ;;  %v266_v11 = vld [vmem:[#allocation2 + $0x768] sm:$0xff]  ;;  %v268_v12 = vld [vmem:[#allocation2 + $0x778] sm:$0xff] }
  0x56   :  { %657 = vmatprep.subr.mxu0 %v246_v13  ;;  %728 = vmatprep.subr.mxu1 %v248_v14  ;;  %v265_v13 = vld [vmem:[#allocation2 + $0x760] sm:$0xff]  ;;  %v267_v14 = vld [vmem:[#allocation2 + $0x770] sm:$0xff] }
  0x57   :  { %658 = vmatpush1.msra.mxu0 %v245_v15  ;;  %729 = vmatpush1.msra.mxu1 %v247_v16  ;;  %v250_v15 = vld [vmem:[#allocation2 + $0x6e8] sm:$0xff]  ;;  %v252_v16 = vld [vmem:[#allocation2 + $0x6f8] sm:$0xff] }
  0x58   :  { %659 = vmatprep.subr.mxu0 %v230_v17  ;;  %730 = vmatprep.subr.mxu1 %v232_v18  ;;  %v249_v17 = vld [vmem:[#allocation2 + $0x6e0] sm:$0xff]  ;;  %v251_v18 = vld [vmem:[#allocation2 + $0x6f0] sm:$0xff] }
  0x59   :  { %660 = vmatpush1.msra.mxu0 %v229_v19  ;;  %731 = vmatpush1.msra.mxu1 %v231_v20  ;;  %v234_v19 = vld [vmem:[#allocation2 + $0x668] sm:$0xff]  ;;  %v236_v20 = vld [vmem:[#allocation2 + $0x678] sm:$0xff] }
  0x5a   :  { %661 = vmatprep.subr.mxu0 %v214_v21  ;;  %732 = vmatprep.subr.mxu1 %v216_v22  ;;  %v233_v21 = vld [vmem:[#allocation2 + $0x660] sm:$0xff]  ;;  %v235_v22 = vld [vmem:[#allocation2 + $0x670] sm:$0xff] }
  0x5b   :  { %662 = vmatpush1.msra.mxu0 %v213_v23  ;;  %733 = vmatpush1.msra.mxu1 %v215_v24  ;;  %v218_v23 = vld [vmem:[#allocation2 + $0x5e8] sm:$0xff]  ;;  %v220_v24 = vld [vmem:[#allocation2 + $0x5f8] sm:$0xff] }
  0x5c   :  { %663 = vmatprep.subr.mxu0 %v198_v25  ;;  %734 = vmatprep.subr.mxu1 %v200_v26  ;;  %v217_v25 = vld [vmem:[#allocation2 + $0x5e0] sm:$0xff]  ;;  %v219_v26 = vld [vmem:[#allocation2 + $0x5f0] sm:$0xff] }
  0x5d   :  { %664 = vmatpush1.msra.mxu0 %v197_v27  ;;  %735 = vmatpush1.msra.mxu1 %v199_v28  ;;  %v202_v27 = vld [vmem:[#allocation2 + $0x568] sm:$0xff]  ;;  %v204_v28 = vld [vmem:[#allocation2 + $0x578] sm:$0xff] }
  0x5e   :  { %665 = vmatprep.subr.mxu0 %v182_v29  ;;  %736 = vmatprep.subr.mxu1 %v184_v30  ;;  %v201_v29 = vld [vmem:[#allocation2 + $0x560] sm:$0xff]  ;;  %v203_v30 = vld [vmem:[#allocation2 + $0x570] sm:$0xff] }
  0x5f   :  { %666 = vmatpush1.msra.mxu0 %v181_v31  ;;  %737 = vmatpush1.msra.mxu1 %v183_v32  ;;  %v186_v31 = vld [vmem:[#allocation2 + $0x4e8] sm:$0xff]  ;;  %v188_v32 = vld [vmem:[#allocation2 + $0x4f8] sm:$0xff] }
  0x60   :  { %667 = vmatprep.subr.mxu0 %v166_v33  ;;  %738 = vmatprep.subr.mxu1 %v168_v34  ;;  %v185_v33 = vld [vmem:[#allocation2 + $0x4e0] sm:$0xff]  ;;  %v187_v34 = vld [vmem:[#allocation2 + $0x4f0] sm:$0xff] }
  0x61   :  { %668 = vmatpush1.msra.mxu0 %v165_v35  ;;  %739 = vmatpush1.msra.mxu1 %v167_v36  ;;  %v170_v35 = vld [vmem:[#allocation2 + $0x468] sm:$0xff]  ;;  %v172_v36 = vld [vmem:[#allocation2 + $0x478] sm:$0xff] }
  0x62   :  { %669 = vmatprep.subr.mxu0 %v150_v37  ;;  %740 = vmatprep.subr.mxu1 %v152_v38  ;;  %v169_v37 = vld [vmem:[#allocation2 + $0x460] sm:$0xff]  ;;  %v171_v38 = vld [vmem:[#allocation2 + $0x470] sm:$0xff] }
  0x63   :  { %670 = vmatpush1.msra.mxu0 %v149_v39  ;;  %741 = vmatpush1.msra.mxu1 %v151_v40  ;;  %v154_v39 = vld [vmem:[#allocation2 + $0x3e8] sm:$0xff]  ;;  %v156_v40 = vld [vmem:[#allocation2 + $0x3f8] sm:$0xff] }
  0x64   :  { %671 = vmatprep.subr.mxu0 %v134_v41  ;;  %742 = vmatprep.subr.mxu1 %v136_v42  ;;  %v153_v41 = vld [vmem:[#allocation2 + $0x3e0] sm:$0xff]  ;;  %v155_v42 = vld [vmem:[#allocation2 + $0x3f0] sm:$0xff] }
  0x65   :  { %672 = vmatpush1.msra.mxu0 %v133_v43  ;;  %743 = vmatpush1.msra.mxu1 %v135_v44  ;;  %v138_v43 = vld [vmem:[#allocation2 + $0x368] sm:$0xff]  ;;  %v140_v44 = vld [vmem:[#allocation2 + $0x378] sm:$0xff] }
  0x66   :  { %673 = vmatprep.subr.mxu0 %v118_v45  ;;  %744 = vmatprep.subr.mxu1 %v120_v46  ;;  %v137_v45 = vld [vmem:[#allocation2 + $0x360] sm:$0xff]  ;;  %v139_v46 = vld [vmem:[#allocation2 + $0x370] sm:$0xff] }
  0x67   :  { %674 = vmatpush1.msra.mxu0 %v117_v47  ;;  %745 = vmatpush1.msra.mxu1 %v119_v48  ;;  %v122_v47 = vld [vmem:[#allocation2 + $0x2e8] sm:$0xff]  ;;  %v124_v48 = vld [vmem:[#allocation2 + $0x2f8] sm:$0xff] }
  0x68   :  { %675 = vmatprep.subr.mxu0 %v102_v49  ;;  %746 = vmatprep.subr.mxu1 %v104_v50  ;;  %v121_v49 = vld [vmem:[#allocation2 + $0x2e0] sm:$0xff]  ;;  %v123_v50 = vld [vmem:[#allocation2 + $0x2f0] sm:$0xff] }
  0x69   :  { %676 = vmatpush1.msra.mxu0 %v101_v51  ;;  %747 = vmatpush1.msra.mxu1 %v103_v52  ;;  %v106_v51 = vld [vmem:[#allocation2 + $0x268] sm:$0xff]  ;;  %v108_v52 = vld [vmem:[#allocation2 + $0x278] sm:$0xff] }
  0x6a   :  { %677 = vmatprep.subr.mxu0 %v86_v53  ;;  %748 = vmatprep.subr.mxu1 %v88_v54  ;;  %v105_v53 = vld [vmem:[#allocation2 + $0x260] sm:$0xff]  ;;  %v107_v54 = vld [vmem:[#allocation2 + $0x270] sm:$0xff] }
  0x6b   :  { %678 = vmatpush1.msra.mxu0 %v85_v55  ;;  %749 = vmatpush1.msra.mxu1 %v87_v56  ;;  %v90_v55 = vld [vmem:[#allocation2 + $0x1e8] sm:$0xff]  ;;  %v92_v56 = vld [vmem:[#allocation2 + $0x1f8] sm:$0xff] }
  0x6c   :  { %679 = vmatprep.subr.mxu0 %v70_v57  ;;  %750 = vmatprep.subr.mxu1 %v72_v58  ;;  %v89_v57 = vld [vmem:[#allocation2 + $0x1e0] sm:$0xff]  ;;  %v91_v58 = vld [vmem:[#allocation2 + $0x1f0] sm:$0xff] }
  0x6d   :  { %680 = vmatpush1.msra.mxu0 %v69_v59  ;;  %751 = vmatpush1.msra.mxu1 %v71_v60  ;;  %v74_v59 = vld [vmem:[#allocation2 + $0x168] sm:$0xff]  ;;  %v76_v60 = vld [vmem:[#allocation2 + $0x178] sm:$0xff] }
  0x6e   :  { %681 = vmatprep.subr.mxu0 %v54_v61  ;;  %752 = vmatprep.subr.mxu1 %v56_v62  ;;  %v73_v61 = vld [vmem:[#allocation2 + $0x160] sm:$0xff]  ;;  %v75_v62 = vld [vmem:[#allocation2 + $0x170] sm:$0xff] }
  0x6f   :  { %682 = vmatpush1.msra.mxu0 %v53_v63  ;;  %753 = vmatpush1.msra.mxu1 %v55_v1  ;;  %v58_v63 = vld [vmem:[#allocation2 + $0xe8] sm:$0xff]  ;;  %v60_v1 = vld [vmem:[#allocation2 + $0xf8] sm:$0xff] }
  0x70   :  { %683 = vmatprep.subr.mxu0 %v38_v3  ;;  %754 = vmatprep.subr.mxu1 %v40_v4  ;;  %v57_v3 = vld [vmem:[#allocation2 + $0xe0] sm:$0xff]  ;;  %v59_v4 = vld [vmem:[#allocation2 + $0xf0] sm:$0xff] }
  0x71   :  { %684 = vmatpush1.msra.mxu0 %v37_v5  ;;  %717 = vmatprep.mubr.f32.mxu0 %v3178_v0  ;;  %v42_v5 = vld [vmem:[#allocation2 + $0x68] sm:$0xff] }
  0x72   :  { %755 = vmatpush1.msra.mxu1 %v39_v6  ;;  %788 = vmatprep.mubr.f32.mxu1 %v3178_v0  ;;  %v44_v6 = vld [vmem:[#allocation2 + $0x78] sm:$0xff] }
  0x73   :  { %718 = vmatmul.mubr.f32.vlgmr.msra.gmra.mxu0 %v3214_v2  ;;  %789 = vmatmul.mubr.f32.vlgmr.msra.gmra.mxu1 %v3214_v2 }
  0x74   :  { %795 = vmatprep.subr.mxu0 %v282_v7  ;;  %866 = vmatprep.subr.mxu1 %v284_v8  ;;  %v41_v7 = vld [vmem:[#allocation2 + $0x60] sm:$0xff]  ;;  %v43_v8 = vld [vmem:[#allocation2 + $0x70] sm:$0xff] }
  0x75   :  { %796 = vmatpush1.msra.mxu0 %v281_v9  ;;  %867 = vmatpush1.msra.mxu1 %v283_v10  ;;  %v289_v9 = vlaneseq }
  0x76   :  { %797 = vmatprep.subr.mxu0 %v266_v11  ;;  %868 = vmatprep.subr.mxu1 %v268_v12  ;;  %v3236_v12 = vld [vmem:[%s4971_s2] sm:$0xff] }
  0x77   :  { %798 = vmatpush1.msra.mxu0 %v265_v13  ;;  %869 = vmatpush1.msra.mxu1 %v267_v14  ;;  %v3230_v10 = vshrl.u32 %v289_v9, 7 }
  0x78   :  { %799 = vmatprep.subr.mxu0 %v250_v15  ;;  %870 = vmatprep.subr.mxu1 %v252_v16 }
  0x79   :  { %800 = vmatpush1.msra.mxu0 %v249_v17  ;;  %871 = vmatpush1.msra.mxu1 %v251_v18  ;;  %v4981_v11 = vsub.s32 0, %v3230_v10  ;;  %v4977_v13 = vsub.s32 2, %v3230_v10 }
  0x7a   :  { %801 = vmatprep.subr.mxu0 %v234_v19  ;;  %872 = vmatprep.subr.mxu1 %v236_v20  ;;  %v4976_v19 = vsub.s32 1, %v3230_v10 }
  0x7b   :  { %802 = vmatpush1.msra.mxu0 %v233_v21  ;;  %873 = vmatpush1.msra.mxu1 %v235_v22 }
  0x7c   :  { %803 = vmatprep.subr.mxu0 %v218_v23  ;;  %874 = vmatprep.subr.mxu1 %v220_v24  ;;  %v296_v23 = vrot.slane %v3236_v12, %v4976_v19 }
  0x7d   :  { %804 = vmatpush1.msra.mxu0 %v217_v25  ;;  %875 = vmatpush1.msra.mxu1 %v219_v26 }
  0x7e   :  { %805 = vmatprep.subr.mxu0 %v202_v27  ;;  %876 = vmatprep.subr.mxu1 %v204_v28 }
  0x7f   :  { %806 = vmatpush1.msra.mxu0 %v201_v29  ;;  %877 = vmatpush1.msra.mxu1 %v203_v30 }
  0x80   :  { %807 = vmatprep.subr.mxu0 %v186_v31  ;;  %878 = vmatprep.subr.mxu1 %v188_v32 }
  0x81   :  { %808 = vmatpush1.msra.mxu0 %v185_v33  ;;  %879 = vmatpush1.msra.mxu1 %v187_v34  ;;  %v4983_v34 = vmov 1326507024  }
  0x82   :  { %809 = vmatprep.subr.mxu0 %v170_v35  ;;  %880 = vmatprep.subr.mxu1 %v172_v36 }
  0x83   :  { %810 = vmatpush1.msra.mxu0 %v169_v37  ;;  %881 = vmatpush1.msra.mxu1 %v171_v38  ;;  %v4985_v37 = vmov 920167782  }
  0x84   :  { %811 = vmatprep.subr.mxu0 %v154_v39  ;;  %882 = vmatprep.subr.mxu1 %v156_v40 }
  0x85   :  { %812 = vmatpush1.msra.mxu0 %v153_v41  ;;  %883 = vmatpush1.msra.mxu1 %v155_v42  ;;  %v4993_v42 = vmov 2131351028  }
  0x86   :  { %813 = vmatprep.subr.mxu0 %v138_v43  ;;  %884 = vmatprep.subr.mxu1 %v140_v44  ;;  %v4988_v44 = vmov 2102212464  }
  0x87   :  { %814 = vmatpush1.msra.mxu0 %v137_v45  ;;  %885 = vmatpush1.msra.mxu1 %v139_v46 }
  0x88   :  { %815 = vmatprep.subr.mxu0 %v122_v47  ;;  %886 = vmatprep.subr.mxu1 %v124_v48  ;;  %v4995_v47 = vmov 2475754826  }
  0x89   :  { %816 = vmatpush1.msra.mxu0 %v121_v49  ;;  %887 = vmatpush1.msra.mxu1 %v123_v50 }
  0x8a   :  { %817 = vmatprep.subr.mxu0 %v106_v51  ;;  %888 = vmatprep.subr.mxu1 %v108_v52 }
  0x8b   :  { %818 = vmatpush1.msra.mxu0 %v105_v53  ;;  %889 = vmatpush1.msra.mxu1 %v107_v54 }
  0x8c   :  { %819 = vmatprep.subr.mxu0 %v90_v55  ;;  %890 = vmatprep.subr.mxu1 %v92_v56  ;;  %v4990_v55 = vmov 683565275  }
  0x8d   :  { %820 = vmatpush1.msra.mxu0 %v89_v57  ;;  %891 = vmatpush1.msra.mxu1 %v91_v58  ;;  %v4975_v57 = vsub.s32 3, %v3230_v10 }
  0x8e   :  { %821 = vmatprep.subr.mxu0 %v74_v59  ;;  %892 = vmatprep.subr.mxu1 %v76_v60 }
  0x8f   :  { %822 = vmatpush1.msra.mxu0 %v73_v61  ;;  %893 = vmatpush1.msra.mxu1 %v75_v62 }
  0x90   :  { %823 = vmatprep.subr.mxu0 %v58_v63  ;;  %894 = vmatprep.subr.mxu1 %v60_v1 }
  0x91   :  { %824 = vmatpush1.msra.mxu0 %v57_v3  ;;  %895 = vmatpush1.msra.mxu1 %v59_v4 }
  0x92   :  { %825 = vmatprep.subr.mxu0 %v42_v5  ;;  %896 = vmatprep.subr.mxu1 %v44_v6 }
  0x93   :  { %826 = vmatpush1.msra.mxu0 %v41_v7  ;;  %859 = vmatprep.mubr.f32.mxu0 %v3178_v0 }
  0x94   :  { %897 = vmatpush1.msra.mxu1 %v43_v8  ;;  %930 = vmatprep.mubr.f32.mxu1 %v3178_v0  ;;  %v292_v0 = vrot.slane %v3236_v12, %v4981_v11  ;;  %v304_v8 = vrot.slane %v3236_v12, %v4975_v57 }
  0x95   :  { %860 = vmatmul.mubr.f32.vlgmr.msra.gmra.mxu0 %v3214_v2  ;;  %931 = vmatmul.mubr.f32.vlgmr.msra.gmra.mxu1 %v3214_v2  ;;  %v300_v2 = vrot.slane %v3236_v12, %v4977_v13 }
  0xef   :  { %v435_v14 = vpop.f32.mrf.mxu0  ;;  %v506_v15 = vpop.f32.mrf.mxu1 }
  0xf0   :  { %v3245_v16 = vadd.f32 %v435_v14, %v292_v0  ;;  %v3247_v17 = vadd.f32 %v506_v15, %v300_v2 }
  0xf1   :  { %v437_v25 = vpop.f32.mrf.mxu0  ;;  %v508_v15 = vpop.f32.mrf.mxu1 }
  0xf2   :  { %v940_v18 = vand.u32 2139095040, %v3245_v16  ;;  %v1148_v21 = vand.u32 2139095040, %v3247_v17  ;;  %v3255_v28 = vadd.f32 %v437_v25, %v296_v23  ;;  %v937_v39 = vand.u32 2147483647, %v3245_v16 }
  0xf3   :  { %v1145_v63 = vand.u32 2147483647, %v3247_v17 }
  0xf4   :  { %v941_v20 = vshrl.u32 %v940_v18, 23  ;;  %v1149_v26 = vshrl.u32 %v1148_v21, 23  ;;  %v1044_v32 = vand.u32 2139095040, %v3255_v28  ;;  %v944_v58 = vand.u32 8388607, %v937_v39 }
  0xf5   :  { %v1152_v2 = vand.u32 8388607, %v1145_v63  ;;  %v4987_v25 = vand.u32 2147483647, %v3255_v28 }
  0xf6   :  { %v2949_v22 = vadd.s32 4294967169, %v941_v20  ;;  %v2957_v30 = vadd.s32 4294967169, %v1149_v26  ;;  %v1045_v36 = vshrl.u32 %v1044_v32, 23  ;;  %v945_v5 = vor.u32 8388608, %v944_v58 }
  0xf7   :  { %v1153_v23 = vor.u32 8388608, %v1152_v2  ;;  %v3314_v26 = vadd.f32 %v508_v15, %v304_v8 }
  0xf8   :  { %v947_v24 = vadd.s32 1, %v2949_v22  ;;  %v1155_v33 = vadd.s32 1, %v2957_v30  ;;  %v2953_v50 = vadd.s32 4294967169, %v1045_v36  ;;  %v3309_v21 = vshll.u32 %v945_v5, 8 }
  0xf9   :  { %v3358_v5 = vshll.u32 %v1153_v23, 8 }
  0xfa   :  { %vm948_vm0 = vcmp.gt.s32.totalorder %v947_v24, 0  ;;  %vm1156_vm1 = vcmp.gt.s32.totalorder %v1155_v33, 0  ;;  %v1051_v4 = vadd.s32 1, %v2953_v50 }
  0xfb   :  { %v949_v27 = vsel %vm948_vm0, %v947_v24, 0  ;;  %v1157_v54 = vsel %vm1156_vm1, %v1155_v33, 0 }
  0xfc   :  { %v951_v29 = vand.u32 31, %v949_v27  ;;  %v3266_v41 = vshrl.u32 %v949_v27, 5  ;;  %v1159_v1 = vand.u32 31, %v1157_v54  ;;  %vm1052_vm6 = vcmp.gt.s32.totalorder %v1051_v4, 0 }
  0xfd   :  { %v1053_v22 = vsel %vm1052_vm6, %v1051_v4, 0 }
  0xfe   :  { %v3257_v31 = vsub.s32 32, %v951_v29  ;;  %v966_v40 = vshll.u32 %v4985_v37, %v951_v29  ;;  %v963_v46 = vshll.u32 %v4988_v44, %v951_v29  ;;  %v957_v51 = vshll.u32 %v4995_v47, %v951_v29 }
  0xff   :  { %v960_v52 = vshll.u32 %v4993_v42, %v951_v29  ;;  %v954_v56 = vshll.u32 %v4990_v55, %v951_v29  ;;  %vm972_vm2 = vcmp.lt.s32.totalorder %v3266_v41, 4  ;;  %vm969_vm3 = vcmp.lt.s32.totalorder %v3266_v41, 1 }
 0x100   :  { %v967_v35 = vshrl.u32 %v4983_v34, %v3257_v31  ;;  %v964_v38 = vshrl.u32 %v4985_v37, %v3257_v31  ;;  %v958_v43 = vshrl.u32 %v4993_v42, %v3257_v31  ;;  %v961_v45 = vshrl.u32 %v4988_v44, %v3257_v31 }
 0x101   :  { %v955_v48 = vshrl.u32 %v4995_v47, %v3257_v31  ;;  %vm971_vm4 = vcmp.lt.s32.totalorder %v3266_v41, 3  ;;  %v3302_v14 = vsub.s32 32, %v1159_v1  ;;  %vm970_vm5 = vcmp.lt.s32.totalorder %v3266_v41, 2 }
 0x102   :  { %v968_v49 = vor.u32 %v967_v35, %v966_v40  ;;  %v965_v53 = vor.u32 %v964_v38, %v963_v46  ;;  %v959_v59 = vor.u32 %v958_v43, %v957_v51  ;;  %v962_v60 = vor.u32 %v961_v45, %v960_v52 }
 0x103   :  { %v956_v61 = vor.u32 %v955_v48, %v954_v56  ;;  %v1172_v24 = vshrl.u32 %v4985_v37, %v3302_v14  ;;  %v1163_v30 = vshrl.u32 %v4995_v47, %v3302_v14  ;;  %v1055_v32 = vand.u32 31, %v1053_v22 }
 0x104   :  { %v982_v62 = vsel %vm972_vm2, %v968_v49, 1326507024  ;;  %v978_v3 = vsel %vm972_vm2, %v965_v53, 920167782  ;;  %v981_v6 = vsel %vm969_vm3, %v959_v59, %v962_v60  ;;  %v1166_v36 = vshrl.u32 %v4993_v42, %v3302_v14 }
 0x105   :  { %v983_v7 = vsel %vm971_vm4, %v965_v53, %v982_v62  ;;  %v977_v9 = vsel %vm969_vm3, %v956_v61, %v959_v59  ;;  %v979_v0 = vsel %vm971_vm4, %v962_v60, %v978_v3  ;;  %v1171_v38 = vshll.u32 %v4988_v44, %v1159_v1 }
 0x106   :  { %v984_v18 = vsel %vm970_vm5, %v981_v6, %v983_v7  ;;  %v980_v20 = vsel %vm970_vm5, %v977_v9, %v979_v0  ;;  %v974_v40 = vsel %vm972_vm2, %v962_v60, 2102212464  ;;  %v3332_v43 = vshrl.u32 %v1157_v54, 5 }
 0x107   :  { %v3317_v27 = vmul.u32.u64.low %v3309_v21, %v984_v18  ;;  %v3318_v29 = vmul.u32.u64.high %v3309_v21, %v984_v18, %v3317_v27  ;;  %v3323_v33 = vmul.u32.u64.low %v3309_v21, %v980_v20  ;;  %v3324_v35 = vmul.u32.u64.high %v3309_v21, %v980_v20, %v3323_v33 }
 0x108   :  { %v1169_v45 = vshrl.u32 %v4988_v44, %v3302_v14  ;;  %v1175_v46 = vshrl.u32 %v4983_v34, %v3302_v14  ;;  %v953_v48 = vshrl.u32 %v4990_v55, %v3257_v31  ;;  %v1162_v49 = vshll.u32 %v4990_v55, %v1159_v1 }
 0x109   :  { %v1165_v50 = vshll.u32 %v4995_v47, %v1159_v1  ;;  %v1173_v51 = vor.u32 %v1172_v24, %v1171_v38  ;;  %v1168_v52 = vshll.u32 %v4993_v42, %v1159_v1  ;;  %v1174_v53 = vshll.u32 %v4985_v37, %v1159_v1 }
 0x10a   :  { %v3344_v54 = vsub.s32 32, %v1055_v32  ;;  %v1252_v56 = vand.u32 2139095040, %v3314_v26  ;;  %v973_v58 = vsel %vm969_vm3, %v953_v48, %v956_v61  ;;  %v975_v60 = vsel %vm971_vm4, %v959_v59, %v974_v40 }
 0x10b   :  { %v3351_v31 = vor.u32 %v1163_v30, %v1162_v49  ;;  %v3353_v62 = vor.u32 %v1166_v36, %v1165_v50  ;;  %v1170_v3 = vor.u32 %v1169_v45, %v1168_v52  ;;  %v1176_v4 = vor.u32 %v1175_v46, %v1174_v53 }
 0x10c   :  { %vm1180_vm7 = vcmp.lt.s32.totalorder %v3332_v43, 4  ;;  %v1048_v6 = vand.u32 8388607, %v4987_v25  ;;  %v976_v61 = vsel %vm970_vm5, %v973_v58, %v975_v60  ;;  %vm1177_vm8 = vcmp.lt.s32.totalorder %v3332_v43, 1 }
 0x10d   :  { %v1186_v1 = vsel %vm1180_vm7, %v1173_v51, 920167782  ;;  %v1068_v59 = vshrl.u32 %v4985_v37, %v3344_v54  ;;  %v1253_v7 = vshrl.u32 %v1252_v56, 23  ;;  %vm994_vm9 = vc.u32 %v3318_v29, %v3323_v33 }
 0x10e   :  { %v995_v8 = vadd.s32 1, %v3324_v35  ;;  %vm1179_vm10 = vcmp.lt.s32.totalorder %v3332_v43, 3  ;;  %v1185_v9 = vsel %vm1177_vm8, %v3351_v31, %v3353_v62  ;;  %v1190_v0 = vsel %vm1180_vm7, %v1176_v4, 1326507024 }
 0x10f   :  { %v1187_v41 = vsel %vm1179_vm10, %v1170_v3, %v1186_v1  ;;  %v1067_v2 = vshll.u32 %v4988_v44, %v1055_v32  ;;  %v1071_v15 = vshrl.u32 %v4983_v34, %v3344_v54  ;;  %v3382_v18 = vshrl.u32 %v1053_v22, 5 }
 0x110   :  { %v1059_v20 = vshrl.u32 %v4995_v47, %v3344_v54  ;;  %v1062_v23 = vshrl.u32 %v4993_v42, %v3344_v54  ;;  %v1065_v24 = vshrl.u32 %v4988_v44, %v3344_v54  ;;  %vm1178_vm11 = vcmp.lt.s32.totalorder %v3332_v43, 2 }
 0x111   :  { %v1189_v27 = vsel %vm1177_vm8, %v3353_v62, %v1170_v3  ;;  %v1069_v30 = vor.u32 %v1068_v59, %v1067_v2  ;;  %v1070_v36 = vshll.u32 %v4985_v37, %v1055_v32  ;;  %v1191_v22 = vsel %vm1179_vm10, %v1173_v51, %v1190_v0 }
 0x112   :  { %v1058_v38 = vshll.u32 %v4990_v55, %v1055_v32  ;;  %v1061_v40 = vshll.u32 %v4995_v47, %v1055_v32  ;;  %v1064_v45 = vshll.u32 %v4993_v42, %v1055_v32  ;;  %v992_v46 = vmul.u32 %v3309_v21, %v976_v61 }
 0x113   :  { %v996_v48 = vsel %vm994_vm9, %v995_v8, %v3324_v35  ;;  %v1188_v49 = vsel %vm1178_vm11, %v1185_v9, %v1187_v41  ;;  %v1072_v50 = vor.u32 %v1071_v15, %v1070_v36  ;;  %vm1076_vm12 = vcmp.lt.s32.totalorder %v3382_v18, 4 }
 0x114   :  { %v1060_v52 = vor.u32 %v1059_v20, %v1058_v38  ;;  %v1063_v53 = vor.u32 %v1062_v23, %v1061_v40  ;;  %v1066_v51 = vor.u32 %v1065_v24, %v1064_v45  ;;  %v1192_v56 = vsel %vm1178_vm11, %v1189_v27, %v1191_v22 }
 0x115   :  { %v1082_v21 = vsel %vm1076_vm12, %v1069_v30, 920167782  ;;  %v997_v32 = vadd.s32 %v996_v48, %v992_v46  ;;  %v3413_v58 = vmul.u32.u64.low %v3358_v5, %v1188_v49  ;;  %v3414_v60 = vmul.u32.u64.high %v3358_v5, %v1188_v49, %v3413_v58 }
 0x116   :  { %v1049_v35 = vor.u32 8388608, %v1048_v6  ;;  %vm1073_vm13 = vcmp.lt.s32.totalorder %v3382_v18, 1  ;;  %vm1075_vm14 = vcmp.lt.s32.totalorder %v3382_v18, 3  ;;  %v1086_v4 = vsel %vm1076_vm12, %v1072_v50, 1326507024 }
 0x117   :  { %v2961_v1 = vadd.s32 4294967169, %v1253_v7  ;;  %v3422_v61 = vmul.u32.u64.low %v3358_v5, %v1192_v56  ;;  %v3423_v59 = vmul.u32.u64.high %v3358_v5, %v1192_v56, %v3422_v61  ;;  %v1081_v8 = vsel %vm1073_vm13, %v1060_v52, %v1063_v53 }
 0x118   :  { %v1083_v9 = vsel %vm1075_vm14, %v1066_v51, %v1082_v21  ;;  %v1182_v6 = vsel %vm1180_vm7, %v1170_v3, 2102212464  ;;  %v998_v41 = vadd.s32 536870912, %v997_v32  ;;  %vm1074_vm15 = vcmp.lt.s32.totalorder %v3382_v18, 2 }
 0x119   :  { %v1085_v0 = vsel %vm1073_vm13, %v1063_v53, %v1066_v51  ;;  %v1087_v7 = vsel %vm1075_vm14, %v1069_v30, %v1086_v4  ;;  %v1161_v2 = vshrl.u32 %v4990_v55, %v3302_v14  ;;  %v1084_v15 = vsel %vm1074_vm15, %v1081_v8, %v1083_v9 }
 0x11a   :  { %v1259_v20 = vadd.s32 1, %v2961_v1  ;;  %v1089_v23 = vshll.u32 %v1049_v35, 8  ;;  %v1183_v24 = vsel %vm1179_vm10, %v3353_v62, %v1182_v6  ;;  %v1088_v27 = vsel %vm1074_vm15, %v1085_v0, %v1087_v7  ;;  %v577_v7 = vpop.f32.mrf.mxu0 }
 0x11b   :  { %v1181_v3 = vsel %vm1177_vm8, %v1161_v2, %v3351_v31  ;;  %v3448_v30 = vshrl.u32 %v998_v41, 30  ;;  %v1203_v22 = vadd.s32 1, %v3414_v60  ;;  %v4982_v38 = vand.u32 2147483647, %v3314_v26 }
 0x11c   :  { %v3450_v36 = vmul.u32.u64.low %v1089_v23, %v1084_v15  ;;  %v3451_v14 = vmul.u32.u64.high %v1089_v23, %v1084_v15, %v3450_v36  ;;  %vm1260_vm0 = vcmp.gt.s32.totalorder %v1259_v20, 0  ;;  %v4974_v31 = vsub.s32 4, %v3230_v10 }
 0x11d   :  { %v1261_v40 = vsel %vm1260_vm0, %v1259_v20, 0  ;;  %vm1202_vm1 = vc.u32 %v3423_v59, %v3413_v58  ;;  %v3459_v62 = vmul.u32.u64.low %v1089_v23, %v1088_v27  ;;  %v3460_v45 = vmul.u32.u64.high %v1089_v23, %v1088_v27, %v3459_v62 }
 0x11e   :  { %v1263_v46 = vand.u32 31, %v1261_v40  ;;  %v1184_v48 = vsel %vm1178_vm11, %v1181_v3, %v1183_v24  ;;  %v1000_v49 = vshll.u32 %v3448_v30, 30  ;;  %v1078_v50 = vsel %vm1076_vm12, %v1066_v51, 2102212464 }
 0x11f   :  { %v1204_v21 = vsel %vm1202_vm1, %v1203_v22, %v3414_v60  ;;  %v1057_v35 = vshrl.u32 %v4990_v55, %v3344_v54  ;;  %v1200_v4 = vmul.u32 %v3358_v5, %v1184_v48  ;;  %v1256_v1 = vand.u32 8388607, %v4982_v38 }
 0x120   :  { %v1264_v56 = vsub.s32 32, %v1263_v46  ;;  %v308_v43 = vrot.slane %v3236_v12, %v4974_v31  ;;  %v1079_v51 = vsel %vm1075_vm14, %v1063_v53, %v1078_v50  ;;  %v3482_v54 = vsub.s32 %v997_v32, %v1000_v49 }
 0x121   :  { %v1077_v61 = vsel %vm1073_vm13, %v1057_v35, %v1060_v52  ;;  %v3484_v5 = vadd.s32 %v1204_v21, %v1200_v4  ;;  %v1099_v9 = vadd.s32 1, %v3451_v14  ;;  %v1266_v6 = vshll.u32 %v4990_v55, %v1263_v46 }
 0x122   :  { %v1267_v60 = vshrl.u32 %v4995_v47, %v1264_v56  ;;  %v1270_v8 = vshrl.u32 %v4993_v42, %v1264_v56  ;;  %v1269_v41 = vshll.u32 %v4995_v47, %v1263_v46  ;;  %v1273_v0 = vshrl.u32 %v4988_v44, %v1264_v56 }
 0x123   :  { %v1275_v52 = vshll.u32 %v4988_v44, %v1263_v46  ;;  %v1276_v53 = vshrl.u32 %v4985_v37, %v1264_v56  ;;  %v1080_v2 = vsel %vm1074_vm15, %v1077_v61, %v1079_v51  ;;  %vm1098_vm2 = vc.u32 %v3460_v45, %v3450_v36 }
 0x124   :  { %v1262_v32 = vshrl.u32 %v1261_v40, 5  ;;  %v1272_v15 = vshll.u32 %v4993_v42, %v1263_v46  ;;  %v1268_v20 = vor.u32 %v1267_v60, %v1266_v6  ;;  %v1271_v3 = vor.u32 %v1270_v8, %v1269_v41 }
 0x125   :  { %v1277_v24 = vor.u32 %v1276_v53, %v1275_v52  ;;  %v1279_v27 = vshrl.u32 %v4983_v34, %v1264_v56  ;;  %v1003_v22 = vsub.s32 0, %v3482_v54  ;;  %v1278_v62 = vshll.u32 %v4985_v37, %v1263_v46 }
 0x126   :  { %v3500_v48 = vadd.f32 %v577_v7, %v308_v43  ;;  %v1206_v18 = vadd.s32 536870912, %v3484_v5  ;;  %v1100_v49 = vsel %vm1098_vm2, %v1099_v9, %v3451_v14  ;;  %v1257_v50 = vor.u32 8388608, %v1256_v1 }
 0x127   :  { %v1274_v21 = vor.u32 %v1273_v0, %v1272_v15  ;;  %v1096_v40 = vmul.u32 %v1089_v23, %v1080_v2  ;;  %v1280_v35 = vor.u32 %v1279_v27, %v1278_v62  ;;  %vm1281_vm3 = vcmp.lt.s32.totalorder %v1262_v32, 1 }
 0x128   :  { %vm1284_vm4 = vcmp.lt.s32.totalorder %v1262_v32, 4  ;;  %v1289_v4 = vsel %vm1281_vm3, %v1268_v20, %v1271_v3  ;;  %vm1283_vm5 = vcmp.lt.s32.totalorder %v1262_v32, 3  ;;  %v1356_v60 = vand.u32 2139095040, %v3500_v48 }
 0x129   :  { %v1290_v61 = vsel %vm1284_vm4, %v1277_v24, 920167782  ;;  %v1101_v51 = vadd.s32 %v1100_v49, %v1096_v40  ;;  %vm1282_vm6 = vcmp.lt.s32.totalorder %v1262_v32, 2  ;;  %v1293_v43 = vsel %vm1281_vm3, %v1271_v3, %v1274_v21 }
 0x12a   :  { %v1291_v46 = vsel %vm1283_vm5, %v1274_v21, %v1290_v61  ;;  %v1297_v8 = vshll.u32 %v1257_v50, 8  ;;  %v2950_v14 = vmin.u32 %v1003_v22, %v3482_v54  ;;  %v3509_v1 = vshrl.u32 %v1206_v18, 30 }
 0x12b   :  { %v1292_v23 = vsel %vm1282_vm6, %v1289_v4, %v1291_v46  ;;  %v1294_v9 = vsel %vm1284_vm4, %v1280_v35, 1326507024  ;;  %v1286_v6 = vsel %vm1284_vm4, %v1274_v21, 2102212464  ;;  %v1102_v53 = vadd.s32 536870912, %v1101_v51 }
 0x12c   :  { %v1295_v41 = vsel %vm1283_vm5, %v1277_v24, %v1294_v9  ;;  %v3513_v0 = vmul.u32.u64.low %v1297_v8, %v1292_v23  ;;  %v3514_v52 = vmul.u32.u64.high %v1297_v8, %v1292_v23, %v3513_v0  ;;  %v1265_v7 = vshrl.u32 %v4990_v55, %v1264_v56 }
 0x12d   :  { %v1296_v2 = vsel %vm1282_vm6, %v1293_v43, %v1295_v41  ;;  %v1357_v15 = vshrl.u32 %v1356_v60, 23  ;;  %v1005_v62 = vclz %v2950_v14  ;;  %v1287_v49 = vsel %vm1283_vm5, %v1271_v3, %v1286_v6 }
 0x12e   :  { %v3519_v27 = vmul.u32.u64.low %v1297_v8, %v1296_v2  ;;  %v3520_v22 = vmul.u32.u64.high %v1297_v8, %v1296_v2, %v3519_v27  ;;  %v1285_v18 = vsel %vm1281_vm3, %v1265_v7, %v1268_v20  ;;  %v1307_v24 = vadd.s32 1, %v3514_v52 }
 0x12f   :  { %v2965_v50 = vadd.s32 4294967169, %v1357_v15  ;;  %v1208_v21 = vshll.u32 %v3509_v1, 30  ;;  %v3526_v40 = vshrl.u32 %v1102_v53, 30  ;;  %v1288_v56 = vsel %vm1282_vm6, %v1285_v18, %v1287_v49 }
 0x130   :  { %vm1306_vm7 = vc.u32 %v3520_v22, %v3513_v0  ;;  %v2951_v35 = vadd.s32 4294967294, %v1005_v62  ;;  %v4973_v20 = vsub.s32 6, %v3230_v10  ;;  %v1304_v46 = vmul.u32 %v1297_v8, %v1288_v56 }
 0x131   :  { %v1363_v4 = vadd.s32 1, %v2965_v50  ;;  %v1308_v61 = vsel %vm1306_vm7, %v1307_v24, %v3514_v52  ;;  %v3534_v3 = vsub.s32 %v3484_v5, %v1208_v21  ;;  %v1104_v60 = vshll.u32 %v3526_v40, 30  ;;  %v648_v52 = vpop.f32.mrf.mxu1 }
 0x132   :  { %v4978_v43 = vand.u32 2147483647, %v3500_v48  ;;  %vm2952_vm9 = vcmp.lt.s32.totalorder %v2951_v35, 0  ;;  %v1309_v14 = vadd.s32 %v1308_v61, %v1304_v46  ;;  %v316_v9 = vrot.slane %v3236_v12, %v4973_v20 }
 0x133   :  { %vm1364_vm8 = vcmp.gt.s32.totalorder %v1363_v4, 0  ;;  %v1211_v6 = vsub.s32 0, %v3534_v3  ;;  %v3542_v41 = vsub.s32 %v1101_v51, %v1104_v60  ;;  %v3544_v53 = vsel %vm2952_vm9, 0, %v2951_v35 }
 0x134   :  { %v1365_v32 = vsel %vm1364_vm8, %v1363_v4, 0  ;;  %v1360_v8 = vand.u32 8388607, %v4978_v43  ;;  %v1310_v7 = vadd.s32 536870912, %v1309_v14  ;;  %v3550_v27 = vadd.f32 %v648_v52, %v316_v9 }
 0x135   :  { %v1367_v23 = vand.u32 31, %v1365_v32  ;;  %v1013_v62 = vsub.s32 4294967266, %v3544_v53  ;;  %v2958_v18 = vmin.u32 %v1211_v6, %v3534_v3  ;;  %v1107_v51 = vsub.s32 0, %v3542_v41 }
 0x136   :  { %v1361_v24 = vor.u32 8388608, %v1360_v8  ;;  %v3556_v50 = vshrl.u32 %v1365_v32, 5  ;;  %v3560_v35 = vshrl.u32 %v1310_v7, 30  ;;  %v1564_v6 = vand.u32 2139095040, %v3550_v27 }
 0x137   :  { %v1368_v5 = vsub.s32 32, %v1367_v23  ;;  %v1370_v21 = vshll.u32 %v4990_v55, %v1367_v23  ;;  %v1373_v56 = vshll.u32 %v4995_v47, %v1367_v23  ;;  %v1376_v4 = vshll.u32 %v4993_v42, %v1367_v23 }
 0x138   :  { %v1379_v61 = vshll.u32 %v4988_v44, %v1367_v23  ;;  %v1382_v32 = vshll.u32 %v4985_v37, %v1367_v23  ;;  %v1014_v31 = vadd.s32 127, %v1013_v62  ;;  %v1213_v57 = vclz %v2958_v18 }
 0x139   :  { %v1371_v2 = vshrl.u32 %v4995_v47, %v1368_v5  ;;  %v1374_v15 = vshrl.u32 %v4993_v42, %v1368_v5  ;;  %v1377_v49 = vshrl.u32 %v4988_v44, %v1368_v5  ;;  %v1380_v60 = vshrl.u32 %v4985_v37, %v1368_v5 }
 0x13a   :  { %v1383_v20 = vshrl.u32 %v4983_v34, %v1368_v5  ;;  %v2954_v7 = vmin.u32 %v1107_v51, %v3542_v41  ;;  %v3569_v19 = vshll.u32 %v1361_v24, 8  ;;  %v1312_v13 = vshll.u32 %v3560_v35, 30 }
 0x13b   :  { %v1372_v46 = vor.u32 %v1371_v2, %v1370_v21  ;;  %v1375_v9 = vor.u32 %v1374_v15, %v1373_v56  ;;  %v1378_v52 = vor.u32 %v1377_v49, %v1376_v4  ;;  %v1381_v8 = vor.u32 %v1380_v60, %v1379_v61 }
 0x13c   :  { %v1384_v43 = vor.u32 %v1383_v20, %v1382_v32  ;;  %vm1385_vm10 = vcmp.lt.s32.totalorder %v3556_v50, 1  ;;  %vm1388_vm11 = vcmp.lt.s32.totalorder %v3556_v50, 4  ;;  %vm1387_vm12 = vcmp.lt.s32.totalorder %v3556_v50, 3 }
 0x13d   :  { %v1393_v23 = vsel %vm1385_vm10, %v1372_v46, %v1375_v9  ;;  %v1394_v2 = vsel %vm1388_vm11, %v1381_v8, 920167782  ;;  %v1565_v15 = vshrl.u32 %v1564_v6, 23  ;;  %vm1386_vm13 = vcmp.lt.s32.totalorder %v3556_v50, 2 }
 0x13e   :  { %v1395_v62 = vsel %vm1387_vm12, %v1378_v52, %v1394_v2  ;;  %v1397_v20 = vsel %vm1385_vm10, %v1375_v9, %v1378_v52  ;;  %v1398_v18 = vsel %vm1388_vm11, %v1384_v43, 1326507024  ;;  %v1009_v51 = vsub.s32 32, %v3544_v53 }
 0x13f   :  { %v2959_v49 = vadd.s32 4294967294, %v1213_v57  ;;  %v1396_v24 = vsel %vm1386_vm13, %v1393_v23, %v1395_v62  ;;  %v1399_v21 = vsel %vm1387_vm12, %v1381_v8, %v1398_v18  ;;  %v3591_v56 = vsub.s32 %v1309_v14, %v1312_v13 }
 0x140   :  { %v1400_v4 = vsel %vm1386_vm13, %v1397_v20, %v1399_v21  ;;  %v3596_v61 = vmul.u32.u64.low %v3569_v19, %v1396_v24  ;;  %v3597_v60 = vmul.u32.u64.high %v3569_v19, %v1396_v24, %v3596_v61  ;;  %v993_v43 = vadd.s32 %v3323_v33, %v3318_v29 }
 0x141   :  { %v1015_v57 = vshll.u32 %v1014_v31, 23  ;;  %v3185_v6 = vmov 1966171168   ;;  %v1109_v23 = vclz %v2954_v7  ;;  %v2973_v13 = vadd.s32 4294967169, %v1565_v15 }
 0x142   :  { %v2626_v32 = vunpack.c.l.s4 %v3185_v6  ;;  %v3603_v2 = vmul.u32.u64.low %v3569_v19, %v1400_v4  ;;  %v3604_v8 = vmul.u32.u64.high %v3569_v19, %v1400_v4, %v3603_v2  ;;  %v1011_v14 = vshrl.u32 %v993_v43, %v1009_v51 }
 0x143   :  { %v1390_v62 = vsel %vm1388_vm11, %v1378_v52, 2102212464  ;;  %vm2960_vm14 = vcmp.lt.s32.totalorder %v2959_v49, 0  ;;  %v1315_v20 = vsub.s32 0, %v3591_v56  ;;  %v1369_v18 = vshrl.u32 %v4990_v55, %v1368_v5 }
 0x144   :  { %v1571_v24 = vadd.s32 1, %v2973_v13  ;;  %v1010_v29 = vshll.u32 %v3482_v54, %v3544_v53  ;;  %v1016_v33 = vor.u32 4788187, %v1015_v57  ;;  %v2627_v31 = vunpack.c.0.s8 %v2626_v32 }
 0x145   :  { %v2955_v7 = vadd.s32 4294967294, %v1109_v23  ;;  %v1389_v21 = vsel %vm1385_vm10, %v1369_v18, %v1372_v46  ;;  %v1391_v15 = vsel %vm1387_vm12, %v1375_v9, %v1390_v62  ;;  %v4979_v52 = vsub.s32 5, %v3230_v10 }
 0x146   :  { %vm1572_vm15 = vcmp.gt.s32.totalorder %v1571_v24, 0  ;;  %v1012_v51 = vor.u32 %v1011_v14, %v1010_v29  ;;  %v3617_v4 = vsel %vm2960_vm14, 0, %v2959_v49  ;;  %v1411_v5 = vadd.s32 1, %v3597_v60 }
 0x147   :  { %v2962_v43 = vmin.u32 %v1315_v20, %v3591_v56  ;;  %vm1410_vm0 = vc.u32 %v3604_v8, %v3596_v61  ;;  %v4980_v54 = vand.u32 2147483647, %v3550_v27  ;;  %v1573_v53 = vsel %vm1572_vm15, %v1571_v24, 0 }
 0x148   :  { %v1017_v46 = vand.u32 2147483647, %v1016_v33  ;;  %vm2956_vm1 = vcmp.lt.s32.totalorder %v2955_v7, 0  ;;  %v1392_v9 = vsel %vm1386_vm13, %v1389_v21, %v1391_v15  ;;  %v1575_v57 = vand.u32 31, %v1573_v53 }
 0x149   :  { %v1023_v6 = vsub.s32 4, %v3448_v30  ;;  %v3628_v49 = vsub.s32 %v2627_v31, %v3230_v10  ;;  %v3632_v32 = vadd.s32 %v3413_v58, %v3423_v59  ;;  %v312_v23 = vrot.slane %v3236_v12, %v4979_v52 }
 0x14a   :  { %v1019_v2 = vcvt.s32.f32 %v1012_v51  ;;  %v1221_v13 = vsub.s32 4294967266, %v3617_v4  ;;  %v1412_v50 = vsel %vm1410_vm0, %v1411_v5, %v3597_v60  ;;  %v1576_v14 = vsub.s32 32, %v1575_v57 }
 0x14b   :  { %5012 = vst [vmem:[#allocation6_spill] sm:$0xff] %v3628_v49  ;;  %v3639_v62 = vsel %vm2956_vm1, 0, %v2955_v7  ;;  %v1317_v20 = vclz %v2962_v43  ;;  %v1408_v18 = vmul.u32 %v3569_v19, %v1392_v9  ;;  %v1568_v24 = vand.u32 8388607, %v4980_v54  ;;  %v579_v43 = vpop.f32.mrf.mxu0 }
 0x14c   :  { %v3644_v58 = vmul.f32 %v1019_v2, %v1017_v46  ;;  %v1217_v59 = vsub.s32 32, %v3617_v4  ;;  %v1579_v29 = vshrl.u32 %v4995_v47, %v1576_v14  ;;  %v1582_v33 = vshrl.u32 %v4993_v42, %v1576_v14 }
 0x14d   :  { %v1097_v60 = vadd.s32 %v3450_v36, %v3460_v45  ;;  %v3651_v31 = vadd.s32 %v1412_v50, %v1408_v18  ;;  %v1578_v7 = vshll.u32 %v4990_v55, %v1575_v57  ;;  %v1585_v19 = vshrl.u32 %v4988_v44, %v1576_v14 }
 0x14e   :  { %v1222_v21 = vadd.s32 127, %v1221_v13  ;;  %v1117_v15 = vsub.s32 4294967266, %v3639_v62  ;;  %v1581_v51 = vshll.u32 %v4995_v47, %v1575_v57  ;;  %v1584_v5 = vshll.u32 %v4993_v42, %v1575_v57 }
 0x14f   :  { %v2963_v46 = vadd.s32 4294967294, %v1317_v20  ;;  %v1569_v9 = vor.u32 8388608, %v1568_v24  ;;  %v1574_v2 = vshrl.u32 %v1573_v53, 5  ;;  %v1580_v52 = vor.u32 %v1579_v29, %v1578_v7 }
 0x150   :  { %v1583_v54 = vor.u32 %v1582_v33, %v1581_v51  ;;  %v1586_v36 = vor.u32 %v1585_v19, %v1584_v5  ;;  %v1587_v45 = vshll.u32 %v4988_v44, %v1575_v57  ;;  %v1588_v50 = vshrl.u32 %v4985_v37, %v1576_v14 }
 0x151   :  { %v1414_v18 = vadd.s32 536870912, %v3651_v31  ;;  %v1590_v13 = vshll.u32 %v4985_v37, %v1575_v57  ;;  %v1591_v11 = vshrl.u32 %v4983_v34, %v1576_v14  ;;  %v3663_v38 = vadd.f32 %v579_v43, %v312_v23 }
 0x152   :  { %vm939_vm2 = vcmp.lt.s32.totalorder %v3245_v16, 0  ;;  %v1223_v20 = vshll.u32 %v1222_v21, 23  ;;  %v1113_v53 = vsub.s32 32, %v3639_v62  ;;  %v1118_v24 = vadd.s32 127, %v1117_v15 }
 0x153   :  { %v1589_v29 = vor.u32 %v1588_v50, %v1587_v45  ;;  %vm2964_vm3 = vcmp.lt.s32.totalorder %v2963_v46, 0  ;;  %v1592_v33 = vor.u32 %v1591_v11, %v1590_v13  ;;  %vm1593_vm4 = vcmp.lt.s32.totalorder %v1574_v2, 1 }
 0x154   :  { %vm1596_vm5 = vcmp.lt.s32.totalorder %v1574_v2, 4  ;;  %v1601_v19 = vsel %vm1593_vm4, %v1580_v52, %v1583_v54  ;;  %v1609_v5 = vshll.u32 %v1569_v9, 8  ;;  %v3667_v57 = vshrl.u32 %v1414_v18, 30 }
 0x155   :  { %v1598_v7 = vsel %vm1596_vm5, %v1586_v36, 2102212464  ;;  %v1602_v51 = vsel %vm1596_vm5, %v1589_v29, 920167782  ;;  %v1577_v23 = vshrl.u32 %v4990_v55, %v1576_v14  ;;  %vm1595_vm6 = vcmp.lt.s32.totalorder %v1574_v2, 3 }
 0x156   :  { %v1460_v43 = vand.u32 2139095040, %v3663_v38  ;;  %vm3673_vm7 = vcmp.le.f32.partialorder %v937_v39, 0.7853982  ;;  %vm1594_vm8 = vcmp.lt.s32.totalorder %v1574_v2, 2  ;;  %v1603_v11 = vsel %vm1595_vm6, %v1586_v36, %v1602_v51 }
 0x157   :  { %v1605_v15 = vsel %vm1593_vm4, %v1583_v54, %v1586_v36  ;;  %v1606_v45 = vsel %vm1596_vm5, %v1592_v33, 1326507024  ;;  %v1597_v50 = vsel %vm1593_vm4, %v1577_v23, %v1580_v52  ;;  %v1599_v13 = vsel %vm1595_vm6, %v1583_v54, %v1598_v7 }
 0x158   :  { %v1604_v9 = vsel %vm1594_vm8, %v1601_v19, %v1603_v11  ;;  %v1607_v18 = vsel %vm1595_vm6, %v1589_v29, %v1606_v45  ;;  %v1119_v34 = vshll.u32 %v1118_v24, 23  ;;  %v1416_v39 = vshll.u32 %v3667_v57, 30 }
 0x159   :  { %v1608_v14 = vsel %vm1594_vm8, %v1605_v15, %v1607_v18  ;;  %v3679_v37 = vmul.u32.u64.low %v1609_v5, %v1604_v9  ;;  %v3680_v25 = vmul.u32.u64.high %v1609_v5, %v1604_v9, %v3679_v37  ;;  %v1461_v51 = vshrl.u32 %v1460_v43, 23 }
 0x15a   :  { %v3684_v44 = vmul.u32.u64.low %v1609_v5, %v1608_v14  ;;  %v3685_v55 = vmul.u32.u64.high %v1609_v5, %v1608_v14, %v3684_v44  ;;  %vm1147_vm9 = vcmp.lt.s32.totalorder %v3247_v17, 0  ;;  %v1219_v52 = vshrl.u32 %v3632_v32, %v1217_v59 }
 0x15b   :  { %v1115_v54 = vshrl.u32 %v1097_v60, %v1113_v53  ;;  %v1320_v36 = vsel %vm2964_vm3, 0, %v2963_v46  ;;  %v1600_v24 = vsel %vm1594_vm8, %v1597_v50, %v1599_v13  ;;  %v1021_v29 = vxor.u32 2147483648, %v3644_v58 }
 0x15c   :  { %v1024_v33 = vsel %vm939_vm2, %v1023_v6, %v3448_v30  ;;  %v1218_v44 = vshll.u32 %v3534_v3, %v3617_v4  ;;  %v2969_v7 = vadd.s32 4294967169, %v1461_v51  ;;  %v1224_v19 = vor.u32 4788187, %v1223_v20 }
 0x15d   :  { %v1114_v32 = vshll.u32 %v3542_v41, %v3639_v62  ;;  %v1120_v59 = vor.u32 4788187, %v1119_v34  ;;  %v1619_v60 = vadd.s32 1, %v3680_v25  ;;  %v1325_v46 = vsub.s32 4294967266, %v1320_v36 }
 0x15e   :  { %v3703_v2 = vsub.s32 %v3651_v31, %v1416_v39  ;;  %v1616_v53 = vmul.u32 %v1609_v5, %v1600_v24  ;;  %vm1618_vm10 = vc.u32 %v3685_v55, %v3679_v37  ;;  %vm3709_vm11 = vcmp.le.f32.partialorder %v1145_v63, 0.7853982 }
 0x15f   :  { %v1220_v3 = vor.u32 %v1219_v52, %v1218_v44  ;;  %v1116_v4 = vor.u32 %v1115_v54, %v1114_v32  ;;  %v1620_v34 = vsel %vm1618_vm10, %v1619_v60, %v3680_v25  ;;  %v1467_v41 = vadd.s32 1, %v2969_v7  ;;  %v650_v7 = vpop.f32.mrf.mxu1 }
 0x160   :  { %v1026_v6 = vsel %vm3673_vm7, 0, %v1024_v33  ;;  %v1231_v62 = vsub.s32 4, %v3509_v1  ;;  %v1321_v31 = vsub.s32 32, %v1320_v36  ;;  %v1621_v20 = vadd.s32 %v1620_v34, %v1616_v53 }
 0x161   :  { %v1022_v5 = vsel %vm939_vm2, %v1021_v29, %v3644_v58  ;;  %v1225_v63 = vand.u32 2147483647, %v1224_v19  ;;  %v1121_v23 = vand.u32 2147483647, %v1120_v59  ;;  %vm1468_vm12 = vcmp.gt.s32.totalorder %v1467_v41, 0 }
 0x162   :  { %v1305_v43 = vadd.s32 %v3513_v0, %v3520_v22  ;;  %v1326_v11 = vadd.s32 127, %v1325_v46  ;;  %v1419_v25 = vsub.s32 0, %v3703_v2  ;;  %v4992_v15 = vsub.s32 7, %v3230_v10 }
 0x163   :  { %v1227_v45 = vcvt.s32.f32 %v1220_v3  ;;  %v1123_v50 = vcvt.s32.f32 %v1116_v4  ;;  %v1622_v13 = vadd.s32 536870912, %v1621_v20  ;;  %v1469_v9 = vsel %vm1468_vm12, %v1467_v41, 0 }
 0x164   :  { %v3727_v18 = vsel %vm3673_vm7, %v3245_v16, %v1022_v5  ;;  %v3732_v58 = vsel %vm1147_vm9, %v1231_v62, %v3509_v1  ;;  %v1323_v0 = vshrl.u32 %v1305_v43, %v1321_v31  ;;  %v4998_v22 = vand.u32 2147483647, %v3663_v38 }
 0x165   :  { %v3735_v14 = vmul.f32 %v1227_v45, %v1225_v63  ;;  %v3737_v39 = vmul.f32 %v1123_v50, %v1121_v23  ;;  %v1127_v51 = vsub.s32 4, %v3526_v40  ;;  %v1471_v52 = vand.u32 31, %v1469_v9 }
 0x166   :  { %v1322_v54 = vshll.u32 %v3591_v56, %v1320_v36  ;;  %v1327_v21 = vshll.u32 %v1326_v11, 23  ;;  %v2966_v24 = vmin.u32 %v1419_v25, %v3703_v2  ;;  %v320_v1 = vrot.slane %v3236_v12, %v4992_v15 }
 0x167   :  { %v3745_v29 = vadd.s32 3, %v1026_v6  ;;  %vm1043_vm13 = vcmp.lt.s32.totalorder %v3255_v28, 0  ;;  %v3748_v33 = vshrl.u32 %v1622_v13, 30  ;;  %v1472_v44 = vsub.s32 32, %v1471_v52 }
 0x168   :  { %3088 = vcosq.f32 %v3727_v18  ;;  %v1234_v56 = vsel %vm3709_vm11, 0, %v3732_v58  ;;  %v1324_v36 = vor.u32 %v1323_v0, %v1322_v54  ;;  %v1464_v19 = vand.u32 8388607, %v4998_v22 }
 0x169   :  { %v1229_v12 = vxor.u32 2147483648, %v3735_v14  ;;  %v1125_v32 = vxor.u32 2147483648, %v3737_v39  ;;  %v3761_v59 = vsel %vm1043_vm13, %v1127_v51, %v3526_v40  ;;  %v1475_v60 = vshrl.u32 %v4995_v47, %v1472_v44 }
 0x16a   :  { %v1328_v46 = vor.u32 4788187, %v1327_v21  ;;  %v1421_v53 = vclz %v2966_v24  ;;  %v1478_v3 = vshrl.u32 %v4993_v42, %v1472_v44  ;;  %v3765_v4 = vadd.f32 %v650_v7, %v320_v1 }
 0x16b   :  { %v1624_v34 = vshll.u32 %v3748_v33, 30  ;;  %v5017_v41 = vmov 683565275   ;;  %v1477_v62 = vshll.u32 %v4995_v47, %v1471_v52  ;;  %v5018_v31 = vmov 2102212464  }
 0x16c   :  { %v1474_v6 = vshll.u32 %v5017_v41, %v1471_v52  ;;  %v1481_v5 = vshrl.u32 %v5018_v31, %v1472_v44  ;;  %v1331_v63 = vcvt.s32.f32 %v1324_v36  ;;  %v1465_v23 = vor.u32 8388608, %v1464_v19 }
 0x16d   :  { %v1470_v40 = vshrl.u32 %v1469_v9, 5  ;;  %v1480_v43 = vshll.u32 %v4993_v42, %v1471_v52  ;;  %v5019_v11 = vand.u32 2147483647, %v3255_v28  ;;  %v1479_v50 = vor.u32 %v1478_v3, %v1477_v62 }
 0x16e   :  { %v1476_v45 = vor.u32 %v1475_v60, %v1474_v6  ;;  %v1483_v13 = vshll.u32 %v5018_v31, %v1471_v52  ;;  %v5022_v0 = vmov 920167782   ;;  %v1329_v54 = vand.u32 2147483647, %v1328_v46 }
 0x16f   :  { %vm3774_vm14 = vcmp.le.f32.partialorder %v5019_v11, 0.7853982  ;;  %v1484_v51 = vshrl.u32 %v5022_v0, %v1472_v44  ;;  %v2967_v21 = vadd.s32 4294967294, %v1421_v53  ;;  %v1482_v24 = vor.u32 %v1481_v5, %v1480_v43 }
 0x170   :  { %v1668_v1 = vand.u32 2139095040, %v3765_v4  ;;  %v3781_v9 = vsub.s32 %v1621_v20, %v1624_v34  ;;  %v1486_v36 = vshll.u32 %v5022_v0, %v1471_v52  ;;  %v5023_v19 = vmov 1326507024  }
 0x171   :  { %v1485_v7 = vor.u32 %v1484_v51, %v1483_v13  ;;  %v1487_v11 = vshrl.u32 %v5023_v19, %v1472_v44  ;;  %v1473_v15 = vshrl.u32 %v5017_v41, %v1472_v44  ;;  %vm1489_vm15 = vcmp.lt.s32.totalorder %v1470_v40, 1 }
 0x172   :  { %vm1492_vm0 = vcmp.lt.s32.totalorder %v1470_v40, 4  ;;  %v1505_v60 = vshll.u32 %v1465_v23, 8  ;;  %vm1491_vm1 = vcmp.lt.s32.totalorder %v1470_v40, 3  ;;  %v1497_v46 = vsel %vm1489_vm15, %v1476_v45, %v1479_v50 }
 0x173   :  { %v1488_v3 = vor.u32 %v1487_v11, %v1486_v36  ;;  %v1498_v53 = vsel %vm1492_vm0, %v1485_v7, 920167782  ;;  %vm1490_vm2 = vcmp.lt.s32.totalorder %v1470_v40, 2  ;;  %v1494_v6 = vsel %vm1492_vm0, %v1482_v24, 2102212464 }
 0x174   :  { %v1499_v20 = vsel %vm1491_vm1, %v1482_v24, %v1498_v53  ;;  %v1501_v34 = vsel %vm1489_vm15, %v1479_v50, %v1482_v24  ;;  %v1627_v52 = vsub.s32 0, %v3781_v9  ;;  %v1669_v44 = vshrl.u32 %v1668_v1, 23 }
 0x175   :  { %v1500_v62 = vsel %vm1490_vm2, %v1497_v46, %v1499_v20  ;;  %v1502_v5 = vsel %vm1492_vm0, %v1488_v3, 1326507024  ;;  %v1230_v23 = vsel %vm1147_vm9, %v1229_v12, %v3735_v14  ;;  %vm1251_vm3 = vcmp.lt.s32.totalorder %v3314_v26, 0  ;;  %v3797_v36 = vpop.eup %3088 }
 0x176   :  { %v1332_v43 = vmul.f32 %v1331_v63, %v1329_v54  ;;  %v1493_v13 = vsel %vm1489_vm15, %v1473_v15, %v1476_v45  ;;  %v1503_v51 = vsel %vm1491_vm1, %v1485_v7, %v1502_v5  ;;  %v1495_v24 = vsel %vm1491_vm1, %v1479_v50, %v1494_v6 }
 0x177   :  { %v1504_v11 = vsel %vm1490_vm2, %v1501_v34, %v1503_v51  ;;  %v3801_v46 = vmul.u32.u64.low %v1505_v60, %v1500_v62  ;;  %v3802_v3 = vmul.u32.u64.high %v1505_v60, %v1500_v62, %v3801_v46  ;;  %v1130_v14 = vsel %vm3774_vm14, 0, %v3761_v59 }
 0x178   :  { %vm2968_vm4 = vcmp.lt.s32.totalorder %v2967_v21, 0  ;;  %v3808_v12 = vmul.u32.u64.low %v1505_v60, %v1504_v11  ;;  %v3809_v63 = vmul.u32.u64.high %v1505_v60, %v1504_v11, %v3808_v12  ;;  %v1233_v15 = vsel %vm3709_vm11, %v3247_v17, %v1230_v23 }
 0x179   :  { %v1126_v45 = vsel %vm1043_vm13, %v1125_v32, %v3737_v39  ;;  %v2974_v50 = vmin.u32 %v1627_v52, %v3781_v9  ;;  %v2977_v54 = vadd.s32 4294967169, %v1669_v44  ;;  %3090 = vsinq.f32 %v3727_v18 }
 0x17a   :  { %v3820_v1 = vand.u32 3, %v3745_v29  ;;  %v5024_v59 = vand.u32 2147483647, %v3314_v26  ;;  %v1496_v53 = vsel %vm1490_vm2, %v1493_v13, %v1495_v24  ;;  %v1333_v6 = vxor.u32 2147483648, %v1332_v43 }
 0x17b   :  { %v3829_v20 = vsel %vm2968_vm4, 0, %v2967_v21  ;;  %v1515_v39 = vadd.s32 1, %v3802_v3  ;;  %v1675_v32 = vadd.s32 1, %v2977_v54  ;;  %3092 = vcosq.f32 %v1233_v15 }
 0x17c   :  { %vm3824_vm5 = vcmp.le.f32.partialorder %v5024_v59, 0.7853982  ;;  %v1238_v18 = vadd.s32 3, %v1234_v56  ;;  %v1129_v29 = vsel %vm3774_vm14, %v3255_v28, %v1126_v45  ;;  %v1134_v34 = vadd.s32 3, %v1130_v14 }
 0x17d   :  { %v1629_v52 = vclz %v2974_v50  ;;  %v1512_v40 = vmul.u32 %v1505_v60, %v1496_v53  ;;  %vm1514_vm6 = vc.u32 %v3809_v63, %v3801_v46  ;;  %vm1676_vm7 = vcmp.gt.s32.totalorder %v1675_v32, 0 }
 0x17e   :  { %v1429_v21 = vsub.s32 4294967266, %v3829_v20  ;;  %v1516_v62 = vsel %vm1514_vm6, %v1515_v39, %v3802_v3  ;;  %v4997_v30 = vand.u32 2147483647, %v3765_v4  ;;  %v1677_v5 = vsel %vm1676_vm7, %v1675_v32, 0  ;;  %v3876_v32 = vld [vmem:[%s4971_s2 + $0x8] sm:$0xff] }
 0x17f   :  { %3094 = vsinq.f32 %v1233_v15  ;;  %v1334_v58 = vsel %vm1251_vm3, %v1333_v6, %v1332_v43  ;;  %v1517_v56 = vadd.s32 %v1516_v62, %v1512_v40  ;;  %v1679_v25 = vand.u32 31, %v1677_v5 }
 0x180   :  { %v3846_v44 = vand.u32 3, %v1238_v18  ;;  %3096 = vcosq.f32 %v1129_v29  ;;  %v3848_v60 = vand.u32 3, %v1134_v34  ;;  %v2975_v13 = vadd.s32 4294967294, %v1629_v52 }
 0x181   :  { %3098 = vsinq.f32 %v1129_v29  ;;  %v1518_v51 = vadd.s32 536870912, %v1517_v56  ;;  %v1680_v24 = vsub.s32 32, %v1679_v25  ;;  %v3854_v11 = vsel %vm3824_vm5, %v3314_v26, %v1334_v58 }
 0x182   :  { %v1409_v43 = vadd.s32 %v3596_v61, %v3604_v8  ;;  %v3858_v3 = vadd.s32 127, %v1429_v21  ;;  %v1672_v14 = vand.u32 8388607, %v4997_v30  ;;  %v1682_v15 = vshll.u32 %v5017_v41, %v1679_v25 }
 0x183   :  { %v3862_v12 = vshrl.u32 %v1518_v51, 30  ;;  %v1683_v45 = vshrl.u32 %v4995_v47, %v1680_v24  ;;  %v1686_v50 = vshrl.u32 %v4993_v42, %v1680_v24  ;;  %v1685_v54 = vshll.u32 %v4995_v47, %v1679_v25 }
 0x184   :  { %v1689_v59 = vshrl.u32 %v5018_v31, %v1680_v24  ;;  %v1691_v53 = vshll.u32 %v5018_v31, %v1679_v25  ;;  %v1692_v61 = vshrl.u32 %v5022_v0, %v1680_v24  ;;  %vm2976_vm8 = vcmp.lt.s32.totalorder %v2975_v13, 0 }
 0x185   :  { %v1520_v8 = vshll.u32 %v3862_v12, 30  ;;  %v1678_v6 = vshrl.u32 %v1677_v5, 5  ;;  %v1688_v39 = vshll.u32 %v4993_v42, %v1679_v25  ;;  %v1425_v18 = vsub.s32 32, %v3829_v20 }
 0x186   :  { %v1684_v29 = vor.u32 %v1683_v45, %v1682_v15  ;;  %v1687_v34 = vor.u32 %v1686_v50, %v1685_v54  ;;  %v1693_v52 = vor.u32 %v1692_v61, %v1691_v53  ;;  %v3879_v40 = vpop.eup %3090  ;;  %v1694_v58 = vshll.u32 %v5022_v0, %v1679_v25 }
 0x187   :  { %v3881_v21 = vsub.s32 %v1517_v56, %v1520_v8  ;;  %v1690_v62 = vor.u32 %v1689_v59, %v1688_v39  ;;  %v1695_v5 = vshrl.u32 %v5023_v19, %v1680_v24  ;;  %v1431_v51 = vshll.u32 %v3858_v3, 23 }
 0x188   :  { %v3886_v42 = vsel %vm2976_vm8, 0, %v2975_v13  ;;  %v1673_v47 = vor.u32 8388608, %v1672_v14  ;;  %v5027_v30 = vsub.s32 0, %v3230_v10  ;;  %v3891_v45 = vpop.eup %3092  ;;  %vm1697_vm9 = vcmp.lt.s32.totalorder %v1678_v6, 1  ;;  %v719_v13 = vpop.f32.mrf.mxu0 }
 0x189   :  { %v1523_v50 = vsub.s32 0, %v3881_v21  ;;  %v1696_v56 = vor.u32 %v1695_v5, %v1694_v58  ;;  %vm1700_vm10 = vcmp.lt.s32.totalorder %v1678_v6, 4  ;;  %v1681_v25 = vshrl.u32 %v5017_v41, %v1680_v24 }
 0x18a   :  { %v324_v15 = vrot.slane %v3876_v32, %v5027_v30  ;;  %vm1699_vm11 = vcmp.lt.s32.totalorder %v1678_v6, 3  ;;  %v1705_v54 = vsel %vm1697_vm9, %v1684_v29, %v1687_v34  ;;  %v1706_v3 = vsel %vm1700_vm10, %v1693_v52, 920167782 }
 0x18b   :  { %v2970_v14 = vmin.u32 %v1523_v50, %v3881_v21  ;;  %vm1698_vm12 = vcmp.lt.s32.totalorder %v1678_v6, 2  ;;  %v1702_v59 = vsel %vm1700_vm10, %v1690_v62, 2102212464  ;;  %v1707_v30 = vsel %vm1699_vm11, %v1690_v62, %v1706_v3 }
 0x18c   :  { %v3898_v53 = vpop.eup %3094  ;;  %v1708_v61 = vsel %vm1698_vm12, %v1705_v54, %v1707_v30  ;;  %v1709_v8 = vsel %vm1697_vm9, %v1687_v34, %v1690_v62  ;;  %v1710_v39 = vsel %vm1700_vm10, %v1696_v56, 1326507024  ;;  %v1713_v58 = vshll.u32 %v1673_v47, 8 }
 0x18d   :  { %v3902_v24 = vpop.eup %3096  ;;  %v1637_v5 = vsub.s32 4294967266, %v3886_v42  ;;  %v1525_v22 = vclz %v2970_v14  ;;  %v1701_v23 = vsel %vm1697_vm9, %v1681_v25, %v1684_v29  ;;  %v3906_v50 = vadd.f32 %v719_v13, %v324_v15 }
 0x18e   :  { %v3908_v49 = vpop.eup %3098  ;;  %v1703_v3 = vsel %vm1699_vm11, %v1687_v34, %v1702_v59  ;;  %v1711_v41 = vsel %vm1699_vm11, %v1693_v52, %v1710_v39  ;;  %v3912_v54 = vmul.u32.u64.low %v1713_v58, %v1708_v61  ;;  %v3913_v30 = vmul.u32.u64.high %v1713_v58, %v1708_v61, %v3912_v54 }
 0x18f   :  { %5028 = vst [vmem:[#allocation7_spill] sm:$0xff] %v3906_v50  ;;  %v5029_v47 = vsub.s32 4, %v3560_v35  ;;  %3100 = vcosq.f32 %v3854_v11  ;;  %v2971_v29 = vadd.s32 4294967294, %v1525_v22  ;;  %v1712_v15 = vsel %vm1698_vm12, %v1709_v8, %v1711_v41 }
 0x190   :  { %3102 = vsinq.f32 %v3854_v11  ;;  %v1427_v34 = vshrl.u32 %v1409_v43, %v1425_v18  ;;  %v3924_v56 = vmul.u32.u64.low %v1713_v58, %v1712_v15  ;;  %v3925_v52 = vmul.u32.u64.high %v1713_v58, %v1712_v15, %v3924_v56 }
 0x191   :  { %v1336_v62 = vsel %vm1251_vm3, %v5029_v47, %v3560_v35  ;;  %v1426_v25 = vshll.u32 %v3703_v2, %v3829_v20  ;;  %vm2972_vm13 = vcmp.lt.s32.totalorder %v2971_v29, 0  ;;  %v1704_v13 = vsel %vm1698_vm12, %v1701_v23, %v1703_v3 }
 0x192   :  { %v1772_v14 = vand.u32 2139095040, %v3906_v50  ;;  %v1432_v35 = vor.u32 4788187, %v1431_v51  ;;  %v1638_v59 = vadd.s32 127, %v1637_v5  ;;  %v1528_v61 = vsel %vm2972_vm13, 0, %v2971_v29 }
 0x193   :  { %v1723_v22 = vadd.s32 1, %v3913_v30  ;;  %vm1036_vm14 = vcmp.eq.s32.totalorder %v3820_v1, 2  ;;  %v1617_v41 = vadd.s32 %v3679_v37, %v3685_v55  ;;  %v1513_v11 = vadd.s32 %v3801_v46, %v3809_v63 }
 0x194   :  { %v1529_v43 = vsub.s32 32, %v1528_v61  ;;  %v1533_v2 = vsub.s32 4294967266, %v1528_v61  ;;  %vm1033_vm15 = vcmp.eq.s32.totalorder %v3820_v1, 0  ;;  %vm1241_vm0 = vcmp.eq.s32.totalorder %v3846_v44, 0 }
 0x195   :  { %v1428_v20 = vor.u32 %v1427_v34, %v1426_v25  ;;  %v1633_v23 = vsub.s32 32, %v3886_v42  ;;  %v1720_v6 = vmul.u32 %v1713_v58, %v1704_v13  ;;  %vm1722_vm1 = vc.u32 %v3925_v52, %v3912_v54 }
 0x196   :  { %v1531_v18 = vshrl.u32 %v1513_v11, %v1529_v43  ;;  %v1534_v51 = vadd.s32 127, %v1533_v2  ;;  %v1724_v37 = vsel %vm1722_vm1, %v1723_v22, %v3913_v30  ;;  %v1773_v55 = vshrl.u32 %v1772_v14, 23 }
 0x197   :  { %v1433_v8 = vand.u32 2147483647, %v1432_v35  ;;  %v1639_v46 = vshll.u32 %v1638_v59, 23  ;;  %v1530_v63 = vshll.u32 %v3881_v21, %v1528_v61  ;;  %v1725_v39 = vadd.s32 %v1724_v37, %v1720_v6 }
 0x198   :  { %v1034_v5 = vxor.u32 2147483648, %v3879_v40  ;;  %v1037_v3 = vxor.u32 2147483648, %v3797_v36  ;;  %v1338_v58 = vsel %vm3824_vm5, 0, %v1336_v62  ;;  %v1535_v47 = vshll.u32 %v1534_v51, 23 }
 0x199   :  { %vm1032_vm2 = vcmp.lt.s32.totalorder %v3820_v1, 2  ;;  %vm1240_vm3 = vcmp.lt.s32.totalorder %v3846_v44, 2  ;;  %v1435_v29 = vcvt.s32.f32 %v1428_v20  ;;  %v1635_v30 = vshrl.u32 %v1617_v41, %v1633_v23 }
 0x19a   :  { %v1532_v15 = vor.u32 %v1531_v18, %v1530_v63  ;;  %v1726_v34 = vadd.s32 536870912, %v1725_v39  ;;  %v1242_v56 = vxor.u32 2147483648, %v3898_v53  ;;  %v1245_v21 = vxor.u32 2147483648, %v3891_v45 }
 0x19b   :  { %v1536_v25 = vor.u32 4788187, %v1535_v47  ;;  %v2981_v13 = vadd.s32 4294967169, %v1773_v55  ;;  %v1436_v14 = vmul.f32 %v1435_v29, %v1433_v8  ;;  %v1634_v7 = vshll.u32 %v3781_v9, %v3886_v42 }
 0x19c   :  { %v1640_v62 = vor.u32 4788187, %v1639_v46  ;;  %v3954_v35 = vshrl.u32 %v1726_v34, 30  ;;  %vm1244_vm4 = vcmp.eq.s32.totalorder %v3846_v44, 2  ;;  %v1342_v59 = vadd.s32 3, %v1338_v58  ;;  %v3101_v22 = vpop.eup %3100 }
 0x19d   :  { %vm1355_vm5 = vcmp.lt.s32.totalorder %v3500_v48, 0  ;;  %v1537_v61 = vand.u32 2147483647, %v1536_v25  ;;  %v1038_v41 = vsel %vm1036_vm14, %v1037_v3, %v3879_v40  ;;  %v5030_v11 = vand.u32 2147483647, %v3500_v48  ;;  %v3103_v20 = vpop.eup %3102 }
 0x19e   :  { %v1636_v42 = vor.u32 %v1635_v30, %v1634_v7  ;;  %v1539_v9 = vcvt.s32.f32 %v1532_v15  ;;  %v1728_v2 = vshll.u32 %v3954_v35, 30  ;;  %v1035_v23 = vsel %vm1033_vm15, %v3797_v36, %v1034_v5 }
 0x19f   :  { %vm3963_vm6 = vcmp.le.f32.partialorder %v5030_v11, 0.7853982  ;;  %v1243_v6 = vsel %vm1241_vm0, %v3891_v45, %v1242_v56  ;;  %v1246_v40 = vsel %vm1244_vm4, %v1245_v21, %v3898_v53  ;;  %vm1136_vm7 = vcmp.lt.s32.totalorder %v3848_v60, 2 }
 0x1a0   :  { %v1779_v18 = vadd.s32 1, %v2981_v13  ;;  %v1437_v51 = vxor.u32 2147483648, %v1436_v14  ;;  %v1641_v37 = vand.u32 2147483647, %v1640_v62  ;;  %v1540_v55 = vmul.f32 %v1539_v9, %v1537_v61 }
 0x1a1   :  { %v3976_v8 = vsub.s32 %v1725_v39, %v1728_v2  ;;  %v1138_v46 = vxor.u32 2147483648, %v3908_v49  ;;  %v1141_v63 = vxor.u32 2147483648, %v3902_v24  ;;  %v1343_v3 = vand.u32 3, %v1342_v59 }
 0x1a2   :  { %v1439_v36 = vsub.s32 4, %v3667_v57  ;;  %vm1133_vm8 = vweird.f32 %v3255_v28  ;;  %vm1137_vm9 = vcmp.eq.s32.totalorder %v3848_v60, 0  ;;  %vm1140_vm10 = vcmp.eq.s32.totalorder %v3848_v60, 2 }
 0x1a3   :  { %v1643_v45 = vcvt.s32.f32 %v1636_v42  ;;  %v1731_v53 = vsub.s32 0, %v3976_v8  ;;  %v1039_v39 = vsel %vm1032_vm2, %v1035_v23, %v1038_v41  ;;  %v1247_v5 = vsel %vm1240_vm3, %v1243_v6, %v1246_v40 }
 0x1a4   :  { %vm1563_vm11 = vcmp.lt.s32.totalorder %v3550_v27, 0  ;;  %vm1780_vm12 = vcmp.gt.s32.totalorder %v1779_v18, 0  ;;  %v1438_v58 = vsel %vm1355_vm5, %v1437_v51, %v1436_v14  ;;  %v1541_v29 = vxor.u32 2147483648, %v1540_v55 }
 0x1a5   :  { %v1644_v47 = vmul.f32 %v1643_v45, %v1641_v37  ;;  %v2978_v30 = vmin.u32 %v1731_v53, %v3976_v8  ;;  %v1139_v15 = vsel %vm1137_vm9, %v3902_v24, %v1138_v46  ;;  %v1142_v34 = vsel %vm1140_vm10, %v1141_v63, %v3908_v49 }
 0x1a6   :  { %vm1344_vm13 = vcmp.lt.s32.totalorder %v1343_v3, 2  ;;  %v1440_v1 = vsel %vm1355_vm5, %v1439_v36, %v3667_v57  ;;  %vm1029_vm14 = vweird.f32 %v3245_v16  ;;  %v1346_v44 = vxor.u32 2147483648, %v3103_v20 }
 0x1a7   :  { %v1349_v56 = vxor.u32 2147483648, %v3101_v22  ;;  %v5033_v21 = vand.u32 2147483647, %v3550_v27  ;;  %v1733_v13 = vclz %v2978_v30  ;;  %v1781_v14 = vsel %vm1780_vm12, %v1779_v18, 0 }
 0x1a8   :  { %vm1237_vm0 = vweird.f32 %v3247_v17  ;;  %vm1345_vm1 = vcmp.eq.s32.totalorder %v1343_v3, 0  ;;  %vm1348_vm2 = vcmp.eq.s32.totalorder %v1343_v3, 2  ;;  %v1441_v49 = vsel %vm3963_vm6, %v3500_v48, %v1438_v58 }
 0x1a9   :  { %vm4001_vm15 = vcmp.le.f32.partialorder %v5033_v21, 0.7853982  ;;  %vm1459_vm3 = vcmp.lt.s32.totalorder %v3663_v38, 0  ;;  %v1143_v57 = vsel %vm1136_vm7, %v1139_v15, %v1142_v34  ;;  %vm1341_vm4 = vweird.f32 %v3314_v26 }
 0x1aa   :  { %v1645_v24 = vxor.u32 2147483648, %v1644_v47  ;;  %v1542_v7 = vsel %vm1459_vm3, %v1541_v29, %v1540_v55  ;;  %v2979_v62 = vadd.s32 4294967294, %v1733_v13  ;;  %v1442_v59 = vsel %vm3963_vm6, 0, %v1440_v1  ;;  %v790_v1 = vpop.f32.mrf.mxu1 }
 0x1ab   :  { %v1647_v61 = vsub.s32 4, %v3748_v33  ;;  %v5036_v41 = vand.u32 2147483647, %v3663_v38  ;;  %v1783_v60 = vand.u32 31, %v1781_v14  ;;  %v1347_v42 = vsel %vm1345_vm1, %v3101_v22, %v1346_v44 }
 0x1ac   :  { %v1350_v9 = vsel %vm1348_vm2, %v1349_v56, %v3103_v20  ;;  %3104 = vcosq.f32 %v1441_v49  ;;  %vm2980_vm7 = vcmp.lt.s32.totalorder %v2979_v62, 0  ;;  %v4026_v2 = vsel %vm1133_vm8, nan, %v1143_v57 }
 0x1ad   :  { %vm4020_vm5 = vcmp.le.f32.partialorder %v5036_v41, 0.7853982  ;;  %3106 = vsinq.f32 %v1441_v49  ;;  %v1736_v23 = vsel %vm2980_vm7, 0, %v2979_v62  ;;  %v1646_v6 = vsel %vm1563_vm11, %v1645_v24, %v1644_v47 }
 0x1ae   :  { %v1545_v43 = vsel %vm4020_vm5, %v3663_v38, %v1542_v7  ;;  %v1721_v40 = vadd.s32 %v3912_v54, %v3925_v52  ;;  %v1737_v22 = vsub.s32 32, %v1736_v23  ;;  %v1741_v20 = vsub.s32 4294967266, %v1736_v23 }
 0x1af   :  { %v1351_v18 = vsel %vm1344_vm13, %v1347_v42, %v1350_v9  ;;  %v1446_v51 = vadd.s32 3, %v1442_v59  ;;  %v1648_v28 = vsel %vm1563_vm11, %v1647_v61, %v3748_v33  ;;  %v4039_v37 = vsub.s32 32, %v1783_v60 }
 0x1b0   :  { %3108 = vcosq.f32 %v1545_v43  ;;  %v1738_v55 = vshll.u32 %v3976_v8, %v1736_v23  ;;  %v1739_v46 = vshrl.u32 %v1721_v40, %v1737_v22  ;;  %v1742_v63 = vadd.s32 127, %v1741_v20 }
 0x1b1   :  { %v4044_v36 = vsel %vm1029_vm14, nan, %v1039_v39  ;;  %v1649_v54 = vsel %vm4001_vm15, %v3550_v27, %v1646_v6  ;;  %v1543_v52 = vsub.s32 4, %v3862_v12  ;;  %3110 = vsinq.f32 %v1545_v43 }
 0x1b2   :  { %v4052_v33 = vsel %vm1237_vm0, nan, %v1247_v5  ;;  %v2617_v8 = vcombine.low %v4044_v36, %v4026_v2  ;;  %v1740_v3 = vor.u32 %v1739_v46, %v1738_v55  ;;  %v1743_v45 = vshll.u32 %v1742_v63, 23 }
 0x1b3   :  { %v4058_v16 = vsel %vm1341_vm4, nan, %v1351_v18  ;;  %v4060_v53 = vand.u32 3, %v1446_v51  ;;  %v1650_v39 = vsel %vm4001_vm15, 0, %v1648_v28  ;;  %vm1667_vm6 = vcmp.lt.s32.totalorder %v3765_v4, 0 }
 0x1b4   :  { %3112 = vcosq.f32 %v1649_v54  ;;  %v5039_v17 = vand.u32 2147483647, %v3765_v4  ;;  %v1744_v58 = vor.u32 4788187, %v1743_v45  ;;  %v1796_v26 = vshrl.u32 %v5022_v0, %v4039_v37 }
 0x1b5   :  { %v5042_v47 = vsub.s32 2, %v3230_v10  ;;  %3114 = vsinq.f32 %v1649_v54  ;;  %v1544_v30 = vsel %vm1459_vm3, %v1543_v52, %v3862_v12  ;;  %v5006_v15 = vand.u32 2147483647, %v3906_v50 }
 0x1b6   :  { %vm4067_vm8 = vcmp.le.f32.partialorder %v5039_v17, 0.7853982  ;;  %v1799_v34 = vshrl.u32 %v5023_v19, %v4039_v37  ;;  %v1745_v44 = vand.u32 2147483647, %v1744_v58  ;;  %v1747_v56 = vcvt.s32.f32 %v1740_v3 }
 0x1b7   :  { %v332_v29 = vrot.slane %v3876_v32, %v5042_v47  ;;  %v4082_v21 = vshrl.u32 %v1781_v14, 5  ;;  %v1795_v25 = vshll.u32 %v5018_v31, %v1783_v60  ;;  %v5043_v13 = vmov 2475754826  }
 0x1b8   :  { %v1787_v49 = vshrl.u32 %v5043_v13, %v4039_v37  ;;  %v5044_v57 = vmov 2131351028   ;;  %v1793_v12 = vshrl.u32 %v5018_v31, %v4039_v37  ;;  %v1798_v7 = vshll.u32 %v5022_v0, %v1783_v60 }
 0x1b9   :  { %v1790_v24 = vshrl.u32 %v5044_v57, %v4039_v37  ;;  %v1546_v62 = vsel %vm4020_vm5, 0, %v1544_v30  ;;  %v1748_v59 = vmul.f32 %v1747_v56, %v1745_v44  ;;  %v1797_v61 = vor.u32 %v1796_v26, %v1795_v25  ;;  %v3105_v41 = vpop.eup %3104 }
 0x1ba   :  { %v4094_v14 = vadd.f32 %v790_v1, %v332_v29  ;;  %v5045_v42 = vmov 683565275   ;;  %v1789_v43 = vshll.u32 %v5043_v13, %v1783_v60  ;;  %v1792_v23 = vshll.u32 %v5044_v57, %v1783_v60  ;;  %v3107_v40 = vpop.eup %3106 }
 0x1bb   :  { %v1786_v9 = vshll.u32 %v5045_v42, %v1783_v60  ;;  %v1800_v6 = vor.u32 %v1799_v34, %v1798_v7  ;;  %vm1449_vm9 = vcmp.eq.s32.totalorder %v4060_v53, 0  ;;  %vm1452_vm10 = vcmp.eq.s32.totalorder %v4060_v53, 2 }
 0x1bc   :  { %v1654_v22 = vadd.s32 3, %v1650_v39  ;;  %v1749_v11 = vxor.u32 2147483648, %v1748_v59  ;;  %v1751_v20 = vsub.s32 4, %v3954_v35  ;;  %v1776_v18 = vand.u32 8388607, %v5006_v15 }
 0x1bd   :  { %v4104_v51 = vor.u32 %v1787_v49, %v1786_v9  ;;  %v4106_v28 = vor.u32 %v1790_v24, %v1789_v43  ;;  %v1794_v55 = vor.u32 %v1793_v12, %v1792_v23  ;;  %vm1804_vm11 = vcmp.lt.s32.totalorder %v4082_v21, 4  ;;  %v3109_v52 = vpop.eup %3108 }
 0x1be   :  { %v1550_v60 = vadd.s32 3, %v1546_v62  ;;  %v1750_v46 = vsel %vm1667_vm6, %v1749_v11, %v1748_v59  ;;  %v1810_v63 = vsel %vm1804_vm11, %v1797_v61, 920167782  ;;  %v1980_v54 = vand.u32 2139095040, %v4094_v14  ;;  %v3111_v58 = vpop.eup %3110 }
 0x1bf   :  { %v1450_v3 = vxor.u32 2147483648, %v3107_v40  ;;  %v1453_v45 = vxor.u32 2147483648, %v3105_v41  ;;  %v1753_v39 = vsel %vm4067_vm8, %v3765_v4, %v1750_v46  ;;  %v1814_v17 = vsel %vm1804_vm11, %v1800_v6, 1326507024 }
 0x1c0   :  { %v1752_v26 = vsel %vm1667_vm6, %v1751_v20, %v3954_v35  ;;  %3116 = vcosq.f32 %v1753_v39  ;;  %vm1801_vm12 = vcmp.lt.s32.totalorder %v4082_v21, 1  ;;  %vm1803_vm13 = vcmp.lt.s32.totalorder %v4082_v21, 3 }
 0x1c1   :  { %3118 = vsinq.f32 %v1753_v39  ;;  %v1777_v47 = vor.u32 8388608, %v1776_v18  ;;  %v1809_v29 = vsel %vm1801_vm12, %v4104_v51, %v4106_v28  ;;  %v1811_v30 = vsel %vm1803_vm13, %v1794_v55, %v1810_v63  ;;  %v3113_v56 = vpop.eup %3112 }
 0x1c2   :  { %v1551_v34 = vand.u32 3, %v1550_v60  ;;  %v1813_v35 = vsel %vm1801_vm12, %v4106_v28, %v1794_v55  ;;  %v1815_v1 = vsel %vm1803_vm13, %v1797_v61, %v1814_v17  ;;  %v1981_v44 = vshrl.u32 %v1980_v54, 23  ;;  %v3115_v12 = vpop.eup %3114  ;;  %v5047_v54 = vld [vmem:[#allocation6_spill] sm:$0xff] }
 0x1c3   :  { %v1554_v25 = vxor.u32 2147483648, %v3111_v58  ;;  %v1557_v49 = vxor.u32 2147483648, %v3109_v52  ;;  %v1754_v24 = vsel %vm4067_vm8, 0, %v1752_v26  ;;  %vm1802_vm14 = vcmp.lt.s32.totalorder %v4082_v21, 2 }
 0x1c4   :  { %v2619_v7 = vcombine.low %v4052_v33, %v4058_v16  ;;  %vm1445_vm15 = vweird.f32 %v3500_v48  ;;  %v1655_v62 = vand.u32 3, %v1654_v22  ;;  %v1812_v59 = vsel %vm1802_vm14, %v1809_v29, %v1811_v30 }
 0x1c5   :  { %v5046_v61 = vsub.s32 1, %v3230_v10  ;;  %v1451_v5 = vsel %vm1449_vm9, %v3105_v41, %v1450_v3  ;;  %v1454_v43 = vsel %vm1452_vm10, %v1453_v45, %v3107_v40  ;;  %v1816_v23 = vsel %vm1802_vm14, %v1813_v35, %v1815_v1  ;;  %v721_v41 = vpop.f32.mrf.mxu0 }
 0x1c6   :  { %v4152_v33 = vshll.u32 %v1777_v47, 8  ;;  %vm1553_vm0 = vcmp.eq.s32.totalorder %v1551_v34, 0  ;;  %vm1556_vm1 = vcmp.eq.s32.totalorder %v1551_v34, 2  ;;  %v1758_v16 = vadd.s32 3, %v1754_v24 }
 0x1c7   :  { %v328_v9 = vrot.slane %v3876_v32, %v5046_v61  ;;  %v2989_v6 = vadd.s32 4294967169, %v1981_v44  ;;  %v1555_v22 = vsel %vm1553_vm0, %v3109_v52, %v1554_v25  ;;  %v1558_v11 = vsel %vm1556_vm1, %v1557_v49, %v3111_v58 }
 0x1c8   :  { %v4155_v20 = vmul.u32.u64.low %v4152_v33, %v1812_v59  ;;  %v4156_v18 = vmul.u32.u64.high %v4152_v33, %v1812_v59, %v4155_v20  ;;  %v1658_v60 = vxor.u32 2147483648, %v3115_v12  ;;  %v1661_v46 = vxor.u32 2147483648, %v3113_v56 }
 0x1c9   :  { %v4160_v40 = vmul.u32.u64.low %v4152_v33, %v1816_v23  ;;  %v4161_v63 = vmul.u32.u64.high %v4152_v33, %v1816_v23, %v4160_v40  ;;  %v2631_v3 = vrot.slane %v2617_v8, %v5047_v54  ;;  %vm1448_vm2 = vcmp.lt.s32.totalorder %v4060_v53, 2 }
 0x1ca   :  { %vm1657_vm3 = vcmp.eq.s32.totalorder %v1655_v62, 0  ;;  %vm1552_vm4 = vcmp.lt.s32.totalorder %v1551_v34, 2  ;;  %v1455_v52 = vsel %vm1448_vm2, %v1451_v5, %v1454_v43  ;;  %v1987_v39 = vadd.s32 1, %v2989_v6  ;;  %v792_v40 = vpop.f32.mrf.mxu1 }
 0x1cb   :  { %v1559_v45 = vsel %vm1552_vm4, %v1555_v22, %v1558_v11  ;;  %v4168_v17 = vadd.f32 %v721_v41, %v328_v9  ;;  %vm1660_vm5 = vcmp.eq.s32.totalorder %v1655_v62, 2  ;;  %v1759_v58 = vand.u32 3, %v1758_v16 }
 0x1cc   :  { %v1785_v26 = vshrl.u32 %v5045_v42, %v4039_v37  ;;  %v1806_v47 = vsel %vm1804_vm11, %v1794_v55, 2102212464  ;;  %v2645_v2 = vrot.slane %v2619_v7, %v5047_v54  ;;  %v1659_v36 = vsel %vm1657_vm3, %v3113_v56, %v1658_v60 }
 0x1cd   :  { %v1662_v8 = vsel %vm1660_vm5, %v1661_v46, %v3115_v12  ;;  %vm1549_vm7 = vweird.f32 %v3663_v38  ;;  %v3117_v53 = vpop.eup %3116  ;;  %v1456_v29 = vsel %vm1445_vm15, nan, %v1455_v52  ;;  %vm1656_vm6 = vcmp.lt.s32.totalorder %v1655_v62, 2 }
 0x1ce   :  { %v1560_v30 = vsel %vm1549_vm7, nan, %v1559_v45  ;;  %v1805_v34 = vsel %vm1801_vm12, %v1785_v26, %v4104_v51  ;;  %v3119_v37 = vpop.eup %3118  ;;  %v1765_v35 = vxor.u32 2147483648, %v3117_v53  ;;  %v1807_v55 = vsel %vm1803_vm13, %v4106_v28, %v1806_v47 }
 0x1cf   :  { %vm1988_vm8 = vcmp.gt.s32.totalorder %v1987_v39, 0  ;;  %v1876_v1 = vand.u32 2139095040, %v4168_v17  ;;  %v1663_v38 = vsel %vm1656_vm6, %v1659_v36, %v1662_v8  ;;  %v1762_v44 = vxor.u32 2147483648, %v3119_v37 }
 0x1d0   :  { %vm1764_vm9 = vcmp.eq.s32.totalorder %v1759_v58, 2  ;;  %v1827_v48 = vadd.s32 1, %v4156_v18  ;;  %v2621_v56 = vcombine.low %v1456_v29, %v1560_v30  ;;  %vm1761_vm10 = vcmp.eq.s32.totalorder %v1759_v58, 0 }
 0x1d1   :  { %v1766_v25 = vsel %vm1764_vm9, %v1765_v35, %v3119_v37  ;;  %vm1826_vm11 = vc.u32 %v4161_v63, %v4155_v20  ;;  %vm1760_vm12 = vcmp.lt.s32.totalorder %v1759_v58, 2  ;;  %v1763_v51 = vsel %vm1761_vm10, %v3117_v53, %v1762_v44 }
 0x1d2   :  { %v1808_v49 = vsel %vm1802_vm14, %v1805_v34, %v1807_v55  ;;  %v1989_v28 = vsel %vm1988_vm8, %v1987_v39, 0  ;;  %vm1653_vm13 = vweird.f32 %v3550_v27  ;;  %vm1757_vm15 = vweird.f32 %v3765_v4 }
 0x1d3   :  { %v1767_v24 = vsel %vm1760_vm12, %v1763_v51, %v1766_v25  ;;  %v1877_v12 = vshrl.u32 %v1876_v1, 23  ;;  %v1664_v7 = vsel %vm1653_vm13, nan, %v1663_v38  ;;  %v1828_v59 = vsel %vm1826_vm11, %v1827_v48, %v4156_v18 }
 0x1d4   :  { %v1768_v62 = vsel %vm1757_vm15, nan, %v1767_v24  ;;  %v2659_v61 = vrot.slane %v2621_v56, %v5047_v54  ;;  %v1824_v5 = vmul.u32 %v4152_v33, %v1808_v49  ;;  %v1991_v43 = vand.u32 31, %v1989_v28 }
 0x1d5   :  { %v2623_v9 = vcombine.low %v1664_v7, %v1768_v62  ;;  %v2681_v23 = vcombine.low %v2631_v3, %v2645_v2  ;;  %v2985_v6 = vadd.s32 4294967169, %v1877_v12  ;;  %v5048_v18 = vsub.s32 3, %v3230_v10 }
 0x1d6   :  { %v1829_v16 = vadd.s32 %v1828_v59, %v1824_v5  ;;  %v1992_v22 = vsub.s32 32, %v1991_v43  ;;  %v5005_v52 = vand.u32 2147483647, %v4094_v14  ;;  %v2006_v39 = vshll.u32 %v5022_v0, %v1991_v43 }
 0x1d7   :  { %v2673_v21 = vrot.slane %v2623_v9, %v5047_v54  ;;  %v2695_v4 = vrot.slane %v2681_v23, %v5047_v54  ;;  %v1883_v60 = vadd.s32 1, %v2985_v6  ;;  %v336_v46 = vrot.slane %v3876_v32, %v5048_v18 }
 0x1d8   :  { %v1830_v41 = vadd.s32 536870912, %v1829_v16  ;;  %v2007_v3 = vshrl.u32 %v5023_v19, %v1992_v22  ;;  %v4211_v26 = vshrl.u32 %v1989_v28, 5  ;;  %v1998_v47 = vshrl.u32 %v5044_v57, %v1992_v22 }
 0x1d9   :  { %v2685_v27 = vcombine.low %v2659_v61, %v2673_v21  ;;  %vm1884_vm14 = vcmp.gt.s32.totalorder %v1883_v60, 0  ;;  %v4209_v58 = vadd.f32 %v792_v40, %v336_v46  ;;  %v2001_v2 = vshrl.u32 %v5018_v31, %v1992_v22 }
 0x1da   :  { %v4206_v45 = vshrl.u32 %v1830_v41, 30  ;;  %v2004_v36 = vshrl.u32 %v5022_v0, %v1992_v22  ;;  %v2008_v8 = vor.u32 %v2007_v3, %v2006_v39  ;;  %v1997_v53 = vshll.u32 %v5043_v13, %v1991_v43 }
 0x1db   :  { %v2723_v11 = vrot.slane %v2685_v27, %v5047_v54  ;;  %v2000_v29 = vshll.u32 %v5044_v57, %v1991_v43  ;;  %v2003_v30 = vshll.u32 %v5018_v31, %v1991_v43  ;;  %v1885_v34 = vsel %vm1884_vm14, %v1883_v60, 0 }
 0x1dc   :  { %v1832_v37 = vshll.u32 %v4206_v45, 30  ;;  %v1984_v35 = vand.u32 8388607, %v5005_v52  ;;  %v2084_v55 = vand.u32 2139095040, %v4209_v58  ;;  %v1999_v1 = vor.u32 %v1998_v47, %v1997_v53  ;;  %v861_v47 = vpop.f32.mrf.mxu0 }
 0x1dd   :  { %v2745_v33 = vcombine.low %v2695_v4, %v2723_v11  ;;  %v2002_v38 = vor.u32 %v2001_v2, %v2000_v29  ;;  %v2005_v44 = vor.u32 %v2004_v36, %v2003_v30  ;;  %vm2012_vm0 = vcmp.lt.s32.totalorder %v4211_v26, 4 }
 0x1de   :  { %v1995_v48 = vshrl.u32 %v5043_v13, %v1992_v22  ;;  %v2022_v56 = vsel %vm2012_vm0, %v2008_v8, 1326507024  ;;  %v1887_v25 = vand.u32 31, %v1885_v34  ;;  %v2085_v51 = vshrl.u32 %v2084_v55, 23 }
 0x1df   :  { %2936 = vst [vmem:[%s4972_s3] sm:$0xff] %v2745_v33  ;;  %vm2009_vm1 = vcmp.lt.s32.totalorder %v4211_v26, 1  ;;  %v4228_v49 = vsub.s32 %v1829_v16, %v1832_v37  ;;  %v1994_v28 = vshll.u32 %v5045_v42, %v1991_v43  ;;  %vm2011_vm2 = vcmp.lt.s32.totalorder %v4211_v26, 3 }
 0x1e0   :  { %v2993_v24 = vadd.s32 4294967169, %v2085_v51  ;;  %v1985_v12 = vor.u32 8388608, %v1984_v35  ;;  %v2021_v7 = vsel %vm2009_vm1, %v1999_v1, %v2002_v38  ;;  %v2023_v62 = vsel %vm2011_vm2, %v2005_v44, %v2022_v56 }
 0x1e1   :  { %v1996_v59 = vor.u32 %v1995_v48, %v1994_v28  ;;  %v4236_v61 = vsub.s32 32, %v1887_v25  ;;  %vm2010_vm3 = vcmp.lt.s32.totalorder %v4211_v26, 2  ;;  %v1835_v5 = vsub.s32 0, %v4228_v49 }
 0x1e2   :  { %v2091_v9 = vadd.s32 1, %v2993_v24  ;;  %v2018_v43 = vsel %vm2012_vm0, %v2005_v44, 920167782  ;;  %v2024_v23 = vsel %vm2010_vm3, %v2021_v7, %v2023_v62  ;;  %v4244_v21 = vshll.u32 %v1985_v12, 8 }
 0x1e3   :  { %v1993_v6 = vshrl.u32 %v5045_v42, %v1992_v22  ;;  %v2017_v27 = vsel %vm2009_vm1, %v1996_v59, %v1999_v1  ;;  %v5004_v4 = vand.u32 2147483647, %v4168_v17  ;;  %v1900_v11 = vshrl.u32 %v5022_v0, %v4236_v61 }
 0x1e4   :  { %vm2092_vm4 = vcmp.gt.s32.totalorder %v2091_v9, 0  ;;  %v2019_v41 = vsel %vm2011_vm2, %v2002_v38, %v2018_v43  ;;  %v4255_v60 = vmul.u32.u64.low %v4244_v21, %v2024_v23  ;;  %v4256_v18 = vmul.u32.u64.high %v4244_v21, %v2024_v23, %v4255_v60 }
 0x1e5   :  { %v2093_v16 = vsel %vm2092_vm4, %v2091_v9, 0  ;;  %v5049_v46 = vsub.s32 4, %v3230_v10  ;;  %v4262_v22 = vmin.u32 %v1835_v5, %v4228_v49  ;;  %v1891_v33 = vshrl.u32 %v5043_v13, %v4236_v61 }
 0x1e6   :  { %v1899_v3 = vshll.u32 %v5018_v31, %v1887_v25  ;;  %v2095_v39 = vand.u32 31, %v2093_v16  ;;  %v2014_v2 = vsel %vm2012_vm0, %v2002_v38, 2102212464  ;;  %v4269_v36 = vshrl.u32 %v1885_v34, 5 }
 0x1e7   :  { %v340_v40 = vrot.slane %v3876_v32, %v5049_v46  ;;  %v1894_v8 = vshrl.u32 %v5044_v57, %v4236_v61  ;;  %v1897_v53 = vshrl.u32 %v5018_v31, %v4236_v61  ;;  %v2020_v29 = vsel %vm2010_vm3, %v2017_v27, %v2019_v41 }
 0x1e8   :  { %v1880_v30 = vand.u32 8388607, %v5004_v4  ;;  %v1890_v37 = vshll.u32 %v5045_v42, %v1887_v25  ;;  %v1901_v35 = vor.u32 %v1900_v11, %v1899_v3  ;;  %v1893_v55 = vshll.u32 %v5043_v13, %v1887_v25 }
 0x1e9   :  { %v1896_v34 = vshll.u32 %v5044_v57, %v1887_v25  ;;  %v1903_v38 = vshrl.u32 %v5023_v19, %v4236_v61  ;;  %v4284_v44 = vadd.f32 %v861_v47, %v340_v40  ;;  %v2013_v48 = vsel %vm2009_vm1, %v1993_v6, %v1996_v59 }
 0x1ea   :  { %v2015_v56 = vsel %vm2011_vm2, %v1999_v1, %v2014_v2  ;;  %v4290_v51 = vor.u32 %v1891_v33, %v1890_v37  ;;  %v4292_v28 = vsub.s32 32, %v2095_v39  ;;  %v4294_v24 = vor.u32 %v1894_v8, %v1893_v55 }
 0x1eb   :  { %v1898_v12 = vor.u32 %v1897_v53, %v1896_v34  ;;  %v1902_v7 = vshll.u32 %v5022_v0, %v1887_v25  ;;  %vm1908_vm5 = vcmp.lt.s32.totalorder %v4269_v36, 4  ;;  %v1837_v62 = vclz %v4262_v22 }
 0x1ec   :  { %v4300_v9 = vmul.u32.u64.low %v4244_v21, %v2020_v29  ;;  %v4301_v5 = vmul.u32.u64.high %v4244_v21, %v2020_v29, %v4300_v9  ;;  %v1914_v1 = vsel %vm1908_vm5, %v1901_v35, 920167782  ;;  %v4308_v59 = vsel %vm2010_vm3, %v2013_v48, %v2015_v56 }
 0x1ed   :  { %v1881_v43 = vor.u32 8388608, %v1880_v30  ;;  %v1904_v23 = vor.u32 %v1903_v38, %v1902_v7  ;;  %v2188_v25 = vand.u32 2139095040, %v4284_v44  ;;  %vm1905_vm7 = vcmp.lt.s32.totalorder %v4269_v36, 1 }
 0x1ee   :  { %vm1907_vm6 = vcmp.lt.s32.totalorder %v4269_v36, 3  ;;  %v2108_v6 = vshrl.u32 %v5022_v0, %v4292_v28  ;;  %v2111_v27 = vshrl.u32 %v5023_v19, %v4292_v28  ;;  %vm1906_vm8 = vcmp.lt.s32.totalorder %v4269_v36, 2 }
 0x1ef   :  { %v1913_v26 = vsel %vm1905_vm7, %v4290_v51, %v4294_v24  ;;  %v1915_v11 = vsel %vm1907_vm6, %v1898_v12, %v1914_v1  ;;  %v5002_v41 = vand.u32 2147483647, %v4209_v58  ;;  %vm2034_vm9 = vc.u32 %v4256_v18, %v4300_v9 }
 0x1f0   :  { %v2099_v60 = vshrl.u32 %v5043_v13, %v4292_v28  ;;  %v2102_v46 = vshrl.u32 %v5044_v57, %v4292_v28  ;;  %v2107_v40 = vshll.u32 %v5018_v31, %v2095_v39  ;;  %v2110_v33 = vshll.u32 %v5022_v0, %v2095_v39 }
 0x1f1   :  { %v1918_v3 = vsel %vm1908_vm5, %v1904_v23, 1326507024  ;;  %v4335_v47 = vshrl.u32 %v2093_v16, 5  ;;  %v2105_v2 = vshrl.u32 %v5018_v31, %v4292_v28  ;;  %v2189_v8 = vshrl.u32 %v2188_v25, 23 }
 0x1f2   :  { %v2098_v53 = vshll.u32 %v5045_v42, %v2095_v39  ;;  %v2101_v29 = vshll.u32 %v5043_v13, %v2095_v39  ;;  %v2109_v30 = vor.u32 %v2108_v6, %v2107_v40  ;;  %v2112_v37 = vor.u32 %v2111_v27, %v2110_v33 }
 0x1f3   :  { %v1916_v55 = vsel %vm1906_vm8, %v1913_v26, %v1915_v11  ;;  %v1917_v34 = vsel %vm1905_vm7, %v4294_v24, %v1898_v12  ;;  %v4346_v38 = vshll.u32 %v1881_v43, 8  ;;  %v2104_v16 = vshll.u32 %v5044_v57, %v2095_v39 }
 0x1f4   :  { %v1919_v48 = vsel %vm1907_vm6, %v1901_v35, %v1918_v3  ;;  %v2088_v56 = vand.u32 8388607, %v5002_v41  ;;  %v4353_v7 = vor.u32 %v2099_v60, %v2098_v53  ;;  %v4355_v1 = vor.u32 %v2102_v46, %v2101_v29 }
 0x1f5   :  { %v2035_v23 = vadd.s32 1, %v4301_v5  ;;  %v4358_v25 = vor.u32 %v2105_v2, %v2104_v16  ;;  %vm2116_vm10 = vcmp.lt.s32.totalorder %v4335_v47, 4  ;;  %v2997_v43 = vadd.s32 4294967169, %v2189_v8 }
 0x1f6   :  { %v4362_v6 = vmul.u32.u64.low %v4346_v38, %v1916_v55  ;;  %v4363_v39 = vmul.u32.u64.high %v4346_v38, %v1916_v55, %v4362_v6  ;;  %v2122_v35 = vsel %vm2116_vm10, %v2109_v30, 920167782  ;;  %v2126_v27 = vsel %vm2116_vm10, %v2112_v37, 1326507024 }
 0x1f7   :  { %v1889_v26 = vshrl.u32 %v5045_v42, %v4236_v61  ;;  %v1920_v11 = vsel %vm1906_vm8, %v1917_v34, %v1919_v48  ;;  %vm2113_vm11 = vcmp.lt.s32.totalorder %v4335_v47, 1  ;;  %v2195_v60 = vadd.s32 1, %v2997_v43 }
 0x1f8   :  { %v1910_v46 = vsel %vm1908_vm5, %v1898_v12, 2102212464  ;;  %v2089_v40 = vor.u32 8388608, %v2088_v56  ;;  %vm2115_vm12 = vcmp.lt.s32.totalorder %v4335_v47, 3  ;;  %v2121_v33 = vsel %vm2113_vm11, %v4353_v7, %v4355_v1 }
 0x1f9   :  { %v2123_v61 = vsel %vm2115_vm12, %v4358_v25, %v2122_v35  ;;  %v2125_v3 = vsel %vm2113_vm11, %v4355_v1, %v4358_v25  ;;  %v2127_v12 = vsel %vm2115_vm12, %v2109_v30, %v2126_v27  ;;  %vm2196_vm13 = vcmp.gt.s32.totalorder %v2195_v60, 0 }
 0x1fa   :  { %v2032_v2 = vmul.u32 %v4244_v21, %v4308_v59  ;;  %v4394_v8 = vmul.u32.u64.low %v4346_v38, %v1920_v11  ;;  %v4395_v53 = vmul.u32.u64.high %v4346_v38, %v1920_v11, %v4394_v8  ;;  %v2197_v29 = vsel %vm2196_vm13, %v2195_v60, 0 }
 0x1fb   :  { %v2036_v37 = vsel %vm2034_vm9, %v2035_v23, %v4301_v5  ;;  %v1909_v55 = vsel %vm1905_vm7, %v1889_v26, %v4290_v51  ;;  %v1911_v30 = vsel %vm1907_vm6, %v4294_v24, %v1910_v46  ;;  %vm2114_vm15 = vcmp.lt.s32.totalorder %v4335_v47, 2 }
 0x1fc   :  { %v2124_v21 = vsel %vm2114_vm15, %v2121_v33, %v2123_v61  ;;  %v2128_v59 = vsel %vm2114_vm15, %v2125_v3, %v2127_v12  ;;  %v5001_v34 = vand.u32 2147483647, %v4284_v44  ;;  %v2199_v16 = vand.u32 31, %v2197_v29 }
 0x1fd   :  { %v2983_v5 = vadd.s32 4294967294, %v1837_v62  ;;  %v4415_v48 = vshll.u32 %v2089_v40, 8  ;;  %v4417_v51 = vadd.s32 %v2036_v37, %v2032_v2  ;;  %v1912_v24 = vsel %vm1906_vm8, %v1909_v55, %v1911_v30  ;;  %v932_v30 = vpop.f32.mrf.mxu1 }
 0x1fe   :  { %v1931_v56 = vadd.s32 1, %v4363_v39  ;;  %v4422_v23 = vsub.s32 32, %v2199_v16  ;;  %v2192_v22 = vand.u32 8388607, %v5001_v34  ;;  %v2202_v60 = vshll.u32 %v5045_v42, %v2199_v16 }
 0x1ff   :  { %v4425_v43 = vmul.u32.u64.low %v4415_v48, %v2128_v59  ;;  %v4426_v35 = vmul.u32.u64.high %v4415_v48, %v2128_v59, %v4425_v43  ;;  %v4429_v27 = vmul.u32.u64.low %v4415_v48, %v2124_v21  ;;  %v4430_v26 = vmul.u32.u64.high %v4415_v48, %v2124_v21, %v4429_v27 }
 0x200   :  { %v2203_v36 = vshrl.u32 %v5043_v13, %v4422_v23  ;;  %v2206_v62 = vshrl.u32 %v5044_v57, %v4422_v23  ;;  %v2209_v11 = vshrl.u32 %v5018_v31, %v4422_v23  ;;  %v2205_v46 = vshll.u32 %v5043_v13, %v2199_v16 }
 0x201   :  { %v2211_v40 = vshll.u32 %v5018_v31, %v2199_v16  ;;  %v2212_v33 = vshrl.u32 %v5022_v0, %v4422_v23  ;;  %vm1930_vm14 = vc.u32 %v4395_v53, %v4362_v6  ;;  %v4448_v61 = vshrl.u32 %v2197_v29, 5 }
 0x202   :  { %v2208_v3 = vshll.u32 %v5044_v57, %v2199_v16  ;;  %v5050_v12 = vsub.s32 6, %v3230_v10  ;;  %vm2984_vm0 = vcmp.lt.s32.totalorder %v2983_v5, 0  ;;  %v2204_v8 = vor.u32 %v2203_v36, %v2202_v60 }
 0x203   :  { %v2207_v37 = vor.u32 %v2206_v62, %v2205_v46  ;;  %v2213_v55 = vor.u32 %v2212_v33, %v2211_v40  ;;  %v2038_v21 = vadd.s32 536870912, %v4417_v51  ;;  %v2214_v43 = vshll.u32 %v5022_v0, %v2199_v16 }
 0x204   :  { %v348_v2 = vrot.slane %v3876_v32, %v5050_v12  ;;  %v2210_v59 = vor.u32 %v2209_v11, %v2208_v3  ;;  %v2215_v29 = vshrl.u32 %v5023_v19, %v4422_v23  ;;  %v1928_v34 = vmul.u32 %v4346_v38, %v1912_v24 }
 0x205   :  { %v1932_v41 = vsel %vm1930_vm14, %v1931_v56, %v4363_v39  ;;  %v2118_v32 = vsel %vm2116_vm10, %v4358_v25, 2102212464  ;;  %v2193_v36 = vor.u32 8388608, %v2192_v22  ;;  %vm2217_vm1 = vcmp.lt.s32.totalorder %v4448_v61, 1 }
 0x206   :  { %v2216_v62 = vor.u32 %v2215_v29, %v2214_v43  ;;  %vm2220_vm2 = vcmp.lt.s32.totalorder %v4448_v61, 4  ;;  %v4465_v11 = vadd.f32 %v932_v30, %v348_v2  ;;  %v2097_v16 = vshrl.u32 %v5045_v42, %v4292_v28 }
 0x207   :  { %vm2219_vm3 = vcmp.lt.s32.totalorder %v4448_v61, 3  ;;  %v2225_v38 = vsel %vm2217_vm1, %v2204_v8, %v2207_v37  ;;  %v2226_v39 = vsel %vm2220_vm2, %v2213_v55, 920167782  ;;  %v4474_v25 = vshrl.u32 %v2038_v21, 30 }
 0x208   :  { %v2227_v24 = vsel %vm2219_vm3, %v2210_v59, %v2226_v39  ;;  %v2229_v56 = vsel %vm2217_vm1, %v2207_v37, %v2210_v59  ;;  %v2230_v22 = vsel %vm2220_vm2, %v2216_v62, 1326507024  ;;  %v1933_v28 = vadd.s32 %v1932_v41, %v1928_v34 }
 0x209   :  { %v2117_v60 = vsel %vm2113_vm11, %v2097_v16, %v4353_v7  ;;  %v2119_v46 = vsel %vm2115_vm12, %v4355_v1, %v2118_v32  ;;  %vm2218_vm4 = vcmp.lt.s32.totalorder %v4448_v61, 2  ;;  %v2231_v33 = vsel %vm2219_vm3, %v2213_v55, %v2230_v22 }
 0x20a   :  { %v2228_v40 = vsel %vm2218_vm4, %v2225_v38, %v2227_v24  ;;  %v2233_v3 = vshll.u32 %v2193_v36, 8  ;;  %v2396_v12 = vand.u32 2139095040, %v4465_v11  ;;  %v1840_v41 = vsel %vm2984_vm0, 0, %v2983_v5 }
 0x20b   :  { %v2139_v34 = vadd.s32 1, %v4430_v26  ;;  %v2232_v7 = vsel %vm2218_vm4, %v2229_v56, %v2231_v33  ;;  %vm2138_vm5 = vc.u32 %v4426_v35, %v4429_v27  ;;  %v2040_v55 = vshll.u32 %v4474_v25, 30 }
 0x20c   :  { %v4500_v1 = vmul.u32.u64.low %v2233_v3, %v2228_v40  ;;  %v4501_v2 = vmul.u32.u64.high %v2233_v3, %v2228_v40, %v4500_v1  ;;  %v2397_v30 = vshrl.u32 %v2396_v12, 23  ;;  %v2120_v21 = vsel %vm2114_vm15, %v2117_v60, %v2119_v46 }
 0x20d   :  { %v4507_v43 = vmul.u32.u64.low %v2233_v3, %v2232_v7  ;;  %v4508_v5 = vmul.u32.u64.high %v2233_v3, %v2232_v7, %v4507_v43  ;;  %v1934_v29 = vadd.s32 536870912, %v1933_v28  ;;  %v1841_v36 = vsub.s32 32, %v1840_v41 }
 0x20e   :  { %v3005_v32 = vadd.s32 4294967169, %v2397_v30  ;;  %v2140_v62 = vsel %vm2138_vm5, %v2139_v34, %v4430_v26  ;;  %v1845_v16 = vsub.s32 4294967266, %v1840_v41  ;;  %v2136_v38 = vmul.u32 %v4415_v48, %v2120_v21 }
 0x20f   :  { %v2222_v39 = vsel %vm2220_vm2, %v2210_v59, 2102212464  ;;  %v4515_v56 = vsub.s32 %v4417_v51, %v2040_v55  ;;  %v2201_v47 = vshrl.u32 %v5045_v42, %v4422_v23  ;;  %v1825_v22 = vadd.s32 %v4155_v20, %v4161_v63 }
 0x210   :  { %v2403_v24 = vadd.s32 1, %v3005_v32  ;;  %v4521_v60 = vshrl.u32 %v1934_v29, 30  ;;  %v4523_v46 = vadd.s32 %v2140_v62, %v2136_v38  ;;  %v2223_v26 = vsel %vm2219_vm3, %v2207_v37, %v2222_v39  ;;  %v3152_v62 = vld [vmem:[%s4971_s2 + $0x8] sm:$0xff] }
 0x211   :  { %v2221_v48 = vsel %vm2217_vm1, %v2201_v47, %v2204_v8  ;;  %v1843_v51 = vshrl.u32 %v1825_v22, %v1841_v36  ;;  %v1846_v40 = vadd.s32 127, %v1845_v16  ;;  %v2243_v33 = vadd.s32 1, %v4501_v2 }
 0x212   :  { %vm2404_vm7 = vcmp.gt.s32.totalorder %v2403_v24, 0  ;;  %v1842_v12 = vshll.u32 %v4228_v49, %v1840_v41  ;;  %v2043_v20 = vsub.s32 0, %v4515_v56  ;;  %vm2242_vm6 = vc.u32 %v4508_v5, %v4500_v1 }
 0x213   :  { %v2405_v59 = vsel %vm2404_vm7, %v2403_v24, 0  ;;  %v1936_v63 = vshll.u32 %v4521_v60, 30  ;;  %v2142_v8 = vadd.s32 536870912, %v4523_v46  ;;  %v2224_v37 = vsel %vm2218_vm4, %v2221_v48, %v2223_v26 }
 0x214   :  { %v2407_v23 = vand.u32 31, %v2405_v59  ;;  %v5003_v7 = vand.u32 2147483647, %v4465_v11  ;;  %v4539_v30 = vor.u32 %v1843_v51, %v1842_v12  ;;  %v1847_v55 = vshll.u32 %v1846_v40, 23  ;;  %v863_v12 = vpop.f32.mrf.mxu0 }
 0x215   :  { %v2244_v49 = vsel %vm2242_vm6, %v2243_v33, %v4501_v2  ;;  %v2990_v41 = vmin.u32 %v2043_v20, %v4515_v56  ;;  %v2240_v21 = vmul.u32 %v2233_v3, %v2224_v37  ;;  %v4545_v32 = vsub.s32 %v1933_v28, %v1936_v63 }
 0x216   :  { %v2408_v34 = vsub.s32 32, %v2407_v23  ;;  %v4547_v36 = vshrl.u32 %v2142_v8, 30  ;;  %v5051_v16 = vsub.s32 5, %v3230_v10  ;;  %v2400_v3 = vand.u32 8388607, %v5003_v7 }
 0x217   :  { %v4555_v38 = vadd.s32 %v2244_v49, %v2240_v21  ;;  %v2410_v39 = vshll.u32 %v5045_v42, %v2407_v23  ;;  %v2413_v28 = vshll.u32 %v5043_v13, %v2407_v23  ;;  %v2406_v24 = vshrl.u32 %v2405_v59, 5 }
 0x218   :  { %v2411_v43 = vshrl.u32 %v5043_v13, %v2408_v34  ;;  %v2414_v29 = vshrl.u32 %v5044_v57, %v2408_v34  ;;  %v2417_v61 = vshrl.u32 %v5018_v31, %v2408_v34  ;;  %v344_v2 = vrot.slane %v3152_v62, %v5051_v16 }
 0x219   :  { %v2416_v47 = vshll.u32 %v5044_v57, %v2407_v23  ;;  %v2419_v22 = vshll.u32 %v5018_v31, %v2407_v23  ;;  %v2420_v48 = vshrl.u32 %v5022_v0, %v2408_v34  ;;  %v2422_v40 = vshll.u32 %v5022_v0, %v2407_v23 }
 0x21a   :  { %v2412_v26 = vor.u32 %v2411_v43, %v2410_v39  ;;  %v2415_v51 = vor.u32 %v2414_v29, %v2413_v28  ;;  %v2423_v33 = vshrl.u32 %v5023_v19, %v2408_v34  ;;  %v1848_v20 = vor.u32 4788187, %v1847_v55 }
 0x21b   :  { %v2418_v63 = vor.u32 %v2417_v61, %v2416_v47  ;;  %v2421_v8 = vor.u32 %v2420_v48, %v2419_v22  ;;  %v1851_v37 = vcvt.s32.f32 %v4539_v30  ;;  %v2045_v49 = vclz %v2990_v41 }
 0x21c   :  { %v2401_v59 = vor.u32 8388608, %v2400_v3  ;;  %v2424_v21 = vor.u32 %v2423_v33, %v2422_v40  ;;  %v1939_v16 = vsub.s32 0, %v4545_v32  ;;  %v2144_v7 = vshll.u32 %v4547_v36, 30 }
 0x21d   :  { %vm2425_vm8 = vcmp.lt.s32.totalorder %v2406_v24, 1  ;;  %v4569_v43 = vadd.f32 %v863_v12, %v344_v2  ;;  %v2246_v23 = vadd.s32 536870912, %v4555_v38  ;;  %v2409_v29 = vshrl.u32 %v5045_v42, %v2408_v34 }
 0x21e   :  { %vm2428_vm9 = vcmp.lt.s32.totalorder %v2406_v24, 4  ;;  %v2433_v55 = vsel %vm2425_vm8, %v2412_v26, %v2415_v51  ;;  %vm2427_vm10 = vcmp.lt.s32.totalorder %v2406_v24, 3  ;;  %v2437_v30 = vsel %vm2425_vm8, %v2415_v51, %v2418_v63 }
 0x21f   :  { %v2430_v61 = vsel %vm2428_vm9, %v2418_v63, 2102212464  ;;  %v2434_v39 = vsel %vm2428_vm9, %v2421_v8, 920167782  ;;  %vm2426_vm11 = vcmp.lt.s32.totalorder %v2406_v24, 2  ;;  %v2441_v28 = vshll.u32 %v2401_v59, 8 }
 0x220   :  { %v2435_v41 = vsel %vm2427_vm10, %v2418_v63, %v2434_v39  ;;  %v2438_v3 = vsel %vm2428_vm9, %v2424_v21, 1326507024  ;;  %v1849_v47 = vand.u32 2147483647, %v1848_v20  ;;  %v2429_v22 = vsel %vm2425_vm8, %v2409_v29, %v2412_v26  ;;  %v934_v29 = vpop.f32.mrf.mxu1 }
 0x221   :  { %v2436_v48 = vsel %vm2426_vm11, %v2433_v55, %v2435_v41  ;;  %v2439_v2 = vsel %vm2427_vm10, %v2421_v8, %v2438_v3  ;;  %v2431_v40 = vsel %vm2427_vm10, %v2415_v51, %v2430_v61  ;;  %v2991_v4 = vadd.s32 4294967294, %v2045_v49 }
 0x222   :  { %v2440_v33 = vsel %vm2426_vm11, %v2437_v30, %v2439_v2  ;;  %v4575_v12 = vmul.u32.u64.low %v2441_v28, %v2436_v48  ;;  %v4576_v34 = vmul.u32.u64.high %v2441_v28, %v2436_v48, %v4575_v12  ;;  %v2986_v52 = vmin.u32 %v1939_v16, %v4545_v32 }
 0x223   :  { %v4581_v15 = vsub.s32 %v4523_v46, %v2144_v7  ;;  %v4583_v63 = vshrl.u32 %v2246_v23, 30  ;;  %v4585_v20 = vmul.u32.u64.low %v2441_v28, %v2440_v33  ;;  %v4586_v26 = vmul.u32.u64.high %v2441_v28, %v2440_v33, %v4585_v20 }
 0x224   :  { %v2292_v8 = vand.u32 2139095040, %v4569_v43  ;;  %v5052_v51 = vsub.s32 7, %v3230_v10  ;;  %v2432_v21 = vsel %vm2426_vm11, %v2429_v22, %v2431_v40  ;;  %v1852_v55 = vmul.f32 %v1851_v37, %v1849_v47 }
 0x225   :  { %v1855_v49 = vsub.s32 4, %v4206_v45  ;;  %v2451_v16 = vadd.s32 1, %v4576_v34  ;;  %vm2992_vm12 = vcmp.lt.s32.totalorder %v2991_v4, 0  ;;  %v1941_v7 = vclz %v2986_v52 }
 0x226   :  { %v352_v59 = vrot.slane %v3152_v62, %v5052_v51  ;;  %v2293_v46 = vshrl.u32 %v2292_v8, 23  ;;  %v2147_v23 = vsub.s32 0, %v4581_v15  ;;  %v2248_v61 = vshll.u32 %v4583_v63, 30 }
 0x227   :  { %v2448_v39 = vmul.u32 %v2441_v28, %v2432_v21  ;;  %vm2450_vm13 = vc.u32 %v4586_v26, %v4575_v12  ;;  %v5053_v24 = vand.u32 2147483647, %v3906_v50  ;;  %vm1771_vm14 = vcmp.lt.s32.totalorder %v3906_v50, 0 }
 0x228   :  { %v3001_v10 = vadd.s32 4294967169, %v2293_v46  ;;  %v4598_v62 = vadd.f32 %v934_v29, %v352_v59  ;;  %v2452_v52 = vsel %vm2450_vm13, %v2451_v16, %v4576_v34  ;;  %v1853_v30 = vxor.u32 2147483648, %v1852_v55 }
 0x229   :  { %vm4602_vm15 = vcmp.le.f32.partialorder %v5053_v24, 0.7853982  ;;  %v1856_v41 = vsel %vm1771_vm14, %v1855_v49, %v4206_v45  ;;  %v2453_v3 = vadd.s32 %v2452_v52, %v2448_v39  ;;  %v4611_v47 = vsel %vm2992_vm12, 0, %v2991_v4 }
 0x22a   :  { %v2299_v28 = vadd.s32 1, %v3001_v10  ;;  %v2987_v22 = vadd.s32 4294967294, %v1941_v7  ;;  %v2994_v48 = vmin.u32 %v2147_v23, %v4581_v15  ;;  %v4615_v2 = vsub.s32 %v4555_v38, %v2248_v61 }
 0x22b   :  { %v2454_v40 = vadd.s32 536870912, %v2453_v3  ;;  %v5007_v33 = vand.u32 2147483647, %v4569_v43  ;;  %v2500_v34 = vand.u32 2139095040, %v4598_v62  ;;  %v1858_v20 = vsel %vm4602_vm15, 0, %v1856_v41 }
 0x22c   :  { %vm2300_vm0 = vcmp.gt.s32.totalorder %v2299_v28, 0  ;;  %v2033_v4 = vadd.s32 %v4300_v9, %v4256_v18  ;;  %v2049_v8 = vsub.s32 32, %v4611_v47  ;;  %v2053_v51 = vsub.s32 4294967266, %v4611_v47 }
 0x22d   :  { %v2301_v45 = vsel %vm2300_vm0, %v2299_v28, 0  ;;  %v1854_v38 = vsel %vm1771_vm14, %v1853_v30, %v1852_v55  ;;  %vm2988_vm1 = vcmp.lt.s32.totalorder %v2987_v22, 0  ;;  %v2149_v21 = vclz %v2994_v48 }
 0x22e   :  { %v2303_v59 = vand.u32 31, %v2301_v45  ;;  %v2251_v29 = vsub.s32 0, %v4615_v2  ;;  %v4628_v49 = vshrl.u32 %v2454_v40, 30  ;;  %v2296_v16 = vand.u32 8388607, %v5007_v33 }
 0x22f   :  { %v2501_v7 = vshrl.u32 %v2500_v34, 23  ;;  %v4632_v18 = vadd.s32 3, %v1858_v20  ;;  %v4637_v9 = vsel %vm4602_vm15, %v3906_v50, %v1854_v38  ;;  %v2050_v55 = vshll.u32 %v4515_v56, %v4611_v47 }
 0x230   :  { %v2304_v46 = vsub.s32 32, %v2303_v59  ;;  %v2051_v23 = vshrl.u32 %v2033_v4, %v2049_v8  ;;  %v2054_v61 = vadd.s32 127, %v2053_v51  ;;  %v4641_v39 = vsel %vm2988_vm1, 0, %v2987_v22 }
 0x231   :  { %v2995_v10 = vadd.s32 4294967294, %v2149_v21  ;;  %v2998_v24 = vmin.u32 %v2251_v29, %v4615_v2  ;;  %v2456_v30 = vshll.u32 %v4628_v49, 30  ;;  %v2297_v41 = vor.u32 8388608, %v2296_v16 }
 0x232   :  { %v2307_v52 = vshrl.u32 %v5043_v13, %v2304_v46  ;;  %v2306_v28 = vshll.u32 %v5045_v42, %v2303_v59  ;;  %v3009_v37 = vadd.s32 4294967169, %v2501_v7  ;;  %v2309_v48 = vshll.u32 %v5043_v13, %v2303_v59 }
 0x233   :  { %v2310_v40 = vshrl.u32 %v5044_v57, %v2304_v46  ;;  %v2312_v56 = vshll.u32 %v5044_v57, %v2303_v59  ;;  %v2313_v47 = vshrl.u32 %v5018_v31, %v2304_v46  ;;  %v2302_v22 = vshrl.u32 %v2301_v45, 5 }
 0x234   :  { %v2308_v34 = vor.u32 %v2307_v52, %v2306_v28  ;;  %v2315_v20 = vshll.u32 %v5018_v31, %v2303_v59  ;;  %v2316_v4 = vshrl.u32 %v5022_v0, %v2304_v46  ;;  %v2318_v38 = vshll.u32 %v5022_v0, %v2303_v59 }
 0x235   :  { %v2311_v8 = vor.u32 %v2310_v40, %v2309_v48  ;;  %v2314_v51 = vor.u32 %v2313_v47, %v2312_v56  ;;  %v2319_v21 = vshrl.u32 %v5023_v19, %v2304_v46  ;;  %v2055_v29 = vshll.u32 %v2054_v61, 23 }
 0x236   :  { %v1949_v16 = vsub.s32 4294967266, %v4641_v39  ;;  %vm2996_vm2 = vcmp.lt.s32.totalorder %v2995_v10, 0  ;;  %v2253_v7 = vclz %v2998_v24  ;;  %v4656_v33 = vsub.s32 %v2453_v3, %v2456_v30 }
 0x237   :  { %v2317_v54 = vor.u32 %v2316_v4, %v2315_v20  ;;  %v2320_v45 = vor.u32 %v2319_v21, %v2318_v38  ;;  %v2507_v52 = vadd.s32 1, %v3009_v37  ;;  %vm2321_vm3 = vcmp.lt.s32.totalorder %v2302_v22, 1 }
 0x238   :  { %vm2323_vm4 = vcmp.lt.s32.totalorder %v2302_v22, 3  ;;  %vm2324_vm5 = vcmp.lt.s32.totalorder %v2302_v22, 4  ;;  %v2337_v28 = vshll.u32 %v2297_v41, 8  ;;  %v2329_v40 = vsel %vm2321_vm3, %v2308_v34, %v2311_v8 }
 0x239   :  { %v2326_v48 = vsel %vm2324_vm5, %v2314_v51, 2102212464  ;;  %v2330_v59 = vsel %vm2324_vm5, %v2317_v54, 920167782  ;;  %v2333_v56 = vsel %vm2321_vm3, %v2311_v8, %v2314_v51  ;;  %v2305_v61 = vshrl.u32 %v5045_v42, %v2304_v46 }
 0x23a   :  { %vm2322_vm7 = vcmp.lt.s32.totalorder %v2302_v22, 2  ;;  %v2331_v24 = vsel %vm2323_vm4, %v2314_v51, %v2330_v59  ;;  %v2334_v3 = vsel %vm2324_vm5, %v2320_v45, 1326507024  ;;  %v2459_v30 = vsub.s32 0, %v4656_v33 }
 0x23b   :  { %v2332_v37 = vsel %vm2322_vm7, %v2329_v40, %v2331_v24  ;;  %v2335_v47 = vsel %vm2323_vm4, %v2317_v54, %v2334_v3  ;;  %vm2508_vm6 = vcmp.gt.s32.totalorder %v2507_v52, 0  ;;  %v2999_v41 = vadd.s32 4294967294, %v2253_v7 }
 0x23c   :  { %v2325_v20 = vsel %vm2321_vm3, %v2305_v61, %v2308_v34  ;;  %v2327_v4 = vsel %vm2323_vm4, %v2311_v8, %v2326_v48  ;;  %v2336_v38 = vsel %vm2322_vm7, %v2333_v56, %v2335_v47  ;;  %v2052_v45 = vor.u32 %v2051_v23, %v2050_v55 }
 0x23d   :  { %v4668_v21 = vmul.u32.u64.low %v2337_v28, %v2336_v38  ;;  %v4669_v46 = vmul.u32.u64.high %v2337_v28, %v2336_v38, %v4668_v21  ;;  %v4671_v50 = vmul.u32.u64.low %v2337_v28, %v2332_v37  ;;  %v4672_v51 = vmul.u32.u64.high %v2337_v28, %v2332_v37, %v4671_v50 }
 0x23e   :  { %v2056_v59 = vor.u32 4788187, %v2055_v29  ;;  %v2509_v54 = vsel %vm2508_vm6, %v2507_v52, 0  ;;  %v1945_v7 = vsub.s32 32, %v4641_v39  ;;  %v3006_v34 = vmin.u32 %v2459_v30, %v4656_v33 }
 0x23f   :  { %v2328_v8 = vsel %vm2322_vm7, %v2325_v20, %v2327_v4  ;;  %v2511_v48 = vand.u32 31, %v2509_v54  ;;  %3120 = vcosq.f32 %v4637_v9  ;;  %v1929_v56 = vadd.s32 %v4362_v6, %v4395_v53 }
 0x240   :  { %v1950_v61 = vadd.s32 127, %v1949_v16  ;;  %v4683_v24 = vsel %vm2996_vm2, 0, %v2995_v10  ;;  %vm3000_vm8 = vcmp.lt.s32.totalorder %v2999_v41, 0  ;;  %vm2346_vm9 = vc.u32 %v4669_v46, %v4671_v50 }
 0x241   :  { %v2347_v55 = vadd.s32 1, %v4672_v51  ;;  %v5011_v23 = vand.u32 2147483647, %v4598_v62  ;;  %v2057_v22 = vand.u32 2147483647, %v2056_v59  ;;  %v2059_v29 = vcvt.s32.f32 %v2052_v45 }
 0x242   :  { %v2344_v52 = vmul.u32 %v2337_v28, %v2328_v8  ;;  %v2512_v3 = vsub.s32 32, %v2511_v48  ;;  %v1946_v30 = vshll.u32 %v4545_v32, %v4641_v39  ;;  %v1947_v6 = vshrl.u32 %v1929_v56, %v1945_v7 }
 0x243   :  { %v2461_v53 = vclz %v3006_v34  ;;  %v2348_v10 = vsel %vm2346_vm9, %v2347_v55, %v4672_v51  ;;  %v1951_v16 = vshll.u32 %v1950_v61, 23  ;;  %v2157_v37 = vsub.s32 4294967266, %v4683_v24 }
 0x244   :  { %v4693_v47 = vsel %vm3000_vm8, 0, %v2999_v41  ;;  %v2349_v20 = vadd.s32 %v2348_v10, %v2344_v52  ;;  %v2504_v4 = vand.u32 8388607, %v5011_v23  ;;  %v2514_v38 = vshll.u32 %v5045_v42, %v2511_v48 }
 0x245   :  { %v2515_v28 = vshrl.u32 %v5043_v13, %v2512_v3  ;;  %v2518_v21 = vshrl.u32 %v5044_v57, %v2512_v3  ;;  %v2517_v39 = vshll.u32 %v5043_v13, %v2511_v48  ;;  %v2521_v51 = vshrl.u32 %v5018_v31, %v2512_v3 }
 0x246   :  { %v2350_v32 = vadd.s32 536870912, %v2349_v20  ;;  %v2524_v45 = vshrl.u32 %v5022_v0, %v2512_v3  ;;  %v3007_v59 = vadd.s32 4294967294, %v2461_v53  ;;  %v2510_v41 = vshrl.u32 %v2509_v54, 5 }
 0x247   :  { %v2520_v7 = vshll.u32 %v5044_v57, %v2511_v48  ;;  %v2523_v34 = vshll.u32 %v5018_v31, %v2511_v48  ;;  %v2516_v56 = vor.u32 %v2515_v28, %v2514_v38  ;;  %v2519_v61 = vor.u32 %v2518_v21, %v2517_v39 }
 0x248   :  { %v4705_v8 = vshrl.u32 %v2350_v32, 30  ;;  %v2527_v55 = vshrl.u32 %v5023_v19, %v2512_v3  ;;  %v4708_v52 = vmul.f32 %v2059_v29, %v2057_v22  ;;  %v4710_v10 = vor.u32 %v1947_v6, %v1946_v30 }
 0x249   :  { %v2525_v13 = vor.u32 %v2524_v45, %v2523_v34  ;;  %v2526_v23 = vshll.u32 %v5022_v0, %v2511_v48  ;;  %v4713_v40 = vor.u32 4788187, %v1951_v16  ;;  %v2158_v54 = vadd.s32 127, %v2157_v37 }
 0x24a   :  { %v2352_v57 = vshll.u32 %v4705_v8, 30  ;;  %v2522_v53 = vor.u32 %v2521_v51, %v2520_v7  ;;  %v2261_v31 = vsub.s32 4294967266, %v4693_v47  ;;  %v2505_v32 = vor.u32 8388608, %v2504_v4 }
 0x24b   :  { %v2528_v38 = vor.u32 %v2527_v55, %v2526_v23  ;;  %vm2529_vm10 = vcmp.lt.s32.totalorder %v2510_v41, 1  ;;  %vm3008_vm11 = vcmp.lt.s32.totalorder %v3007_v59, 0  ;;  %vm2532_vm12 = vcmp.lt.s32.totalorder %v2510_v41, 4 }
 0x24c   :  { %v4717_v19 = vsub.s32 %v2349_v20, %v2352_v57  ;;  %v2537_v22 = vsel %vm2529_vm10, %v2516_v56, %v2519_v61  ;;  %v4720_v29 = vpop.eup %3120  ;;  %v2513_v0 = vshrl.u32 %v5045_v42, %v2512_v3  ;;  %vm2530_vm13 = vcmp.lt.s32.totalorder %v2510_v41, 2 }
 0x24d   :  { %vm2531_vm15 = vcmp.lt.s32.totalorder %v2510_v41, 3  ;;  %v2538_v48 = vsel %vm2532_vm12, %v2525_v13, 920167782  ;;  %v2534_v6 = vsel %vm2532_vm12, %v2522_v53, 2102212464  ;;  %v2541_v23 = vsel %vm2529_vm10, %v2519_v61, %v2522_v53 }
 0x24e   :  { %v2355_v30 = vsub.s32 0, %v4717_v19  ;;  %v2539_v16 = vsel %vm2531_vm15, %v2522_v53, %v2538_v48  ;;  %v4725_v37 = vsel %vm3008_vm11, 0, %v3007_v59  ;;  %v2542_v4 = vsel %vm2532_vm12, %v2528_v38, 1326507024 }
 0x24f   :  { %v2540_v20 = vsel %vm2530_vm13, %v2537_v22, %v2539_v16  ;;  %v2545_v28 = vshll.u32 %v2505_v32, 8  ;;  %v2153_v21 = vsub.s32 32, %v4683_v24  ;;  %v2533_v42 = vsel %vm2529_vm10, %v2513_v0, %v2516_v56 }
 0x250   :  { %v3002_v39 = vmin.u32 %v2355_v30, %v4717_v19  ;;  %v2543_v3 = vsel %vm2531_vm15, %v2525_v13, %v2542_v4  ;;  %v2535_v51 = vsel %vm2531_vm15, %v2519_v61, %v2534_v6  ;;  %v2159_v59 = vshll.u32 %v2158_v54, 23 }
 0x251   :  { %v2544_v45 = vsel %vm2530_vm13, %v2541_v23, %v2543_v3  ;;  %v4732_v7 = vmul.u32.u64.low %v2545_v28, %v2540_v20  ;;  %v4733_v34 = vmul.u32.u64.high %v2545_v28, %v2540_v20, %v4732_v7  ;;  %v2262_v55 = vadd.s32 127, %v2261_v31 }
 0x252   :  { %v2469_v57 = vsub.s32 4294967266, %v4725_v37  ;;  %v2357_v53 = vclz %v3002_v39  ;;  %v1955_v32 = vcvt.s32.f32 %v4710_v10  ;;  %v2137_v38 = vadd.s32 %v4429_v27, %v4426_v35 }
 0x253   :  { %v4740_v22 = vmul.u32.u64.low %v2545_v28, %v2544_v45  ;;  %v4741_v56 = vmul.u32.u64.high %v2545_v28, %v2544_v45, %v4740_v22  ;;  %vm1979_vm14 = vcmp.lt.s32.totalorder %v4094_v14, 0  ;;  %v1953_v61 = vand.u32 2147483647, %v4713_v40 }
 0x254   :  { %v2154_v13 = vshll.u32 %v4581_v15, %v4683_v24  ;;  %v3003_v54 = vadd.s32 4294967294, %v2357_v53  ;;  %v2536_v31 = vsel %vm2530_vm13, %v2533_v42, %v2535_v51  ;;  %v2155_v0 = vshrl.u32 %v2137_v38, %v2153_v21 }
 0x255   :  { %v2241_v10 = vadd.s32 %v4500_v1, %v4508_v5  ;;  %v2257_v48 = vsub.s32 32, %v4693_v47  ;;  %v2555_v35 = vadd.s32 1, %v4733_v34  ;;  %v2160_v27 = vor.u32 4788187, %v2159_v59 }
 0x256   :  { %v2263_v30 = vshll.u32 %v2262_v55, 23  ;;  %v2470_v6 = vadd.s32 127, %v2469_v57  ;;  %vm3004_vm0 = vcmp.lt.s32.totalorder %v3003_v54, 0  ;;  %v2465_v40 = vsub.s32 32, %v4725_v37 }
 0x257   :  { %v2360_v16 = vsel %vm3004_vm0, 0, %v3003_v54  ;;  %v2552_v23 = vmul.u32 %v2545_v28, %v2536_v31  ;;  %vm2554_vm1 = vc.u32 %v4741_v56, %v4732_v7  ;;  %v2345_v15 = vadd.s32 %v4671_v50, %v4669_v46 }
 0x258   :  { %v2361_v24 = vsub.s32 32, %v2360_v16  ;;  %v2365_v1 = vsub.s32 4294967266, %v2360_v16  ;;  %v2556_v5 = vsel %vm2554_vm1, %v2555_v35, %v4733_v34  ;;  %v2156_v41 = vor.u32 %v2155_v0, %v2154_v13 }
 0x259   :  { %v2259_v20 = vshrl.u32 %v2241_v10, %v2257_v48  ;;  %v2449_v4 = vadd.s32 %v4575_v12, %v4586_v26  ;;  %v2557_v21 = vadd.s32 %v2556_v5, %v2552_v23  ;;  %v2471_v39 = vshll.u32 %v2470_v6, 23 }
 0x25a   :  { %v2362_v42 = vshll.u32 %v4717_v19, %v2360_v16  ;;  %v2363_v28 = vshrl.u32 %v2345_v15, %v2361_v24  ;;  %v2366_v3 = vadd.s32 127, %v2365_v1  ;;  %v2161_v51 = vand.u32 2147483647, %v2160_v27 }
 0x25b   :  { %v2258_v45 = vshll.u32 %v4615_v2, %v4693_v47  ;;  %v2264_v50 = vor.u32 4788187, %v2263_v30  ;;  %v2558_v46 = vadd.s32 536870912, %v2557_v21  ;;  %v1956_v59 = vmul.f32 %v1955_v32, %v1953_v61 }
 0x25c   :  { %v2467_v55 = vshrl.u32 %v2449_v4, %v2465_v40  ;;  %v2364_v34 = vor.u32 %v2363_v28, %v2362_v42  ;;  %v2367_v57 = vshll.u32 %v2366_v3, 23  ;;  %v5056_v53 = vsub.s32 4, %v4474_v25 }
 0x25d   :  { %v2163_v26 = vcvt.s32.f32 %v2156_v41  ;;  %v2260_v19 = vor.u32 %v2259_v20, %v2258_v45  ;;  %v4768_v38 = vshrl.u32 %v2558_v46, 30  ;;  %v2061_v22 = vxor.u32 2147483648, %v4708_v52 }
 0x25e   :  { %v2064_v12 = vsel %vm1979_vm14, %v5056_v53, %v4474_v25  ;;  %v2466_v2 = vshll.u32 %v4656_v33, %v4725_v37  ;;  %v2472_v47 = vor.u32 4788187, %v2471_v39  ;;  %v2368_v32 = vor.u32 4788187, %v2367_v57 }
 0x25f   :  { %3122 = vsinq.f32 %v4637_v9  ;;  %v2164_v61 = vmul.f32 %v2163_v26, %v2161_v51  ;;  %v2265_v13 = vand.u32 2147483647, %v2264_v50  ;;  %v2560_v54 = vshll.u32 %v4768_v38, 30 }
 0x260   :  { %v1957_v31 = vxor.u32 2147483648, %v1956_v59  ;;  %v2468_v0 = vor.u32 %v2467_v55, %v2466_v2  ;;  %v2369_v25 = vand.u32 2147483647, %v2368_v32  ;;  %v2371_v10 = vcvt.s32.f32 %v2364_v34 }
 0x261   :  { %v5057_v48 = vand.u32 2147483647, %v4094_v14  ;;  %v2267_v27 = vcvt.s32.f32 %v2260_v19  ;;  %v4781_v33 = vsub.s32 %v2557_v21, %v2560_v54  ;;  %v2062_v9 = vsel %vm1979_vm14, %v2061_v22, %v4708_v52 }
 0x262   :  { %v2473_v30 = vand.u32 2147483647, %v2472_v47  ;;  %v2372_v6 = vmul.f32 %v2371_v10, %v2369_v25  ;;  %vm1875_vm3 = vcmp.lt.s32.totalorder %v4168_v17, 0  ;;  %v2165_v40 = vxor.u32 2147483648, %v2164_v61 }
 0x263   :  { %vm4777_vm2 = vcmp.le.f32.partialorder %v5057_v48, 0.7853982  ;;  %v2268_v16 = vmul.f32 %v2267_v27, %v2265_v13  ;;  %v2563_v23 = vsub.s32 0, %v4781_v33  ;;  %v4791_v15 = vand.u32 3, %v4632_v18 }
 0x264   :  { %v2066_v37 = vsel %vm4777_vm2, 0, %v2064_v12  ;;  %v5060_v24 = vand.u32 2147483647, %v4168_v17  ;;  %v1958_v52 = vsel %vm1875_vm3, %v1957_v31, %v1956_v59  ;;  %v2475_v5 = vcvt.s32.f32 %v2468_v0 }
 0x265   :  { %v2065_v41 = vsel %vm4777_vm2, %v4094_v14, %v2062_v9  ;;  %v4804_v20 = vadd.s32 3, %v2066_v37  ;;  %v2373_v4 = vxor.u32 2147483648, %v2372_v6  ;;  %v3010_v18 = vmin.u32 %v2563_v23, %v4781_v33 }
 0x266   :  { %vm4795_vm4 = vcmp.le.f32.partialorder %v5060_v24, 0.7853982  ;;  %v1959_v21 = vsub.s32 4, %v4521_v60  ;;  %v5063_v39 = vand.u32 2147483647, %v4209_v58  ;;  %vm2083_vm7 = vcmp.lt.s32.totalorder %v4209_v58, 0 }
 0x267   :  { %v2476_v28 = vmul.f32 %v2475_v5, %v2473_v30  ;;  %v1961_v3 = vsel %vm4795_vm4, %v4168_v17, %v1958_v52  ;;  %v2166_v51 = vsel %vm2083_vm7, %v2165_v40, %v2164_v61  ;;  %v2269_v45 = vxor.u32 2147483648, %v2268_v16 }
 0x268   :  { %vm4810_vm5 = vcmp.le.f32.partialorder %v5063_v39, 0.7853982  ;;  %v2565_v50 = vclz %v3010_v18  ;;  %v1869_v46 = vxor.u32 2147483648, %v4720_v29  ;;  %3124 = vcosq.f32 %v2065_v41 }
 0x269   :  { %v5066_v59 = vand.u32 2147483647, %v4284_v44  ;;  %vm2291_vm8 = vcmp.lt.s32.totalorder %v4569_v43, 0  ;;  %3126 = vsinq.f32 %v2065_v41  ;;  %vm2187_vm9 = vcmp.lt.s32.totalorder %v4284_v44, 0 }
 0x26a   :  { %v2374_v34 = vsel %vm2291_vm8, %v2373_v4, %v2372_v6  ;;  %v3011_v57 = vadd.s32 4294967294, %v2565_v50  ;;  %v1960_v53 = vsel %vm1875_vm3, %v1959_v21, %v4521_v60  ;;  %3128 = vcosq.f32 %v1961_v3 }
 0x26b   :  { %vm4823_vm6 = vcmp.le.f32.partialorder %v5066_v59, 0.7853982  ;;  %v2169_v12 = vsel %vm4810_vm5, %v4209_v58, %v2166_v51  ;;  %v2477_v26 = vxor.u32 2147483648, %v2476_v28  ;;  %v2270_v19 = vsel %vm2187_vm9, %v2269_v45, %v2268_v16 }
 0x26c   :  { %vm2395_vm10 = vcmp.lt.s32.totalorder %v4465_v11, 0  ;;  %v5069_v22 = vand.u32 2147483647, %v4569_v43  ;;  %vm3012_vm12 = vcmp.lt.s32.totalorder %v3011_v57, 0  ;;  %v3123_v47 = vpop.eup %3122  ;;  %3130 = vsinq.f32 %v1961_v3 }
 0x26d   :  { %v2167_v60 = vsub.s32 4, %v4547_v36  ;;  %v2568_v61 = vsel %vm3012_vm12, 0, %v3011_v57  ;;  %3132 = vcosq.f32 %v2169_v12  ;;  %v2553_v13 = vadd.s32 %v4732_v7, %v4741_v56 }
 0x26e   :  { %vm4842_vm11 = vcmp.le.f32.partialorder %v5069_v22, 0.7853982  ;;  %v2569_v54 = vsub.s32 32, %v2568_v61  ;;  %v2573_v31 = vsub.s32 4294967266, %v2568_v61  ;;  %v1962_v0 = vsel %vm4795_vm4, 0, %v1960_v53 }
 0x26f   :  { %v2377_v32 = vsel %vm4842_vm11, %v4569_v43, %v2374_v34  ;;  %3134 = vsinq.f32 %v2169_v12  ;;  %v2273_v25 = vsel %vm4823_vm6, %v4284_v44, %v2270_v19  ;;  %v2478_v10 = vsel %vm2395_vm10, %v2477_v26, %v2476_v28 }
 0x270   :  { %3136 = vcosq.f32 %v2377_v32  ;;  %v2570_v48 = vshll.u32 %v4781_v33, %v2568_v61  ;;  %v2571_v35 = vshrl.u32 %v2553_v13, %v2569_v54  ;;  %v2574_v27 = vadd.s32 127, %v2573_v31 }
 0x271   :  { %v1866_v9 = vxor.u32 2147483648, %v3123_v47  ;;  %v2168_v7 = vsel %vm2083_vm7, %v2167_v60, %v4547_v36  ;;  %v5072_v56 = vand.u32 2147483647, %v4465_v11  ;;  %3138 = vsinq.f32 %v2377_v32 }
 0x272   :  { %3140 = vcosq.f32 %v2273_v25  ;;  %v2375_v30 = vsub.s32 4, %v4705_v8  ;;  %v2572_v6 = vor.u32 %v2571_v35, %v2570_v48  ;;  %v2575_v40 = vshll.u32 %v2574_v27, 23 }
 0x273   :  { %vm4865_vm13 = vcmp.le.f32.partialorder %v5072_v56, 0.7853982  ;;  %v1966_v33 = vadd.s32 3, %v1962_v0  ;;  %v2271_v16 = vsub.s32 4, %v4583_v63  ;;  %3142 = vsinq.f32 %v2273_v25  ;;  %v5078_v0 = vld [vmem:[#allocation7_spill] sm:$0xff] }
 0x274   :  { %v2481_v36 = vsel %vm4865_vm13, %v4465_v11, %v2478_v10  ;;  %vm1865_vm15 = vcmp.eq.s32.totalorder %v4791_v15, 0  ;;  %vm1868_vm14 = vcmp.eq.s32.totalorder %v4791_v15, 2  ;;  %v2170_v23 = vsel %vm4810_vm5, 0, %v2168_v7 }
 0x275   :  { %v2576_v24 = vor.u32 4788187, %v2575_v40  ;;  %v1867_v1 = vsel %vm1865_vm15, %v4720_v29, %v1866_v9  ;;  %v1870_v52 = vsel %vm1868_vm14, %v1869_v46, %v3123_v47  ;;  %v4880_v5 = vand.u32 3, %v4804_v20  ;;  %v4882_v41 = vpop.eup %3124 }
 0x276   :  { %3144 = vcosq.f32 %v2481_v36  ;;  %v2376_v4 = vsel %vm2291_vm8, %v2375_v30, %v4705_v8  ;;  %v2579_v21 = vcvt.s32.f32 %v2572_v6  ;;  %v4887_v39 = vpop.eup %3126  ;;  %v4889_v42 = vand.u32 3, %v1966_v33 }
 0x277   :  { %v2577_v18 = vand.u32 2147483647, %v2576_v24  ;;  %v2174_v28 = vadd.s32 3, %v2170_v23  ;;  %v2272_v29 = vsel %vm2187_vm9, %v2271_v16, %v4583_v63  ;;  %3146 = vsinq.f32 %v2481_v36  ;;  %v3129_v20 = vpop.eup %3128 }
 0x278   :  { %v2479_v3 = vsub.s32 4, %v4628_v49  ;;  %vm1864_vm0 = vcmp.lt.s32.totalorder %v4791_v15, 2  ;;  %vm2076_vm1 = vcmp.eq.s32.totalorder %v4880_v5, 2  ;;  %v2378_v8 = vsel %vm4842_vm11, 0, %v2376_v4 }
 0x279   :  { %v2580_v51 = vmul.f32 %v2579_v21, %v2577_v18  ;;  %v3131_v45 = vpop.eup %3130  ;;  %v4899_v50 = vsel %vm1864_vm0, %v1867_v1, %v1870_v52  ;;  %vm2073_vm2 = vcmp.eq.s32.totalorder %v4880_v5, 0  ;;  %v2077_v46 = vxor.u32 2147483648, %v4882_v41 }
 0x27a   :  { %v2274_v63 = vsel %vm4823_vm6, 0, %v2272_v29  ;;  %v3133_v34 = vpop.eup %3132  ;;  %vm1968_vm3 = vcmp.lt.s32.totalorder %v4889_v42, 2  ;;  %v1973_v15 = vxor.u32 2147483648, %v3129_v20  ;;  %v2175_v57 = vand.u32 3, %v2174_v28 }
 0x27b   :  { %v2581_v59 = vxor.u32 2147483648, %v2580_v51  ;;  %vm2499_vm4 = vcmp.lt.s32.totalorder %v4598_v62, 0  ;;  %v2583_v53 = vsub.s32 4, %v4768_v38  ;;  %v2480_v26 = vsel %vm2395_vm10, %v2479_v3, %v4628_v49 }
 0x27c   :  { %v3135_v12 = vpop.eup %3134  ;;  %v2382_v19 = vadd.s32 3, %v2378_v8  ;;  %v5075_v22 = vand.u32 2147483647, %v4598_v62  ;;  %vm1969_vm7 = vcmp.eq.s32.totalorder %v4889_v42, 0  ;;  %v1970_v60 = vxor.u32 2147483648, %v3131_v45 }
 0x27d   :  { %v2582_v2 = vsel %vm2499_vm4, %v2581_v59, %v2580_v51  ;;  %v3137_v47 = vpop.eup %3136  ;;  %v2278_v32 = vadd.s32 3, %v2274_v63  ;;  %v2074_v13 = vxor.u32 2147483648, %v4887_v39  ;;  %vm1972_vm6 = vcmp.eq.s32.totalorder %v4889_v42, 2 }
 0x27e   :  { %vm4913_vm5 = vcmp.le.f32.partialorder %v5075_v22, 0.7853982  ;;  %v3139_v49 = vpop.eup %3138  ;;  %v2181_v54 = vxor.u32 2147483648, %v3133_v34  ;;  %vm1861_vm8 = vweird.f32 %v5078_v0  ;;  %vm2072_vm9 = vcmp.lt.s32.totalorder %v4880_v5, 2 }
 0x27f   :  { %v2585_v61 = vsel %vm4913_vm5, %v4598_v62, %v2582_v2  ;;  %v3141_v31 = vpop.eup %3140  ;;  %v2178_v25 = vxor.u32 2147483648, %v3135_v12  ;;  %v2482_v10 = vsel %vm4865_vm13, 0, %v2480_v26  ;;  %v2584_v48 = vsel %vm2499_vm4, %v2583_v53, %v4768_v38 }
 0x280   :  { %3148 = vcosq.f32 %v2585_v61  ;;  %v3143_v35 = vpop.eup %3142  ;;  %v2078_v27 = vsel %vm2076_vm1, %v2077_v46, %v4887_v39  ;;  %vm1965_vm10 = vweird.f32 %v4168_v17  ;;  %v1974_v9 = vsel %vm1972_vm6, %v1973_v15, %v3131_v45 }
 0x281   :  { %3150 = vsinq.f32 %v2585_v61  ;;  %vm2177_vm11 = vcmp.eq.s32.totalorder %v2175_v57, 0  ;;  %v2383_v7 = vand.u32 3, %v2382_v19  ;;  %v1971_v56 = vsel %vm1969_vm7, %v3129_v20, %v1970_v60 }
 0x282   :  { %v2279_v37 = vand.u32 3, %v2278_v32  ;;  %v2386_v30 = vxor.u32 2147483648, %v3139_v49  ;;  %v2389_v6 = vxor.u32 2147483648, %v3137_v47  ;;  %vm2069_vm12 = vweird.f32 %v4094_v14 }
 0x283   :  { %vm2180_vm13 = vcmp.eq.s32.totalorder %v2175_v57, 2  ;;  %v2285_v38 = vxor.u32 2147483648, %v3141_v31  ;;  %v2486_v40 = vadd.s32 3, %v2482_v10  ;;  %v2586_v33 = vsel %vm4913_vm5, 0, %v2584_v48  ;;  %v3145_v16 = vpop.eup %3144 }
 0x284   :  { %v2075_v36 = vsel %vm2073_vm2, %v4882_v41, %v2074_v13  ;;  %v2179_v23 = vsel %vm2177_vm11, %v3133_v34, %v2178_v25  ;;  %v2182_v24 = vsel %vm2180_vm13, %v2181_v54, %v3135_v12  ;;  %v2282_v1 = vxor.u32 2147483648, %v3143_v35  ;;  %v3147_v52 = vpop.eup %3146 }
 0x285   :  { %v1975_v4 = vsel %vm1968_vm3, %v1971_v56, %v1974_v9  ;;  %vm2176_vm15 = vcmp.lt.s32.totalorder %v2175_v57, 2  ;;  %vm2385_vm14 = vcmp.eq.s32.totalorder %v2383_v7, 0  ;;  %vm2388_vm0 = vcmp.eq.s32.totalorder %v2383_v7, 2 }
 0x286   :  { %vm2284_vm1 = vcmp.eq.s32.totalorder %v2279_v37, 2  ;;  %v2387_v18 = vsel %vm2385_vm14, %v3137_v47, %v2386_v30  ;;  %v2390_v21 = vsel %vm2388_vm0, %v2389_v6, %v3139_v49  ;;  %v2590_v39 = vadd.s32 3, %v2586_v33  ;;  %v5079_v47 = vld [vmem:[#allocation6_spill] sm:$0xff] }
 0x287   :  { %v2183_v28 = vsel %vm2176_vm15, %v2179_v23, %v2182_v24  ;;  %vm2281_vm4 = vcmp.eq.s32.totalorder %v2279_v37, 0  ;;  %v2286_v29 = vsel %vm2284_vm1, %v2285_v38, %v3143_v35  ;;  %v2487_v20 = vand.u32 3, %v2486_v40 }
 0x288   :  { %v2283_v3 = vsel %vm2281_vm4, %v3141_v31, %v2282_v1  ;;  %v2490_v41 = vxor.u32 2147483648, %v3147_v52  ;;  %v2493_v51 = vxor.u32 2147483648, %v3145_v16  ;;  %vm2384_vm2 = vcmp.lt.s32.totalorder %v2383_v7, 2 }
 0x289   :  { %v1872_v42 = vsel %vm1861_vm8, nan, %v4899_v50  ;;  %v2079_v8 = vsel %vm2072_vm9, %v2075_v36, %v2078_v27  ;;  %vm2173_vm3 = vweird.f32 %v4209_v58  ;;  %v2391_v45 = vsel %vm2384_vm2, %v2387_v18, %v2390_v21 }
 0x28a   :  { %v1976_v46 = vsel %vm1965_vm10, nan, %v1975_v4  ;;  %v2184_v63 = vsel %vm2173_vm3, nan, %v2183_v28  ;;  %vm2280_vm5 = vcmp.lt.s32.totalorder %v2279_v37, 2  ;;  %v2591_v59 = vand.u32 3, %v2590_v39 }
 0x28b   :  { %v2287_v34 = vsel %vm2280_vm5, %v2283_v3, %v2286_v29  ;;  %vm2489_vm7 = vcmp.eq.s32.totalorder %v2487_v20, 0  ;;  %vm2492_vm6 = vcmp.eq.s32.totalorder %v2487_v20, 2  ;;  %vm2381_vm11 = vweird.f32 %v4569_v43 }
 0x28c   :  { %v2080_v50 = vsel %vm2069_vm12, nan, %v2079_v8  ;;  %v2491_v5 = vsel %vm2489_vm7, %v3145_v16, %v2490_v41  ;;  %v2494_v57 = vsel %vm2492_vm6, %v2493_v51, %v3147_v52  ;;  %v2392_v53 = vsel %vm2381_vm11, nan, %v2391_v45 }
 0x28d   :  { %v3149_v15 = vpop.eup %3148  ;;  %v2753_v12 = vcombine.low %v1872_v42, %v1976_v46  ;;  %v2755_v26 = vcombine.low %v2080_v50, %v2184_v63  ;;  %vm2277_vm8 = vweird.f32 %v4284_v44  ;;  %vm2488_vm9 = vcmp.lt.s32.totalorder %v2487_v20, 2 }
 0x28e   :  { %v3151_v58 = vpop.eup %3150  ;;  %v2597_v17 = vxor.u32 2147483648, %v3149_v15  ;;  %v2288_v19 = vsel %vm2277_vm8, nan, %v2287_v34  ;;  %vm2596_vm10 = vcmp.eq.s32.totalorder %v2591_v59, 2  ;;  %v2495_v55 = vsel %vm2488_vm9, %v2491_v5, %v2494_v57 }
 0x28f   :  { %v2594_v22 = vxor.u32 2147483648, %v3151_v58  ;;  %v2757_v2 = vcombine.low %v2288_v19, %v2392_v53  ;;  %vm2593_vm13 = vcmp.eq.s32.totalorder %v2591_v59, 0  ;;  %vm2485_vm15 = vweird.f32 %v4465_v11 }
 0x290   :  { %v2598_v43 = vsel %vm2596_vm10, %v2597_v17, %v3151_v58  ;;  %vm2592_vm12 = vcmp.lt.s32.totalorder %v2591_v59, 2  ;;  %v2767_v60 = vrot.slane %v2753_v12, %v5079_v47  ;;  %v2781_v32 = vrot.slane %v2755_v26, %v5079_v47 }
 0x291   :  { %v2595_v14 = vsel %vm2593_vm13, %v3149_v15, %v2594_v22  ;;  %vm2589_vm14 = vweird.f32 %v4598_v62  ;;  %v2496_v61 = vsel %vm2485_vm15, nan, %v2495_v55  ;;  %v2795_v13 = vrot.slane %v2757_v2, %v5079_v47 }
 0x292   :  { %v2599_v44 = vsel %vm2592_vm12, %v2595_v14, %v2598_v43  ;;  %v2817_v31 = vcombine.low %v2767_v60, %v2781_v32 }
 0x293   :  { %v2600_v49 = vsel %vm2589_vm14, nan, %v2599_v44 }
 0x294   :  { %v2759_v54 = vcombine.low %v2496_v61, %v2600_v49  ;;  %v2831_v11 = vrot.slane %v2817_v31, %v5079_v47 }
 0x296   :  { %v2809_v0 = vrot.slane %v2759_v54, %v5079_v47 }
 0x298   :  { %v2821_v25 = vcombine.low %v2795_v13, %v2809_v0 }
 0x29a   :  { %v2859_v10 = vrot.slane %v2821_v25, %v5079_v47 }
 0x29c   :  { %v2881_v48 = vcombine.low %v2831_v11, %v2859_v10 }
 0x29e   :  { %2938 = vst [vmem:[%s4972_s3 + $0x8] sm:$0xff] %v2881_v48 }
 0x29f   :  { %2944 = vsyncpa [#allocation3], 1 }

</bundles_post_ra>
